<compile_context>
chip_gen: v7x
topology: tpu7x:2x2x1
jax: 0.10.0
libtpu: 0.0.40
codegen_flags: <defaults>
</compile_context>

<pallas_src>
import functools

import jax
import jax.numpy as jnp
from jax.experimental import pallas as pl
from jax.experimental.pallas import tpu as pltpu

LN_EPS = 1e-5  # nn.LayerNorm default

PARAM_ORDER = [
    "ln_g", "ln_b",
    "sa_q_w", "sa_q_b", "sa_k_w", "sa_k_b", "sa_v_w", "sa_v_b", "sa_o_w", "sa_o_b",
    "ca_q_w", "ca_q_b", "ca_k_w", "ca_k_b", "ca_v_w", "ca_v_b", "ca_o_w", "ca_o_b",
    "ff_w1", "ff_b1", "ff_w2", "ff_b2",
]


# ---------------------------------------------------------------------------
# in-kernel math helpers (traced inside the Pallas kernel)
# ---------------------------------------------------------------------------
def _layer_norm(x, gamma, beta):
    # x: (L, D); gamma/beta: (1, D). Kept in f32 (VPU math).
    mu = jnp.mean(x, axis=-1, keepdims=True)
    var = jnp.mean(jnp.square(x - mu), axis=-1, keepdims=True)
    return (x - mu) * jax.lax.rsqrt(var + LN_EPS) * gamma + beta


def _mha(x_q, x_kv, mask, wq, bq, wk, bk, wv, bv, wo_h, bo,
         n_heads, matmul_dtype, attn_ref=None):
    """Multi-head attention on a single batch element.

    x_q: (Lq, D), x_kv: (Lk, D), mask: (Lq, Lk) with 1 = keep, 0 = mask out.
    wo_h: output-projection weight pre-reshaped to (H, hd, D).
    If attn_ref is given (block (1, H, Lq, Lk)), the attention probabilities
    are stored immediately after the softmax. Returns out: (Lq, D) f32.
    """
    lq, d = x_q.shape
    lk = x_kv.shape[0]
    hd = d // n_heads
    inv_scale = jnp.float32(1.0 / float(hd) ** 0.5)

    def mm(a, b):
        return jnp.dot(a.astype(matmul_dtype), b.astype(matmul_dtype),
                       preferred_element_type=jnp.float32)

    # Full-width projections (K = N = D on the MXU); scale folded into Q once.
    q = (mm(x_q, wq) + bq) * inv_scale       # (Lq, D)
    k = mm(x_kv, wk) + bk                    # (Lk, D)
    v = mm(x_kv, wv) + bv                    # (Lk, D)

    # Head-batched views (H, L, hd) built from static lane slices.
    def split_heads(t):
        return jnp.stack(
            [t[:, h * hd:(h + 1) * hd] for h in range(n_heads)], axis=0)

    qh = split_heads(q)                      # (H, Lq, hd)
    kh = split_heads(k)                      # (H, Lk, hd)
    vh = split_heads(v)                      # (H, Lk, hd)

    # Batched energies over heads: (H, Lq, Lk).
    energy = jnp.einsum("hqd,hkd->hqk",
                        qh.astype(matmul_dtype), kh.astype(matmul_dtype),
                        preferred_element_type=jnp.float32)
    # Mask applied once to the whole head-batched tensor (masked_fill semantics).
    energy = jnp.where((mask == 0)[None, :, :], jnp.float32(-1e10), energy)

    # Numerically-stable softmax; reciprocal goes to the EUP slot.
    m = jnp.max(energy, axis=-1, keepdims=True)
    p = jnp.exp(energy - m)
    p = p * pl.reciprocal(jnp.sum(p, axis=-1, keepdims=True), approx=True)

    if attn_ref is not None:
        # Store right away so p does not stay live across the FFN.
        attn_ref[0] = p.astype(attn_ref.dtype)

    # Batched P @ V: (H, Lq, hd).
    ctx = jnp.einsum("hqk,hkd->hqd",
                     p.astype(matmul_dtype), vh.astype(matmul_dtype),
                     preferred_element_type=jnp.float32)

    # Output projection with full-width N = D, batched over heads, then a
    # cheap reduction over the head axis (no serial accumulate chain).
    out_h = jnp.einsum("hqd,hde->hqe",
                       ctx.astype(matmul_dtype), wo_h.astype(matmul_dtype),
                       preferred_element_type=jnp.float32)   # (H, Lq, D)
    return jnp.sum(out_h, axis=0) + bo                        # (Lq, D)


# ---------------------------------------------------------------------------
# Pallas kernel: one grid step == one batch element, full decoder layer fused
# ---------------------------------------------------------------------------
def _decoder_layer_kernel(
    trg_ref, enc_ref, tmask_ref, smask_ref,
    ln_g_ref, ln_b_ref,
    sa_qw_ref, sa_qb_ref, sa_kw_ref, sa_kb_ref, sa_vw_ref, sa_vb_ref, sa_ow_ref, sa_ob_ref,
    ca_qw_ref, ca_qb_ref, ca_kw_ref, ca_kb_ref, ca_vw_ref, ca_vb_ref, ca_ow_ref, ca_ob_ref,
    ff_w1_ref, ff_b1_ref, ff_w2_ref, ff_b2_ref,
    out_ref, attn_ref, *, n_heads, matmul_dtype,
):
    trg = trg_ref[0]          # (Lq, D)
    enc = enc_ref[0]          # (Lk, D)
    tmask = tmask_ref[0]      # (Lq, Lq)
    smask = smask_ref[0]      # (Lq, Lk)
    ln_g = ln_g_ref[...]      # (1, D)
    ln_b = ln_b_ref[...]      # (1, D)

    def mm(a, b):
        return jnp.dot(a.astype(matmul_dtype), b.astype(matmul_dtype),
                       preferred_element_type=jnp.float32)

    # --- self-attention block (pre-LN, dropout == identity in eval mode) ---
    x = _layer_norm(trg, ln_g, ln_b)
    sa_out = _mha(
        x, x, tmask,
        sa_qw_ref[...], sa_qb_ref[...], sa_kw_ref[...], sa_kb_ref[...],
        sa_vw_ref[...], sa_vb_ref[...], sa_ow_ref[...], sa_ob_ref[...],
        n_heads, matmul_dtype, attn_ref=None,
    )
    trg = trg + sa_out

    # --- encoder-decoder (cross) attention block ---
    x = _layer_norm(trg, ln_g, ln_b)
    ca_out = _mha(
        x, enc, smask,
        ca_qw_ref[...], ca_qb_ref[...], ca_kw_ref[...], ca_kb_ref[...],
        ca_vw_ref[...], ca_vb_ref[...], ca_ow_ref[...], ca_ob_ref[...],
        n_heads, matmul_dtype, attn_ref=attn_ref,   # attn stored inside _mha
    )
    trg = trg + ca_out

    # --- position-wise feed-forward block ---
    x = _layer_norm(trg, ln_g, ln_b)
    h = mm(x, ff_w1_ref[...]) + ff_b1_ref[...]
    h = jnp.maximum(h, 0.0)   # ReLU
    ff = mm(h, ff_w2_ref[...]) + ff_b2_ref[...]
    trg = trg + ff

    out_ref[0] = trg.astype(out_ref.dtype)


# ---------------------------------------------------------------------------
# wrapper
# ---------------------------------------------------------------------------
def decoder_layer(trg, enc_src, trg_mask, src_mask, params, n_heads,
                  *, matmul_dtype=jnp.float32, attn_dtype=jnp.float32):
    B, Lq, D = trg.shape
    Lk = enc_src.shape[1]
    assert D % n_heads == 0
    hd = D // n_heads

    # None masks (module default) == no masking == all-ones masks.
    if trg_mask is None:
        trg_mask = jnp.ones((B, Lq, Lq), jnp.float32)
    if src_mask is None:
        src_mask = jnp.ones((B, Lq, Lk), jnp.float32)

    # Layout plumbing (free, outside the kernel): output-projection weights
    # reshaped to (H, hd, D) so the kernel can do a head-batched projection.
    p = dict(params)
    p["sa_o_w"] = params["sa_o_w"].reshape(n_heads, hd, D)
    p["ca_o_w"] = params["ca_o_w"].reshape(n_heads, hd, D)
    param_list = [p[name] for name in PARAM_ORDER]

    def batched_spec(shape):
        nd = len(shape)
        return pl.BlockSpec((1,) + tuple(shape[1:]),
                            lambda b, nd=nd: (b,) + (0,) * (nd - 1))

    def shared_spec(arr):
        nd = arr.ndim
        return pl.BlockSpec(arr.shape, lambda b, nd=nd: (0,) * nd)

    in_specs = (
        [batched_spec(trg.shape), batched_spec(enc_src.shape),
         batched_spec(trg_mask.shape), batched_spec(src_mask.shape)]
        + [shared_spec(q) for q in param_list]
    )
    out_specs = (
        pl.BlockSpec((1, Lq, D), lambda b: (b, 0, 0)),
        pl.BlockSpec((1, n_heads, Lq, Lk), lambda b: (b, 0, 0, 0)),
    )
    out_shape = (
        jax.ShapeDtypeStruct((B, Lq, D), jnp.float32),
        jax.ShapeDtypeStruct((B, n_heads, Lq, Lk), attn_dtype),
    )

    kernel = functools.partial(_decoder_layer_kernel,
                               n_heads=n_heads, matmul_dtype=matmul_dtype)
    return pl.pallas_call(
        kernel,
        out_shape=out_shape,
        grid_spec=pltpu.PrefetchScalarGridSpec(
            num_scalar_prefetch=0,
            grid=(B,),
            in_specs=in_specs,
            out_specs=out_specs,
        ),
        compiler_params=pltpu.CompilerParams(
            dimension_semantics=("parallel",),
            vmem_limit_bytes=64 * 1024 * 1024,
        ),
    )(trg, enc_src, trg_mask, src_mask, *param_list)


# ---------------------------------------------------------------------------
# deterministic parameter init (shapes from DecoderLayer.__init__)
# ---------------------------------------------------------------------------
def init_params(key, hid_dim, pf_dim):
    params = {
        "ln_g": jnp.ones((1, hid_dim), jnp.float32),
        "ln_b": jnp.zeros((1, hid_dim), jnp.float32),
    }

    def lin(k, din, dout):
        kw, kb = jax.random.split(k)
        w = jax.random.normal(kw, (din, dout), jnp.float32) * 0.05
        b = jax.random.normal(kb, (1, dout), jnp.float32) * 0.05
        return w, b

    keys = jax.random.split(key, 10)
    names = ["sa_q", "sa_k", "sa_v", "sa_o", "ca_q", "ca_k", "ca_v", "ca_o"]
    for i, name in enumerate(names):
        w, b = lin(keys[i], hid_dim, hid_dim)
        params[name + "_w"], params[name + "_b"] = w, b
    params["ff_w1"], params["ff_b1"] = lin(keys[8], hid_dim, pf_dim)
    params["ff_w2"], params["ff_b2"] = lin(keys[9], pf_dim, hid_dim)
    return params


# ---------------------------------------------------------------------------
# pure-JAX reference (mirrors the PyTorch forward, eval mode)
# ---------------------------------------------------------------------------
def reference_decoder_layer(trg, enc_src, trg_mask, src_mask, p, n_heads):
    def ln(x):
        mu = x.mean(-1, keepdims=True)
        var = ((x - mu) ** 2).mean(-1, keepdims=True)
        return (x - mu) / jnp.sqrt(var + LN_EPS) * p["ln_g"][0] + p["ln_b"][0]

    def mha(xq, xkv, mask, pre):
        B, Lq, D = xq.shape
        Lk = xkv.shape[1]
        hd = D // n_heads
        q = xq @ p[pre + "q_w"] + p[pre + "q_b"][0]
        k = xkv @ p[pre + "k_w"] + p[pre + "k_b"][0]
        v = xkv @ p[pre + "v_w"] + p[pre + "v_b"][0]
        q = q.reshape(B, Lq, n_heads, hd).transpose(0, 2, 1, 3)
        k = k.reshape(B, Lk, n_heads, hd).transpose(0, 2, 1, 3)
        v = v.reshape(B, Lk, n_heads, hd).transpose(0, 2, 1, 3)
        energy = jnp.einsum("bhqd,bhkd->bhqk", q, k) / jnp.sqrt(jnp.float32(hd))
        energy = jnp.where(mask[:, None, :, :] == 0, -1e10, energy)
        attn = jax.nn.softmax(energy, axis=-1)
        o = jnp.einsum("bhqk,bhkd->bhqd", attn, v)
        o = o.transpose(0, 2, 1, 3).reshape(B, Lq, D)
        o = o @ p[pre + "o_w"] + p[pre + "o_b"][0]
        return o, attn

    r1 = trg
    x = ln(trg)
    sa, _ = mha(x, x, trg_mask, "sa_")
    trg = r1 + sa
    r2 = trg
    x = ln(trg)
    ca, attn = mha(x, enc_src, src_mask, "ca_")
    trg = r2 + ca
    r3 = trg
    x = ln(trg)
    h = jax.nn.relu(x @ p["ff_w1"] + p["ff_b1"][0])
    ff = h @ p["ff_w2"] + p["ff_b2"][0]
    trg = r3 + ff
    return trg, attn


if __name__ == "__main__":
    B, Lq, Lk, D, H, PF = 2, 8, 16, 32, 4, 64
    key = jax.random.PRNGKey(0)
    k1, k2, k3 = jax.random.split(key, 3)

    trg = jax.random.normal(k1, (B, Lq, D), jnp.float32)
    enc_src = jax.random.normal(k2, (B, Lk, D), jnp.float32)
    # forward defaults trg_mask=None / src_mask=None -> all-ones masks,
    # which makes the masked_fill a no-op (identical semantics).
    trg_mask = jnp.ones((B, Lq, Lq), jnp.float32)
    src_mask = jnp.ones((B, Lq, Lk), jnp.float32)

    params = init_params(k3, D, PF)

    out, attn = decoder_layer(trg, enc_src, trg_mask, src_mask, params, H)
    jax.block_until_ready((out, attn))

    ref_out, ref_attn = reference_decoder_layer(trg, enc_src, trg_mask, src_mask, params, H)
    assert out.shape == (B, Lq, D) and attn.shape == (B, H, Lq, Lk)
    # Slightly looser tolerance than pure-f32: softmax denominator uses the
    # EUP approximate reciprocal (per perf review).
    assert jnp.allclose(out, ref_out, atol=2e-3, rtol=2e-3)
    assert jnp.allclose(attn, ref_attn, atol=2e-3, rtol=2e-3)

    print("KERNEL_OK")
</pallas_src>

<mosaic_0001>
module attributes {stable_mosaic.version = 11 : i64} {
  func.func @_decoder_layer_kernel(%arg0: i32, %arg1: memref<1x8x32xf32, #tpu.memory_space<vmem>>, %arg2: memref<1x16x32xf32, #tpu.memory_space<vmem>>, %arg3: memref<1x8x8xf32, #tpu.memory_space<vmem>>, %arg4: memref<1x8x16xf32, #tpu.memory_space<vmem>>, %arg5: memref<1x32xf32, #tpu.memory_space<vmem>>, %arg6: memref<1x32xf32, #tpu.memory_space<vmem>>, %arg7: memref<32x32xf32, #tpu.memory_space<vmem>>, %arg8: memref<1x32xf32, #tpu.memory_space<vmem>>, %arg9: memref<32x32xf32, #tpu.memory_space<vmem>>, %arg10: memref<1x32xf32, #tpu.memory_space<vmem>>, %arg11: memref<32x32xf32, #tpu.memory_space<vmem>>, %arg12: memref<1x32xf32, #tpu.memory_space<vmem>>, %arg13: memref<4x8x32xf32, #tpu.memory_space<vmem>>, %arg14: memref<1x32xf32, #tpu.memory_space<vmem>>, %arg15: memref<32x32xf32, #tpu.memory_space<vmem>>, %arg16: memref<1x32xf32, #tpu.memory_space<vmem>>, %arg17: memref<32x32xf32, #tpu.memory_space<vmem>>, %arg18: memref<1x32xf32, #tpu.memory_space<vmem>>, %arg19: memref<32x32xf32, #tpu.memory_space<vmem>>, %arg20: memref<1x32xf32, #tpu.memory_space<vmem>>, %arg21: memref<4x8x32xf32, #tpu.memory_space<vmem>>, %arg22: memref<1x32xf32, #tpu.memory_space<vmem>>, %arg23: memref<32x64xf32, #tpu.memory_space<vmem>>, %arg24: memref<1x64xf32, #tpu.memory_space<vmem>>, %arg25: memref<64x32xf32, #tpu.memory_space<vmem>>, %arg26: memref<1x32xf32, #tpu.memory_space<vmem>>, %arg27: memref<1x8x32xf32, #tpu.memory_space<vmem>>, %arg28: memref<1x4x8x16xf32, #tpu.memory_space<vmem>>) attributes {dimension_semantics = [#tpu.dimension_semantics<parallel>], iteration_bounds = array<i64: 2>, scalar_prefetch = 0 : i64, scratch_operands = 0 : i64, tpu.core_type = #tpu.core_type<tc>, window_params = [{transform_indices = @transform_0, window_bounds = array<i64: 1, 8, 32>}, {transform_indices = @transform_1, window_bounds = array<i64: 1, 16, 32>}, {transform_indices = @transform_2, window_bounds = array<i64: 1, 8, 8>}, {transform_indices = @transform_3, window_bounds = array<i64: 1, 8, 16>}, {pipeline_mode = #tpu.pipeline_mode<synchronous>, transform_indices = @transform_4, window_bounds = array<i64: 1, 32>}, {pipeline_mode = #tpu.pipeline_mode<synchronous>, transform_indices = @transform_5, window_bounds = array<i64: 1, 32>}, {pipeline_mode = #tpu.pipeline_mode<synchronous>, transform_indices = @transform_6, window_bounds = array<i64: 32, 32>}, {pipeline_mode = #tpu.pipeline_mode<synchronous>, transform_indices = @transform_7, window_bounds = array<i64: 1, 32>}, {pipeline_mode = #tpu.pipeline_mode<synchronous>, transform_indices = @transform_8, window_bounds = array<i64: 32, 32>}, {pipeline_mode = #tpu.pipeline_mode<synchronous>, transform_indices = @transform_9, window_bounds = array<i64: 1, 32>}, {pipeline_mode = #tpu.pipeline_mode<synchronous>, transform_indices = @transform_10, window_bounds = array<i64: 32, 32>}, {pipeline_mode = #tpu.pipeline_mode<synchronous>, transform_indices = @transform_11, window_bounds = array<i64: 1, 32>}, {pipeline_mode = #tpu.pipeline_mode<synchronous>, transform_indices = @transform_12, window_bounds = array<i64: 4, 8, 32>}, {pipeline_mode = #tpu.pipeline_mode<synchronous>, transform_indices = @transform_13, window_bounds = array<i64: 1, 32>}, {pipeline_mode = #tpu.pipeline_mode<synchronous>, transform_indices = @transform_14, window_bounds = array<i64: 32, 32>}, {pipeline_mode = #tpu.pipeline_mode<synchronous>, transform_indices = @transform_15, window_bounds = array<i64: 1, 32>}, {pipeline_mode = #tpu.pipeline_mode<synchronous>, transform_indices = @transform_16, window_bounds = array<i64: 32, 32>}, {pipeline_mode = #tpu.pipeline_mode<synchronous>, transform_indices = @transform_17, window_bounds = array<i64: 1, 32>}, {pipeline_mode = #tpu.pipeline_mode<synchronous>, transform_indices = @transform_18, window_bounds = array<i64: 32, 32>}, {pipeline_mode = #tpu.pipeline_mode<synchronous>, transform_indices = @transform_19, window_bounds = array<i64: 1, 32>}, {pipeline_mode = #tpu.pipeline_mode<synchronous>, transform_indices = @transform_20, window_bounds = array<i64: 4, 8, 32>}, {pipeline_mode = #tpu.pipeline_mode<synchronous>, transform_indices = @transform_21, window_bounds = array<i64: 1, 32>}, {pipeline_mode = #tpu.pipeline_mode<synchronous>, transform_indices = @transform_22, window_bounds = array<i64: 32, 64>}, {pipeline_mode = #tpu.pipeline_mode<synchronous>, transform_indices = @transform_23, window_bounds = array<i64: 1, 64>}, {pipeline_mode = #tpu.pipeline_mode<synchronous>, transform_indices = @transform_24, window_bounds = array<i64: 64, 32>}, {pipeline_mode = #tpu.pipeline_mode<synchronous>, transform_indices = @transform_25, window_bounds = array<i64: 1, 32>}, {transform_indices = @transform_26, window_bounds = array<i64: 1, 8, 32>}, {transform_indices = @transform_27, window_bounds = array<i64: 1, 4, 8, 16>}]} {
    %c0 = arith.constant 0 : index
    %c0_0 = arith.constant 0 : index
    %c0_1 = arith.constant 0 : index
    %0 = vector.load %arg1[%c0, %c0_0, %c0_1] : memref<1x8x32xf32, #tpu.memory_space<vmem>>, vector<1x8x32xf32>
    %1 = vector.shape_cast %0 : vector<1x8x32xf32> to vector<8x32xf32>
    %c0_2 = arith.constant 0 : index
    %c0_3 = arith.constant 0 : index
    %c0_4 = arith.constant 0 : index
    %2 = vector.load %arg2[%c0_2, %c0_3, %c0_4] : memref<1x16x32xf32, #tpu.memory_space<vmem>>, vector<1x16x32xf32>
    %3 = vector.shape_cast %2 : vector<1x16x32xf32> to vector<16x32xf32>
    %c0_5 = arith.constant 0 : index
    %c0_6 = arith.constant 0 : index
    %c0_7 = arith.constant 0 : index
    %4 = vector.load %arg3[%c0_5, %c0_6, %c0_7] : memref<1x8x8xf32, #tpu.memory_space<vmem>>, vector<1x8x8xf32>
    %5 = vector.shape_cast %4 : vector<1x8x8xf32> to vector<8x8xf32>
    %c0_8 = arith.constant 0 : index
    %c0_9 = arith.constant 0 : index
    %c0_10 = arith.constant 0 : index
    %6 = vector.load %arg4[%c0_8, %c0_9, %c0_10] : memref<1x8x16xf32, #tpu.memory_space<vmem>>, vector<1x8x16xf32>
    %7 = vector.shape_cast %6 : vector<1x8x16xf32> to vector<8x16xf32>
    %c0_11 = arith.constant 0 : index
    %c0_12 = arith.constant 0 : index
    %8 = vector.load %arg5[%c0_11, %c0_12] : memref<1x32xf32, #tpu.memory_space<vmem>>, vector<1x32xf32>
    %c0_13 = arith.constant 0 : index
    %c0_14 = arith.constant 0 : index
    %9 = vector.load %arg6[%c0_13, %c0_14] : memref<1x32xf32, #tpu.memory_space<vmem>>, vector<1x32xf32>
    %cst = arith.constant dense<0.000000e+00> : vector<8xf32>
    %10 = vector.multi_reduction <add>, %1, %cst [1] : vector<8x32xf32> to vector<8xf32>
    %11 = vector.shape_cast %10 : vector<8xf32> to vector<8x1xf32>
    %cst_15 = arith.constant 3.200000e+01 : f32
    %12 = vector.broadcast %cst_15 : f32 to vector<8x1xf32>
    %13 = arith.divf %11, %12 : vector<8x1xf32>
    %14 = vector.broadcast %13 : vector<8x1xf32> to vector<8x32xf32>
    %15 = arith.subf %1, %14 : vector<8x32xf32>
    %16 = arith.mulf %15, %15 : vector<8x32xf32>
    %cst_16 = arith.constant dense<0.000000e+00> : vector<8xf32>
    %17 = vector.multi_reduction <add>, %16, %cst_16 [1] : vector<8x32xf32> to vector<8xf32>
    %18 = vector.shape_cast %17 : vector<8xf32> to vector<8x1xf32>
    %cst_17 = arith.constant 3.200000e+01 : f32
    %19 = vector.broadcast %cst_17 : f32 to vector<8x1xf32>
    %20 = arith.divf %18, %19 : vector<8x1xf32>
    %21 = vector.broadcast %13 : vector<8x1xf32> to vector<8x32xf32>
    %22 = arith.subf %1, %21 : vector<8x32xf32>
    %cst_18 = arith.constant 9.99999974E-6 : f32
    %23 = vector.broadcast %cst_18 : f32 to vector<8x1xf32>
    %24 = arith.addf %20, %23 : vector<8x1xf32>
    %25 = math.rsqrt %24 : vector<8x1xf32>
    %26 = vector.broadcast %25 : vector<8x1xf32> to vector<8x32xf32>
    %27 = arith.mulf %22, %26 : vector<8x32xf32>
    %28 = vector.broadcast %8 : vector<1x32xf32> to vector<8x32xf32>
    %29 = arith.mulf %27, %28 : vector<8x32xf32>
    %30 = vector.broadcast %9 : vector<1x32xf32> to vector<8x32xf32>
    %31 = arith.addf %29, %30 : vector<8x32xf32>
    %c0_19 = arith.constant 0 : index
    %c0_20 = arith.constant 0 : index
    %32 = vector.load %arg7[%c0_19, %c0_20] : memref<32x32xf32, #tpu.memory_space<vmem>>, vector<32x32xf32>
    %c0_21 = arith.constant 0 : index
    %c0_22 = arith.constant 0 : index
    %33 = vector.load %arg8[%c0_21, %c0_22] : memref<1x32xf32, #tpu.memory_space<vmem>>, vector<1x32xf32>
    %c0_23 = arith.constant 0 : index
    %c0_24 = arith.constant 0 : index
    %34 = vector.load %arg9[%c0_23, %c0_24] : memref<32x32xf32, #tpu.memory_space<vmem>>, vector<32x32xf32>
    %c0_25 = arith.constant 0 : index
    %c0_26 = arith.constant 0 : index
    %35 = vector.load %arg10[%c0_25, %c0_26] : memref<1x32xf32, #tpu.memory_space<vmem>>, vector<1x32xf32>
    %c0_27 = arith.constant 0 : index
    %c0_28 = arith.constant 0 : index
    %36 = vector.load %arg11[%c0_27, %c0_28] : memref<32x32xf32, #tpu.memory_space<vmem>>, vector<32x32xf32>
    %c0_29 = arith.constant 0 : index
    %c0_30 = arith.constant 0 : index
    %37 = vector.load %arg12[%c0_29, %c0_30] : memref<1x32xf32, #tpu.memory_space<vmem>>, vector<1x32xf32>
    %c0_31 = arith.constant 0 : index
    %c0_32 = arith.constant 0 : index
    %c0_33 = arith.constant 0 : index
    %38 = vector.load %arg13[%c0_31, %c0_32, %c0_33] : memref<4x8x32xf32, #tpu.memory_space<vmem>>, vector<4x8x32xf32>
    %c0_34 = arith.constant 0 : index
    %c0_35 = arith.constant 0 : index
    %39 = vector.load %arg14[%c0_34, %c0_35] : memref<1x32xf32, #tpu.memory_space<vmem>>, vector<1x32xf32>
    %cst_36 = arith.constant dense<0.000000e+00> : vector<8x32xf32>
    %40 = tpu.matmul %31, %32, %cst_36 {dimension_numbers = #tpu.dot_dimension_numbers<[1], [0], [0], [1], [0, 0, 1, 1], [], []>} : vector<8x32xf32>, vector<32x32xf32>, vector<8x32xf32> -> vector<8x32xf32>
    %41 = vector.broadcast %33 : vector<1x32xf32> to vector<8x32xf32>
    %42 = arith.addf %40, %41 : vector<8x32xf32>
    %cst_37 = arith.constant 0.353553385 : f32
    %43 = vector.broadcast %cst_37 : f32 to vector<8x32xf32>
    %44 = arith.mulf %42, %43 : vector<8x32xf32>
    %cst_38 = arith.constant dense<0.000000e+00> : vector<8x32xf32>
    %45 = tpu.matmul %31, %34, %cst_38 {dimension_numbers = #tpu.dot_dimension_numbers<[1], [0], [0], [1], [0, 0, 1, 1], [], []>} : vector<8x32xf32>, vector<32x32xf32>, vector<8x32xf32> -> vector<8x32xf32>
    %46 = vector.broadcast %35 : vector<1x32xf32> to vector<8x32xf32>
    %47 = arith.addf %45, %46 : vector<8x32xf32>
    %cst_39 = arith.constant dense<0.000000e+00> : vector<8x32xf32>
    %48 = tpu.matmul %31, %36, %cst_39 {dimension_numbers = #tpu.dot_dimension_numbers<[1], [0], [0], [1], [0, 0, 1, 1], [], []>} : vector<8x32xf32>, vector<32x32xf32>, vector<8x32xf32> -> vector<8x32xf32>
    %49 = vector.broadcast %37 : vector<1x32xf32> to vector<8x32xf32>
    %50 = arith.addf %48, %49 : vector<8x32xf32>
    %51 = vector.extract_strided_slice %44 {offsets = [0, 0], sizes = [8, 8], strides = [1, 1]} : vector<8x32xf32> to vector<8x8xf32>
    %52 = vector.extract_strided_slice %44 {offsets = [0, 8], sizes = [8, 8], strides = [1, 1]} : vector<8x32xf32> to vector<8x8xf32>
    %53 = vector.extract_strided_slice %44 {offsets = [0, 16], sizes = [8, 8], strides = [1, 1]} : vector<8x32xf32> to vector<8x8xf32>
    %54 = vector.extract_strided_slice %44 {offsets = [0, 24], sizes = [8, 8], strides = [1, 1]} : vector<8x32xf32> to vector<8x8xf32>
    %55 = vector.shape_cast %51 : vector<8x8xf32> to vector<1x8x8xf32>
    %56 = vector.shape_cast %52 : vector<8x8xf32> to vector<1x8x8xf32>
    %57 = vector.shape_cast %53 : vector<8x8xf32> to vector<1x8x8xf32>
    %58 = vector.shape_cast %54 : vector<8x8xf32> to vector<1x8x8xf32>
    %59 = tpu.concatenate %55, %56, %57, %58 in 0 : vector<1x8x8xf32>, vector<1x8x8xf32>, vector<1x8x8xf32>, vector<1x8x8xf32> -> vector<4x8x8xf32>
    %60 = vector.extract_strided_slice %47 {offsets = [0, 0], sizes = [8, 8], strides = [1, 1]} : vector<8x32xf32> to vector<8x8xf32>
    %61 = vector.extract_strided_slice %47 {offsets = [0, 8], sizes = [8, 8], strides = [1, 1]} : vector<8x32xf32> to vector<8x8xf32>
    %62 = vector.extract_strided_slice %47 {offsets = [0, 16], sizes = [8, 8], strides = [1, 1]} : vector<8x32xf32> to vector<8x8xf32>
    %63 = vector.extract_strided_slice %47 {offsets = [0, 24], sizes = [8, 8], strides = [1, 1]} : vector<8x32xf32> to vector<8x8xf32>
    %64 = vector.shape_cast %60 : vector<8x8xf32> to vector<1x8x8xf32>
    %65 = vector.shape_cast %61 : vector<8x8xf32> to vector<1x8x8xf32>
    %66 = vector.shape_cast %62 : vector<8x8xf32> to vector<1x8x8xf32>
    %67 = vector.shape_cast %63 : vector<8x8xf32> to vector<1x8x8xf32>
    %68 = tpu.concatenate %64, %65, %66, %67 in 0 : vector<1x8x8xf32>, vector<1x8x8xf32>, vector<1x8x8xf32>, vector<1x8x8xf32> -> vector<4x8x8xf32>
    %69 = vector.extract_strided_slice %50 {offsets = [0, 0], sizes = [8, 8], strides = [1, 1]} : vector<8x32xf32> to vector<8x8xf32>
    %70 = vector.extract_strided_slice %50 {offsets = [0, 8], sizes = [8, 8], strides = [1, 1]} : vector<8x32xf32> to vector<8x8xf32>
    %71 = vector.extract_strided_slice %50 {offsets = [0, 16], sizes = [8, 8], strides = [1, 1]} : vector<8x32xf32> to vector<8x8xf32>
    %72 = vector.extract_strided_slice %50 {offsets = [0, 24], sizes = [8, 8], strides = [1, 1]} : vector<8x32xf32> to vector<8x8xf32>
    %73 = vector.shape_cast %69 : vector<8x8xf32> to vector<1x8x8xf32>
    %74 = vector.shape_cast %70 : vector<8x8xf32> to vector<1x8x8xf32>
    %75 = vector.shape_cast %71 : vector<8x8xf32> to vector<1x8x8xf32>
    %76 = vector.shape_cast %72 : vector<8x8xf32> to vector<1x8x8xf32>
    %77 = tpu.concatenate %73, %74, %75, %76 in 0 : vector<1x8x8xf32>, vector<1x8x8xf32>, vector<1x8x8xf32>, vector<1x8x8xf32> -> vector<4x8x8xf32>
    "tpu.trace_start"() <{level = 10 : i32, message = "hqd,hkd->hqk"}> : () -> ()
    %cst_40 = arith.constant dense<0.000000e+00> : vector<4x8x8xf32>
    %78 = tpu.matmul %59, %68, %cst_40 {dimension_numbers = #tpu.dot_dimension_numbers<[2], [2], [1], [1], [0, 0, 0, 1, 1, 1], [0], [0]>} : vector<4x8x8xf32>, vector<4x8x8xf32>, vector<4x8x8xf32> -> vector<4x8x8xf32>
    %cst_41 = arith.constant 0.000000e+00 : f32
    "tpu.trace_stop"() : () -> ()
    %79 = vector.broadcast %cst_41 : f32 to vector<8x8xf32>
    %80 = arith.cmpf oeq, %5, %79 : vector<8x8xf32>
    %81 = vector.shape_cast %80 : vector<8x8xi1> to vector<1x8x8xi1>
    %cst_42 = arith.constant -1.000000e+10 : f32
    %82 = vector.shape_cast %81 : vector<1x8x8xi1> to vector<1x8x8xi1>
    %83 = vector.broadcast %82 : vector<1x8x8xi1> to vector<4x8x8xi1>
    %84 = vector.broadcast %cst_42 : f32 to vector<4x8x8xf32>
    %85 = arith.select %83, %84, %78 : vector<4x8x8xi1>, vector<4x8x8xf32>
    %cst_43 = arith.constant dense<0xFF800000> : vector<4x8xf32>
    %86 = vector.multi_reduction <maximumf>, %85, %cst_43 [2] : vector<4x8x8xf32> to vector<4x8xf32>
    %87 = vector.shape_cast %86 : vector<4x8xf32> to vector<4x8x1xf32>
    %88 = vector.broadcast %87 : vector<4x8x1xf32> to vector<4x8x8xf32>
    %89 = arith.subf %85, %88 : vector<4x8x8xf32>
    %90 = math.exp %89 : vector<4x8x8xf32>
    %cst_44 = arith.constant dense<0.000000e+00> : vector<4x8xf32>
    %91 = vector.multi_reduction <add>, %90, %cst_44 [2] : vector<4x8x8xf32> to vector<4x8xf32>
    %92 = vector.shape_cast %91 : vector<4x8xf32> to vector<4x8x1xf32>
    %93 = tpu.reciprocal %92 {approx = true} : vector<4x8x1xf32> -> vector<4x8x1xf32>
    %94 = vector.broadcast %93 : vector<4x8x1xf32> to vector<4x8x8xf32>
    %95 = arith.mulf %90, %94 : vector<4x8x8xf32>
    "tpu.trace_start"() <{level = 10 : i32, message = "hqk,hkd->hqd"}> : () -> ()
    %cst_45 = arith.constant dense<0.000000e+00> : vector<4x8x8xf32>
    %96 = tpu.matmul %95, %77, %cst_45 {dimension_numbers = #tpu.dot_dimension_numbers<[2], [1], [1], [2], [0, 0, 0, 1, 1, 2], [0], [0]>} : vector<4x8x8xf32>, vector<4x8x8xf32>, vector<4x8x8xf32> -> vector<4x8x8xf32>
    "tpu.trace_stop"() : () -> ()
    "tpu.trace_start"() <{level = 10 : i32, message = "hqd,hde->hqe"}> : () -> ()
    %cst_46 = arith.constant dense<0.000000e+00> : vector<4x8x32xf32>
    %97 = tpu.matmul %96, %38, %cst_46 {dimension_numbers = #tpu.dot_dimension_numbers<[2], [1], [1], [2], [0, 0, 0, 1, 1, 2], [0], [0]>} : vector<4x8x8xf32>, vector<4x8x32xf32>, vector<4x8x32xf32> -> vector<4x8x32xf32>
    "tpu.trace_stop"() : () -> ()
    %cst_47 = arith.constant dense<0.000000e+00> : vector<8x32xf32>
    %98 = vector.multi_reduction <add>, %97, %cst_47 [0] : vector<4x8x32xf32> to vector<8x32xf32>
    %99 = vector.broadcast %39 : vector<1x32xf32> to vector<8x32xf32>
    %100 = arith.addf %98, %99 : vector<8x32xf32>
    %101 = arith.addf %1, %100 : vector<8x32xf32>
    %cst_48 = arith.constant dense<0.000000e+00> : vector<8xf32>
    %102 = vector.multi_reduction <add>, %101, %cst_48 [1] : vector<8x32xf32> to vector<8xf32>
    %103 = vector.shape_cast %102 : vector<8xf32> to vector<8x1xf32>
    %cst_49 = arith.constant 3.200000e+01 : f32
    %104 = vector.broadcast %cst_49 : f32 to vector<8x1xf32>
    %105 = arith.divf %103, %104 : vector<8x1xf32>
    %106 = vector.broadcast %105 : vector<8x1xf32> to vector<8x32xf32>
    %107 = arith.subf %101, %106 : vector<8x32xf32>
    %108 = arith.mulf %107, %107 : vector<8x32xf32>
    %cst_50 = arith.constant dense<0.000000e+00> : vector<8xf32>
    %109 = vector.multi_reduction <add>, %108, %cst_50 [1] : vector<8x32xf32> to vector<8xf32>
    %110 = vector.shape_cast %109 : vector<8xf32> to vector<8x1xf32>
    %cst_51 = arith.constant 3.200000e+01 : f32
    %111 = vector.broadcast %cst_51 : f32 to vector<8x1xf32>
    %112 = arith.divf %110, %111 : vector<8x1xf32>
    %113 = vector.broadcast %105 : vector<8x1xf32> to vector<8x32xf32>
    %114 = arith.subf %101, %113 : vector<8x32xf32>
    %cst_52 = arith.constant 9.99999974E-6 : f32
    %115 = vector.broadcast %cst_52 : f32 to vector<8x1xf32>
    %116 = arith.addf %112, %115 : vector<8x1xf32>
    %117 = math.rsqrt %116 : vector<8x1xf32>
    %118 = vector.broadcast %117 : vector<8x1xf32> to vector<8x32xf32>
    %119 = arith.mulf %114, %118 : vector<8x32xf32>
    %120 = vector.broadcast %8 : vector<1x32xf32> to vector<8x32xf32>
    %121 = arith.mulf %119, %120 : vector<8x32xf32>
    %122 = vector.broadcast %9 : vector<1x32xf32> to vector<8x32xf32>
    %123 = arith.addf %121, %122 : vector<8x32xf32>
    %c0_53 = arith.constant 0 : index
    %c0_54 = arith.constant 0 : index
    %124 = vector.load %arg15[%c0_53, %c0_54] : memref<32x32xf32, #tpu.memory_space<vmem>>, vector<32x32xf32>
    %c0_55 = arith.constant 0 : index
    %c0_56 = arith.constant 0 : index
    %125 = vector.load %arg16[%c0_55, %c0_56] : memref<1x32xf32, #tpu.memory_space<vmem>>, vector<1x32xf32>
    %c0_57 = arith.constant 0 : index
    %c0_58 = arith.constant 0 : index
    %126 = vector.load %arg17[%c0_57, %c0_58] : memref<32x32xf32, #tpu.memory_space<vmem>>, vector<32x32xf32>
    %c0_59 = arith.constant 0 : index
    %c0_60 = arith.constant 0 : index
    %127 = vector.load %arg18[%c0_59, %c0_60] : memref<1x32xf32, #tpu.memory_space<vmem>>, vector<1x32xf32>
    %c0_61 = arith.constant 0 : index
    %c0_62 = arith.constant 0 : index
    %128 = vector.load %arg19[%c0_61, %c0_62] : memref<32x32xf32, #tpu.memory_space<vmem>>, vector<32x32xf32>
    %c0_63 = arith.constant 0 : index
    %c0_64 = arith.constant 0 : index
    %129 = vector.load %arg20[%c0_63, %c0_64] : memref<1x32xf32, #tpu.memory_space<vmem>>, vector<1x32xf32>
    %c0_65 = arith.constant 0 : index
    %c0_66 = arith.constant 0 : index
    %c0_67 = arith.constant 0 : index
    %130 = vector.load %arg21[%c0_65, %c0_66, %c0_67] : memref<4x8x32xf32, #tpu.memory_space<vmem>>, vector<4x8x32xf32>
    %c0_68 = arith.constant 0 : index
    %c0_69 = arith.constant 0 : index
    %131 = vector.load %arg22[%c0_68, %c0_69] : memref<1x32xf32, #tpu.memory_space<vmem>>, vector<1x32xf32>
    %cst_70 = arith.constant dense<0.000000e+00> : vector<8x32xf32>
    %132 = tpu.matmul %123, %124, %cst_70 {dimension_numbers = #tpu.dot_dimension_numbers<[1], [0], [0], [1], [0, 0, 1, 1], [], []>} : vector<8x32xf32>, vector<32x32xf32>, vector<8x32xf32> -> vector<8x32xf32>
    %133 = vector.broadcast %125 : vector<1x32xf32> to vector<8x32xf32>
    %134 = arith.addf %132, %133 : vector<8x32xf32>
    %cst_71 = arith.constant 0.353553385 : f32
    %135 = vector.broadcast %cst_71 : f32 to vector<8x32xf32>
    %136 = arith.mulf %134, %135 : vector<8x32xf32>
    %cst_72 = arith.constant dense<0.000000e+00> : vector<16x32xf32>
    %137 = tpu.matmul %3, %126, %cst_72 {dimension_numbers = #tpu.dot_dimension_numbers<[1], [0], [0], [1], [0, 0, 1, 1], [], []>} : vector<16x32xf32>, vector<32x32xf32>, vector<16x32xf32> -> vector<16x32xf32>
    %138 = vector.broadcast %127 : vector<1x32xf32> to vector<16x32xf32>
    %139 = arith.addf %137, %138 : vector<16x32xf32>
    %cst_73 = arith.constant dense<0.000000e+00> : vector<16x32xf32>
    %140 = tpu.matmul %3, %128, %cst_73 {dimension_numbers = #tpu.dot_dimension_numbers<[1], [0], [0], [1], [0, 0, 1, 1], [], []>} : vector<16x32xf32>, vector<32x32xf32>, vector<16x32xf32> -> vector<16x32xf32>
    %141 = vector.broadcast %129 : vector<1x32xf32> to vector<16x32xf32>
    %142 = arith.addf %140, %141 : vector<16x32xf32>
    %143 = vector.extract_strided_slice %136 {offsets = [0, 0], sizes = [8, 8], strides = [1, 1]} : vector<8x32xf32> to vector<8x8xf32>
    %144 = vector.extract_strided_slice %136 {offsets = [0, 8], sizes = [8, 8], strides = [1, 1]} : vector<8x32xf32> to vector<8x8xf32>
    %145 = vector.extract_strided_slice %136 {offsets = [0, 16], sizes = [8, 8], strides = [1, 1]} : vector<8x32xf32> to vector<8x8xf32>
    %146 = vector.extract_strided_slice %136 {offsets = [0, 24], sizes = [8, 8], strides = [1, 1]} : vector<8x32xf32> to vector<8x8xf32>
    %147 = vector.shape_cast %143 : vector<8x8xf32> to vector<1x8x8xf32>
    %148 = vector.shape_cast %144 : vector<8x8xf32> to vector<1x8x8xf32>
    %149 = vector.shape_cast %145 : vector<8x8xf32> to vector<1x8x8xf32>
    %150 = vector.shape_cast %146 : vector<8x8xf32> to vector<1x8x8xf32>
    %151 = tpu.concatenate %147, %148, %149, %150 in 0 : vector<1x8x8xf32>, vector<1x8x8xf32>, vector<1x8x8xf32>, vector<1x8x8xf32> -> vector<4x8x8xf32>
    %152 = vector.extract_strided_slice %139 {offsets = [0, 0], sizes = [16, 8], strides = [1, 1]} : vector<16x32xf32> to vector<16x8xf32>
    %153 = vector.extract_strided_slice %139 {offsets = [0, 8], sizes = [16, 8], strides = [1, 1]} : vector<16x32xf32> to vector<16x8xf32>
    %154 = vector.extract_strided_slice %139 {offsets = [0, 16], sizes = [16, 8], strides = [1, 1]} : vector<16x32xf32> to vector<16x8xf32>
    %155 = vector.extract_strided_slice %139 {offsets = [0, 24], sizes = [16, 8], strides = [1, 1]} : vector<16x32xf32> to vector<16x8xf32>
    %156 = vector.shape_cast %152 : vector<16x8xf32> to vector<1x16x8xf32>
    %157 = vector.shape_cast %153 : vector<16x8xf32> to vector<1x16x8xf32>
    %158 = vector.shape_cast %154 : vector<16x8xf32> to vector<1x16x8xf32>
    %159 = vector.shape_cast %155 : vector<16x8xf32> to vector<1x16x8xf32>
    %160 = tpu.concatenate %156, %157, %158, %159 in 0 : vector<1x16x8xf32>, vector<1x16x8xf32>, vector<1x16x8xf32>, vector<1x16x8xf32> -> vector<4x16x8xf32>
    %161 = vector.extract_strided_slice %142 {offsets = [0, 0], sizes = [16, 8], strides = [1, 1]} : vector<16x32xf32> to vector<16x8xf32>
    %162 = vector.extract_strided_slice %142 {offsets = [0, 8], sizes = [16, 8], strides = [1, 1]} : vector<16x32xf32> to vector<16x8xf32>
    %163 = vector.extract_strided_slice %142 {offsets = [0, 16], sizes = [16, 8], strides = [1, 1]} : vector<16x32xf32> to vector<16x8xf32>
    %164 = vector.extract_strided_slice %142 {offsets = [0, 24], sizes = [16, 8], strides = [1, 1]} : vector<16x32xf32> to vector<16x8xf32>
    %165 = vector.shape_cast %161 : vector<16x8xf32> to vector<1x16x8xf32>
    %166 = vector.shape_cast %162 : vector<16x8xf32> to vector<1x16x8xf32>
    %167 = vector.shape_cast %163 : vector<16x8xf32> to vector<1x16x8xf32>
    %168 = vector.shape_cast %164 : vector<16x8xf32> to vector<1x16x8xf32>
    %169 = tpu.concatenate %165, %166, %167, %168 in 0 : vector<1x16x8xf32>, vector<1x16x8xf32>, vector<1x16x8xf32>, vector<1x16x8xf32> -> vector<4x16x8xf32>
    "tpu.trace_start"() <{level = 10 : i32, message = "hqd,hkd->hqk"}> : () -> ()
    %cst_74 = arith.constant dense<0.000000e+00> : vector<4x8x16xf32>
    %170 = tpu.matmul %151, %160, %cst_74 {dimension_numbers = #tpu.dot_dimension_numbers<[2], [2], [1], [1], [0, 0, 0, 1, 1, 1], [0], [0]>} : vector<4x8x8xf32>, vector<4x16x8xf32>, vector<4x8x16xf32> -> vector<4x8x16xf32>
    %cst_75 = arith.constant 0.000000e+00 : f32
    "tpu.trace_stop"() : () -> ()
    %171 = vector.broadcast %cst_75 : f32 to vector<8x16xf32>
    %172 = arith.cmpf oeq, %7, %171 : vector<8x16xf32>
    %173 = vector.shape_cast %172 : vector<8x16xi1> to vector<1x8x16xi1>
    %cst_76 = arith.constant -1.000000e+10 : f32
    %174 = vector.shape_cast %173 : vector<1x8x16xi1> to vector<1x8x16xi1>
    %175 = vector.broadcast %174 : vector<1x8x16xi1> to vector<4x8x16xi1>
    %176 = vector.broadcast %cst_76 : f32 to vector<4x8x16xf32>
    %177 = arith.select %175, %176, %170 : vector<4x8x16xi1>, vector<4x8x16xf32>
    %cst_77 = arith.constant dense<0xFF800000> : vector<4x8xf32>
    %178 = vector.multi_reduction <maximumf>, %177, %cst_77 [2] : vector<4x8x16xf32> to vector<4x8xf32>
    %179 = vector.shape_cast %178 : vector<4x8xf32> to vector<4x8x1xf32>
    %180 = vector.broadcast %179 : vector<4x8x1xf32> to vector<4x8x16xf32>
    %181 = arith.subf %177, %180 : vector<4x8x16xf32>
    %182 = math.exp %181 : vector<4x8x16xf32>
    %cst_78 = arith.constant dense<0.000000e+00> : vector<4x8xf32>
    %183 = vector.multi_reduction <add>, %182, %cst_78 [2] : vector<4x8x16xf32> to vector<4x8xf32>
    %184 = vector.shape_cast %183 : vector<4x8xf32> to vector<4x8x1xf32>
    %185 = tpu.reciprocal %184 {approx = true} : vector<4x8x1xf32> -> vector<4x8x1xf32>
    %186 = vector.broadcast %185 : vector<4x8x1xf32> to vector<4x8x16xf32>
    %187 = arith.mulf %182, %186 : vector<4x8x16xf32>
    %c0_79 = arith.constant 0 : index
    %c0_80 = arith.constant 0 : index
    %c0_81 = arith.constant 0 : index
    %c0_82 = arith.constant 0 : index
    %188 = vector.load %arg28[%c0_79, %c0_80, %c0_81, %c0_82] : memref<1x4x8x16xf32, #tpu.memory_space<vmem>>, vector<1x4x8x16xf32>
    %189 = vector.shape_cast %188 : vector<1x4x8x16xf32> to vector<4x8x16xf32>
    %190 = vector.shape_cast %187 : vector<4x8x16xf32> to vector<1x4x8x16xf32>
    tpu.vector_store %arg28[%c0_79, %c0_80, %c0_81, %c0_82], %190 {strides = array<i32>} : memref<1x4x8x16xf32, #tpu.memory_space<vmem>>, vector<1x4x8x16xf32>,
    "tpu.trace_start"() <{level = 10 : i32, message = "hqk,hkd->hqd"}> : () -> ()
    %cst_83 = arith.constant dense<0.000000e+00> : vector<4x8x8xf32>
    %191 = tpu.matmul %187, %169, %cst_83 {dimension_numbers = #tpu.dot_dimension_numbers<[2], [1], [1], [2], [0, 0, 0, 1, 1, 2], [0], [0]>} : vector<4x8x16xf32>, vector<4x16x8xf32>, vector<4x8x8xf32> -> vector<4x8x8xf32>
    "tpu.trace_stop"() : () -> ()
    "tpu.trace_start"() <{level = 10 : i32, message = "hqd,hde->hqe"}> : () -> ()
    %cst_84 = arith.constant dense<0.000000e+00> : vector<4x8x32xf32>
    %192 = tpu.matmul %191, %130, %cst_84 {dimension_numbers = #tpu.dot_dimension_numbers<[2], [1], [1], [2], [0, 0, 0, 1, 1, 2], [0], [0]>} : vector<4x8x8xf32>, vector<4x8x32xf32>, vector<4x8x32xf32> -> vector<4x8x32xf32>
    "tpu.trace_stop"() : () -> ()
    %cst_85 = arith.constant dense<0.000000e+00> : vector<8x32xf32>
    %193 = vector.multi_reduction <add>, %192, %cst_85 [0] : vector<4x8x32xf32> to vector<8x32xf32>
    %194 = vector.broadcast %131 : vector<1x32xf32> to vector<8x32xf32>
    %195 = arith.addf %193, %194 : vector<8x32xf32>
    %196 = arith.addf %101, %195 : vector<8x32xf32>
    %cst_86 = arith.constant dense<0.000000e+00> : vector<8xf32>
    %197 = vector.multi_reduction <add>, %196, %cst_86 [1] : vector<8x32xf32> to vector<8xf32>
    %198 = vector.shape_cast %197 : vector<8xf32> to vector<8x1xf32>
    %cst_87 = arith.constant 3.200000e+01 : f32
    %199 = vector.broadcast %cst_87 : f32 to vector<8x1xf32>
    %200 = arith.divf %198, %199 : vector<8x1xf32>
    %201 = vector.broadcast %200 : vector<8x1xf32> to vector<8x32xf32>
    %202 = arith.subf %196, %201 : vector<8x32xf32>
    %203 = arith.mulf %202, %202 : vector<8x32xf32>
    %cst_88 = arith.constant dense<0.000000e+00> : vector<8xf32>
    %204 = vector.multi_reduction <add>, %203, %cst_88 [1] : vector<8x32xf32> to vector<8xf32>
    %205 = vector.shape_cast %204 : vector<8xf32> to vector<8x1xf32>
    %cst_89 = arith.constant 3.200000e+01 : f32
    %206 = vector.broadcast %cst_89 : f32 to vector<8x1xf32>
    %207 = arith.divf %205, %206 : vector<8x1xf32>
    %208 = vector.broadcast %200 : vector<8x1xf32> to vector<8x32xf32>
    %209 = arith.subf %196, %208 : vector<8x32xf32>
    %cst_90 = arith.constant 9.99999974E-6 : f32
    %210 = vector.broadcast %cst_90 : f32 to vector<8x1xf32>
    %211 = arith.addf %207, %210 : vector<8x1xf32>
    %212 = math.rsqrt %211 : vector<8x1xf32>
    %213 = vector.broadcast %212 : vector<8x1xf32> to vector<8x32xf32>
    %214 = arith.mulf %209, %213 : vector<8x32xf32>
    %215 = vector.broadcast %8 : vector<1x32xf32> to vector<8x32xf32>
    %216 = arith.mulf %214, %215 : vector<8x32xf32>
    %217 = vector.broadcast %9 : vector<1x32xf32> to vector<8x32xf32>
    %218 = arith.addf %216, %217 : vector<8x32xf32>
    %c0_91 = arith.constant 0 : index
    %c0_92 = arith.constant 0 : index
    %219 = vector.load %arg23[%c0_91, %c0_92] : memref<32x64xf32, #tpu.memory_space<vmem>>, vector<32x64xf32>
    %cst_93 = arith.constant dense<0.000000e+00> : vector<8x64xf32>
    %220 = tpu.matmul %218, %219, %cst_93 {dimension_numbers = #tpu.dot_dimension_numbers<[1], [0], [0], [1], [0, 0, 1, 1], [], []>} : vector<8x32xf32>, vector<32x64xf32>, vector<8x64xf32> -> vector<8x64xf32>
    %c0_94 = arith.constant 0 : index
    %c0_95 = arith.constant 0 : index
    %221 = vector.load %arg24[%c0_94, %c0_95] : memref<1x64xf32, #tpu.memory_space<vmem>>, vector<1x64xf32>
    %222 = vector.broadcast %221 : vector<1x64xf32> to vector<8x64xf32>
    %223 = arith.addf %220, %222 : vector<8x64xf32>
    %cst_96 = arith.constant 0.000000e+00 : f32
    %224 = vector.broadcast %cst_96 : f32 to vector<8x64xf32>
    %225 = arith.maximumf %223, %224 : vector<8x64xf32>
    %c0_97 = arith.constant 0 : index
    %c0_98 = arith.constant 0 : index
    %226 = vector.load %arg25[%c0_97, %c0_98] : memref<64x32xf32, #tpu.memory_space<vmem>>, vector<64x32xf32>
    %cst_99 = arith.constant dense<0.000000e+00> : vector<8x32xf32>
    %227 = tpu.matmul %225, %226, %cst_99 {dimension_numbers = #tpu.dot_dimension_numbers<[1], [0], [0], [1], [0, 0, 1, 1], [], []>} : vector<8x64xf32>, vector<64x32xf32>, vector<8x32xf32> -> vector<8x32xf32>
    %c0_100 = arith.constant 0 : index
    %c0_101 = arith.constant 0 : index
    %228 = vector.load %arg26[%c0_100, %c0_101] : memref<1x32xf32, #tpu.memory_space<vmem>>, vector<1x32xf32>
    %229 = vector.broadcast %228 : vector<1x32xf32> to vector<8x32xf32>
    %230 = arith.addf %227, %229 : vector<8x32xf32>
    %231 = arith.addf %196, %230 : vector<8x32xf32>
    %c0_102 = arith.constant 0 : index
    %c0_103 = arith.constant 0 : index
    %c0_104 = arith.constant 0 : index
    %232 = vector.load %arg27[%c0_102, %c0_103, %c0_104] : memref<1x8x32xf32, #tpu.memory_space<vmem>>, vector<1x8x32xf32>
    %233 = vector.shape_cast %232 : vector<1x8x32xf32> to vector<8x32xf32>
    %234 = vector.shape_cast %231 : vector<8x32xf32> to vector<1x8x32xf32>
    tpu.vector_store %arg27[%c0_102, %c0_103, %c0_104], %234 {strides = array<i32>} : memref<1x8x32xf32, #tpu.memory_space<vmem>>, vector<1x8x32xf32>,
    return
  }
  func.func @transform_0(%arg0: i32) -> (i32, i32, i32) {
    %c0_i32 = arith.constant 0 : i32
    %c0_i32_0 = arith.constant 0 : i32
    %c0_i32_1 = arith.constant 0 : i32
    return %arg0, %c0_i32, %c0_i32_0 : i32, i32, i32
  }
  func.func @transform_1(%arg0: i32) -> (i32, i32, i32) {
    %c0_i32 = arith.constant 0 : i32
    %c0_i32_0 = arith.constant 0 : i32
    %c0_i32_1 = arith.constant 0 : i32
    return %arg0, %c0_i32, %c0_i32_0 : i32, i32, i32
  }
  func.func @transform_2(%arg0: i32) -> (i32, i32, i32) {
    %c0_i32 = arith.constant 0 : i32
    %c0_i32_0 = arith.constant 0 : i32
    %c0_i32_1 = arith.constant 0 : i32
    return %arg0, %c0_i32, %c0_i32_0 : i32, i32, i32
  }
  func.func @transform_3(%arg0: i32) -> (i32, i32, i32) {
    %c0_i32 = arith.constant 0 : i32
    %c0_i32_0 = arith.constant 0 : i32
    %c0_i32_1 = arith.constant 0 : i32
    return %arg0, %c0_i32, %c0_i32_0 : i32, i32, i32
  }
  func.func @transform_4(%arg0: i32) -> (i32, i32) {
    %c0_i32 = arith.constant 0 : i32
    %c0_i32_0 = arith.constant 0 : i32
    %c0_i32_1 = arith.constant 0 : i32
    return %c0_i32, %c0_i32_0 : i32, i32
  }
  func.func @transform_5(%arg0: i32) -> (i32, i32) {
    %c0_i32 = arith.constant 0 : i32
    %c0_i32_0 = arith.constant 0 : i32
    %c0_i32_1 = arith.constant 0 : i32
    return %c0_i32, %c0_i32_0 : i32, i32
  }
  func.func @transform_6(%arg0: i32) -> (i32, i32) {
    %c0_i32 = arith.constant 0 : i32
    %c0_i32_0 = arith.constant 0 : i32
    %c0_i32_1 = arith.constant 0 : i32
    return %c0_i32, %c0_i32_0 : i32, i32
  }
  func.func @transform_7(%arg0: i32) -> (i32, i32) {
    %c0_i32 = arith.constant 0 : i32
    %c0_i32_0 = arith.constant 0 : i32
    %c0_i32_1 = arith.constant 0 : i32
    return %c0_i32, %c0_i32_0 : i32, i32
  }
  func.func @transform_8(%arg0: i32) -> (i32, i32) {
    %c0_i32 = arith.constant 0 : i32
    %c0_i32_0 = arith.constant 0 : i32
    %c0_i32_1 = arith.constant 0 : i32
    return %c0_i32, %c0_i32_0 : i32, i32
  }
  func.func @transform_9(%arg0: i32) -> (i32, i32) {
    %c0_i32 = arith.constant 0 : i32
    %c0_i32_0 = arith.constant 0 : i32
    %c0_i32_1 = arith.constant 0 : i32
    return %c0_i32, %c0_i32_0 : i32, i32
  }
  func.func @transform_10(%arg0: i32) -> (i32, i32) {
    %c0_i32 = arith.constant 0 : i32
    %c0_i32_0 = arith.constant 0 : i32
    %c0_i32_1 = arith.constant 0 : i32
    return %c0_i32, %c0_i32_0 : i32, i32
  }
  func.func @transform_11(%arg0: i32) -> (i32, i32) {
    %c0_i32 = arith.constant 0 : i32
    %c0_i32_0 = arith.constant 0 : i32
    %c0_i32_1 = arith.constant 0 : i32
    return %c0_i32, %c0_i32_0 : i32, i32
  }
  func.func @transform_12(%arg0: i32) -> (i32, i32, i32) {
    %c0_i32 = arith.constant 0 : i32
    %c0_i32_0 = arith.constant 0 : i32
    %c0_i32_1 = arith.constant 0 : i32
    %c0_i32_2 = arith.constant 0 : i32
    return %c0_i32, %c0_i32_0, %c0_i32_1 : i32, i32, i32
  }
  func.func @transform_13(%arg0: i32) -> (i32, i32) {
    %c0_i32 = arith.constant 0 : i32
    %c0_i32_0 = arith.constant 0 : i32
    %c0_i32_1 = arith.constant 0 : i32
    return %c0_i32, %c0_i32_0 : i32, i32
  }
  func.func @transform_14(%arg0: i32) -> (i32, i32) {
    %c0_i32 = arith.constant 0 : i32
    %c0_i32_0 = arith.constant 0 : i32
    %c0_i32_1 = arith.constant 0 : i32
    return %c0_i32, %c0_i32_0 : i32, i32
  }
  func.func @transform_15(%arg0: i32) -> (i32, i32) {
    %c0_i32 = arith.constant 0 : i32
    %c0_i32_0 = arith.constant 0 : i32
    %c0_i32_1 = arith.constant 0 : i32
    return %c0_i32, %c0_i32_0 : i32, i32
  }
  func.func @transform_16(%arg0: i32) -> (i32, i32) {
    %c0_i32 = arith.constant 0 : i32
    %c0_i32_0 = arith.constant 0 : i32
    %c0_i32_1 = arith.constant 0 : i32
    return %c0_i32, %c0_i32_0 : i32, i32
  }
  func.func @transform_17(%arg0: i32) -> (i32, i32) {
    %c0_i32 = arith.constant 0 : i32
    %c0_i32_0 = arith.constant 0 : i32
    %c0_i32_1 = arith.constant 0 : i32
    return %c0_i32, %c0_i32_0 : i32, i32
  }
  func.func @transform_18(%arg0: i32) -> (i32, i32) {
    %c0_i32 = arith.constant 0 : i32
    %c0_i32_0 = arith.constant 0 : i32
    %c0_i32_1 = arith.constant 0 : i32
    return %c0_i32, %c0_i32_0 : i32, i32
  }
  func.func @transform_19(%arg0: i32) -> (i32, i32) {
    %c0_i32 = arith.constant 0 : i32
    %c0_i32_0 = arith.constant 0 : i32
    %c0_i32_1 = arith.constant 0 : i32
    return %c0_i32, %c0_i32_0 : i32, i32
  }
  func.func @transform_20(%arg0: i32) -> (i32, i32, i32) {
    %c0_i32 = arith.constant 0 : i32
    %c0_i32_0 = arith.constant 0 : i32
    %c0_i32_1 = arith.constant 0 : i32
    %c0_i32_2 = arith.constant 0 : i32
    return %c0_i32, %c0_i32_0, %c0_i32_1 : i32, i32, i32
  }
  func.func @transform_21(%arg0: i32) -> (i32, i32) {
    %c0_i32 = arith.constant 0 : i32
    %c0_i32_0 = arith.constant 0 : i32
    %c0_i32_1 = arith.constant 0 : i32
    return %c0_i32, %c0_i32_0 : i32, i32
  }
  func.func @transform_22(%arg0: i32) -> (i32, i32) {
    %c0_i32 = arith.constant 0 : i32
    %c0_i32_0 = arith.constant 0 : i32
    %c0_i32_1 = arith.constant 0 : i32
    return %c0_i32, %c0_i32_0 : i32, i32
  }
  func.func @transform_23(%arg0: i32) -> (i32, i32) {
    %c0_i32 = arith.constant 0 : i32
    %c0_i32_0 = arith.constant 0 : i32
    %c0_i32_1 = arith.constant 0 : i32
    return %c0_i32, %c0_i32_0 : i32, i32
  }
  func.func @transform_24(%arg0: i32) -> (i32, i32) {
    %c0_i32 = arith.constant 0 : i32
    %c0_i32_0 = arith.constant 0 : i32
    %c0_i32_1 = arith.constant 0 : i32
    return %c0_i32, %c0_i32_0 : i32, i32
  }
  func.func @transform_25(%arg0: i32) -> (i32, i32) {
    %c0_i32 = arith.constant 0 : i32
    %c0_i32_0 = arith.constant 0 : i32
    %c0_i32_1 = arith.constant 0 : i32
    return %c0_i32, %c0_i32_0 : i32, i32
  }
  func.func @transform_26(%arg0: i32) -> (i32, i32, i32) {
    %c0_i32 = arith.constant 0 : i32
    %c0_i32_0 = arith.constant 0 : i32
    %c0_i32_1 = arith.constant 0 : i32
    return %arg0, %c0_i32, %c0_i32_0 : i32, i32, i32
  }
  func.func @transform_27(%arg0: i32) -> (i32, i32, i32, i32) {
    %c0_i32 = arith.constant 0 : i32
    %c0_i32_0 = arith.constant 0 : i32
    %c0_i32_1 = arith.constant 0 : i32
    %c0_i32_2 = arith.constant 0 : i32
    return %arg0, %c0_i32, %c0_i32_0, %c0_i32_1 : i32, i32, i32, i32
  }
}

</mosaic_0001>

<bundles_post_ra>
// kernel: tpu_custom_call.1
= control target key start
LH: loop header
LB: loop body
LE: loop exit
PB: predicated region body
PF: predicated region fallthrough
CT: control target
= control target key end

     0   :  { %s7458_s0 = inlined_call_operand.hbm [shape: f32[2,8,32], index: 0, kind: input, shape index: {}]   ;;  %s7459_s1 = inlined_call_operand.hbm [shape: f32[2,16,32], index: 1, kind: input, shape index: {}]   ;;  %s7460_s2 = inlined_call_operand.hbm [shape: f32[2,8,8], index: 2, kind: input, shape index: {}]   ;;  %s7461_s3 = inlined_call_operand.hbm [shape: f32[2,8,16], index: 3, kind: input, shape index: {}]   ;;  %s7462_s4 = inlined_call_operand.hbm [shape: f32[1,32], index: 4, kind: input, shape index: {}]   ;;  %s7463_s5 = inlined_call_operand.hbm [shape: f32[1,32], index: 5, kind: input, shape index: {}]   ;;  %s7464_s6 = inlined_call_operand.hbm [shape: f32[32,32], index: 6, kind: input, shape index: {}]   ;;  %s7465_s7 = inlined_call_operand.hbm [shape: f32[1,32], index: 7, kind: input, shape index: {}]   ;;  %s7466_s8 = inlined_call_operand.hbm [shape: f32[32,32], index: 8, kind: input, shape index: {}]   ;;  %s7467_s9 = inlined_call_operand.hbm [shape: f32[1,32], index: 9, kind: input, shape index: {}]   ;;  %s7468_s10 = inlined_call_operand.hbm [shape: f32[32,32], index: 10, kind: input, shape index: {}]   ;;  %s7469_s11 = inlined_call_operand.hbm [shape: f32[1,32], index: 11, kind: input, shape index: {}]   ;;  %s7470_s12 = inlined_call_operand.hbm [shape: f32[4,8,32], index: 12, kind: input, shape index: {}]   ;;  %s7471_s13 = inlined_call_operand.hbm [shape: f32[1,32], index: 13, kind: input, shape index: {}]   ;;  %s7472_s14 = inlined_call_operand.hbm [shape: f32[32,32], index: 14, kind: input, shape index: {}]   ;;  %s7473_s15 = inlined_call_operand.hbm [shape: f32[1,32], index: 15, kind: input, shape index: {}]   ;;  %s7474_s16 = inlined_call_operand.hbm [shape: f32[32,32], index: 16, kind: input, shape index: {}]   ;;  %s7475_s17 = inlined_call_operand.hbm [shape: f32[1,32], index: 17, kind: input, shape index: {}]   ;;  %s7476_s18 = inlined_call_operand.hbm [shape: f32[32,32], index: 18, kind: input, shape index: {}]   ;;  %s7477_s19 = inlined_call_operand.hbm [shape: f32[1,32], index: 19, kind: input, shape index: {}]   ;;  %s7478_s20 = inlined_call_operand.hbm [shape: f32[4,8,32], index: 20, kind: input, shape index: {}]   ;;  %s7479_s21 = inlined_call_operand.hbm [shape: f32[1,32], index: 21, kind: input, shape index: {}]   ;;  %s7480_s22 = inlined_call_operand.hbm [shape: f32[32,64], index: 22, kind: input, shape index: {}]   ;;  %s7481_s23 = inlined_call_operand.hbm [shape: f32[1,64], index: 23, kind: input, shape index: {}]   ;;  %s7482_s24 = inlined_call_operand.hbm [shape: f32[64,32], index: 24, kind: input, shape index: {}]   ;;  %s7483_s25 = inlined_call_operand.hbm [shape: f32[1,32], index: 25, kind: input, shape index: {}]   ;;  %s7484_s26 = inlined_call_operand.hbm [shape: f32[2,8,32], index: 26, kind: output, shape index: {0}]   ;;  %s7485_s27 = inlined_call_operand.hbm [shape: f32[2,4,8,16], index: 27, kind: output, shape index: {1}]  }
   0x1   :  { %7533 = sst [smem:[#allocation69_spill]] %s7458_s0 }
   0x2   :  { %7534 = sst [smem:[#allocation70_spill]] %s7459_s1 }
   0x3   :  { %7535 = sst [smem:[#allocation71_spill]] %s7460_s2 }
   0x4   :  { %7536 = sst [smem:[#allocation72_spill]] %s7461_s3 }
   0x5   :  { %7537 = sst [smem:[#allocation73_spill]] %s7462_s4 }
   0x6   :  { %7538 = sst [smem:[#allocation74_spill]] %s7463_s5 }
   0x7   :  { %7539 = sst [smem:[#allocation75_spill]] %s7464_s6 }
   0x8   :  { %7540 = sst [smem:[#allocation76_spill]] %s7465_s7 }
   0x9   :  { %7541 = sst [smem:[#allocation77_spill]] %s7466_s8 }
   0xa   :  { %7542 = sst [smem:[#allocation78_spill]] %s7467_s9 }
   0xb   :  { %7543 = sst [smem:[#allocation79_spill]] %s7468_s10 }
   0xc   :  { %7544 = sst [smem:[#allocation80_spill]] %s7469_s11 }
   0xd   :  { %7545 = sst [smem:[#allocation81_spill]] %s7470_s12 }
   0xe   :  { %7546 = sst [smem:[#allocation82_spill]] %s7471_s13 }
   0xf   :  { %7547 = sst [smem:[#allocation83_spill]] %s7473_s15 }
  0x10   :  { %7548 = sst [smem:[#allocation84_spill]] %s7475_s17 }
  0x11   :  { %7549 = sst [smem:[#allocation85_spill]] %s7476_s18 }
  0x12   :  { %7550 = sst [smem:[#allocation86_spill]] %s7477_s19 }
  0x13   :  { %7551 = sst [smem:[#allocation87_spill]] %s7478_s20 }
  0x14   :  { %7552 = sst [smem:[#allocation88_spill]] %s7479_s21 }
  0x15   :  { %7553 = sst [smem:[#allocation89_spill]] %s7480_s22 }
  0x16   :  { %7554 = sst [smem:[#allocation90_spill]] %s7481_s23 }
  0x17   :  { %7555 = sst [smem:[#allocation91_spill]] %s7482_s24 }
  0x18   :  { %7556 = sst [smem:[#allocation92_spill]] %s7483_s25 }
  0x19   :  { %7557 = sst [smem:[#allocation93_spill]] %s7484_s26 }
  0x1a   :  { %7558 = sst [smem:[#allocation94_spill]] %s7485_s27 }
  0x1b   :  { %33 = vsyncpa [#allocation3], 0 }
  0x1c   :  { %35 = vsyncpa [#allocation3 + $0x1], 0 }
  0x1d   :  { %36 = vsyncpa [#allocation6], 0 }
  0x1e   :  { %38 = vsyncpa [#allocation6 + $0x1], 0 }
  0x1f   :  { %39 = vsyncpa [#allocation9], 0 }
  0x20   :  { %41 = vsyncpa [#allocation9 + $0x1], 0 }
  0x21   :  { %42 = vsyncpa [#allocation12], 0 }
  0x22   :  { %43 = vsyncpa [#allocation15], 0 }
  0x23   :  { %44 = vsyncpa [#allocation18], 0 }
  0x24   :  { %45 = vsyncpa [#allocation21], 0 }
  0x25   :  { %46 = vsyncpa [#allocation24], 0 }
  0x26   :  { %47 = vsyncpa [#allocation27], 0 }
  0x27   :  { %48 = vsyncpa [#allocation30], 0 }
  0x28   :  { %49 = vsyncpa [#allocation33], 0 }
  0x29   :  { %50 = vsyncpa [#allocation36], 0 }
  0x2a   :  { %51 = vsyncpa [#allocation39], 0 }
  0x2b   :  { %52 = vsyncpa [#allocation42], 0 }
  0x2c   :  { %53 = vsyncpa [#allocation4], 0 }
  0x2d   :  { %55 = vsyncpa [#allocation4 + $0x1], 0 }
  0x2e   :  { %56 = vsyncpa [#allocation45], 0 }
  0x2f   :  { %58 = vsyncpa [#allocation45 + $0x1], 0  ;;  %s6381_s7 = smov 0   ;;  %s6383_s4 = smov 0  }
  0x30   :  { %s6385_s8 = smov 0   ;;  %s6387_s30 = smov 0  }
  0x31 LB: > { %7559 = sst [smem:[#allocation63_spill]] %s6189_s7  ;;  %s6203_s9 = smov [#allocation10]   ;;  %s6201_s30 = sphi %s6387_s30, %s7643_s30   ;;  %s6197_s8 = sphi %s6385_s8, %s7645_s8   ;;  %s6193_s4 = sphi %s6383_s4, %s7647_s4   ;;  %s6189_s7 = sphi %s6381_s7, %s7646_s7  }
  0x32   : > { %7560 = sst [smem:[#allocation64_spill]] %s6197_s8  ;;  %s700_s5 = sshll.u32 %s6203_s9, 4  ;;  %s6407_s5 = int_to_ptr.vmem [resolvable:$true] %s700_s5 }
  0x33   : > { %s6402_s28 = sadd.s32 4294967295, %s6201_s30   ;;  %p4397_p0 = scmp.ge.s32.totalorder %s6201_s30, 1 }
  0x34   : > { %p7508_p1 = scmp.eq.s32.totalorder %s6402_s28, 0  ;;  %p687_p2 = scmp.lt.s32.totalorder %s6201_s30, 3 }
  0x35   : > { %s6204_s10 = smov [#allocation11]   ;;  %s6205_s1 = smov [#allocation14]  }
  0x36   : > { %p6409_p3 = pnand %p4397_p0, %p687_p2  ;;  %s711_s29 = sshll.u32 %s6204_s10, 4  ;;  %s6416_s29 = int_to_ptr.vmem [resolvable:$true] %s711_s29 }
  0x37   : > { %s735_s6 = sshll.u32 %s6205_s1, 4  ;;  %s6206_s2 = smov [#allocation17]   ;;  %s6424_s6 = int_to_ptr.vmem [resolvable:$true] %s735_s6 }
  0x38   : > { %s7561_s0 = scalar_select %p6409_p3, 1, 0 }
  0x39   : > { %p5046_p5 = pneg %p6409_p3  ;;  %s6426_s3 = sshll.u32 %s6206_s2, 4  ;;  %s760_s3 = int_to_ptr.vmem [resolvable:$true] %s6426_s3 }
  0x3a   : > { %7562 = sst [smem:[#allocation65_spill]] %s7561_s0  ;;  %s7564_s27 = sld [smem:[#allocation73_spill]] }
  0x3b   : > { %p6420_p6 = pnand %p5046_p5, %p7508_p1 }
  0x3d   : > { %s7563_s11 = scalar_select %p6420_p6, 1, 0 }
  0x3e   : > { %p6436_p8 = pneg %p6420_p6 }
  0x40   : > { %s5311_s0 = scalar_lea.hbm %s7564_s27, 16 }
  0x41   : > { %p5312_p7 = scmp.ne.s32.totalorder %s7564_s27, %s5311_s0  ;;  %p5318_p11 = scmp.lt.u32.totalorder %s5311_s0, %s7564_s27 }
  0x42   : > { %s7565_s1 = scalar_select %p6436_p8, 1, 0 }
  0x43   : > { %p5314_p9 = pnand %p6436_p8, %p5312_p7 }
  0x45   : > { %p5315_p10 = pneg %p5314_p9 }
  0x47   : > { %p5320_p12 = pnand %p5318_p11, %p5315_p10 }
  0x49   : > { %5323 = shalt.err (!%p5320_p12)
}
  0x4a   : > { %s5324_s25 = scalar_lea.vmem %s6407_s5, 16  ;;  %s5331_s26 = scalar_lea.vmem %s6407_s5, 32 }
  0x4b   : > { %p5325_p13 = scmp.ne.s32.totalorder %s6407_s5, %s5324_s25  ;;  %p5332_p5 = scmp.lt.s32.totalorder %s6407_s5, %s6407_s5 }
  0x4c   : > { %p5333_p7 = scmp.lt.s32.totalorder %s5331_s26, %s5324_s25 }
  0x4d   : > { %p5327_p0 = pnand %p5325_p13, %p6436_p8 }
  0x4e   : > { %p5334_p9 = por %p5333_p7, %p5332_p5 }
  0x4f   : > { %p5328_p2 = pneg %p5327_p0 }
  0x51   : > { %p5335_p4 = pnand %p5334_p9, %p5328_p2 }
  0x53   : > { %5338 = shalt.err (!%p5335_p4)
}
  0x54   : > { %5049 = dma.hbm_to_vmem [thread:$0]  (!%p6420_p6), %s7564_s27, 16, %s6407_s5, [#allocation9]  }
  0x55   : > { %s7566_s2 = sld [smem:[#allocation74_spill]] }
  0x5b   : > { %s5339_s22 = scalar_lea.hbm %s7566_s2, 16 }
  0x5c   : > { %p5340_p10 = scmp.ne.s32.totalorder %s7566_s2, %s5339_s22  ;;  %p5346_p4 = scmp.lt.u32.totalorder %s5339_s22, %s7566_s2 }
  0x5e   : > { %p5342_p11 = pnand %p5340_p10, %p6436_p8 }
  0x60   : > { %p5343_p12 = pneg %p5342_p11 }
  0x62   : > { %p5348_p13 = pnand %p5346_p4, %p5343_p12 }
  0x64   : > { %5351 = shalt.err (!%p5348_p13)
}
  0x65   : > { %s5352_s5 = scalar_lea.vmem %s6416_s29, 16  ;;  %s5359_s18 = scalar_lea.vmem %s6416_s29, 32 }
  0x66   : > { %p5353_p0 = scmp.ne.s32.totalorder %s6416_s29, %s5352_s5  ;;  %p5360_p7 = scmp.lt.s32.totalorder %s6416_s29, %s6416_s29 }
  0x67   : > { %p5361_p9 = scmp.lt.s32.totalorder %s5359_s18, %s5352_s5 }
  0x68   : > { %p5355_p2 = pnand %p5353_p0, %p6436_p8 }
  0x69   : > { %p5362_p10 = por %p5361_p9, %p5360_p7 }
  0x6a   : > { %p5356_p5 = pneg %p5355_p2 }
  0x6c   : > { %p5363_p11 = pnand %p5362_p10, %p5356_p5 }
  0x6e   : > { %5366 = shalt.err (!%p5363_p11)
}
  0x6f   : > { %5052 = dma.hbm_to_vmem [thread:$0]  (!%p6420_p6), %s7566_s2, 16, %s6416_s29, [#allocation12]  }
  0x70   : > { %s7567_s9 = sld [smem:[#allocation76_spill]] }
  0x76   : > { %s5367_s10 = scalar_lea.hbm %s7567_s9, 16 }
  0x77   : > { %p5368_p12 = scmp.ne.s32.totalorder %s7567_s9, %s5367_s10  ;;  %p5374_p0 = scmp.lt.u32.totalorder %s5367_s10, %s7567_s9 }
  0x79   : > { %p5370_p4 = pnand %p5368_p12, %p6436_p8 }
  0x7b   : > { %p5371_p13 = pneg %p5370_p4 }
  0x7d   : > { %p5376_p2 = pnand %p5374_p0, %p5371_p13 }
  0x7f   : > { %5379 = shalt.err (!%p5376_p2)
}
  0x80   : > { %s5380_s29 = scalar_lea.vmem %s6424_s6, 16  ;;  %s5387_s20 = scalar_lea.vmem %s6424_s6, 32 }
  0x81   : > { %p5381_p5 = scmp.ne.s32.totalorder %s6424_s6, %s5380_s29  ;;  %p5388_p10 = scmp.lt.s32.totalorder %s6424_s6, %s6424_s6 }
  0x82   : > { %p5389_p11 = scmp.lt.s32.totalorder %s5387_s20, %s5380_s29 }
  0x83   : > { %p5383_p7 = pnand %p5381_p5, %p6436_p8 }
  0x84   : > { %p5390_p12 = por %p5389_p11, %p5388_p10 }
  0x85   : > { %p5384_p9 = pneg %p5383_p7 }
  0x87   : > { %p5391_p4 = pnand %p5390_p12, %p5384_p9 }
  0x89   : > { %5394 = shalt.err (!%p5391_p4)
}
  0x8a   : > { %5058 = dma.hbm_to_vmem [thread:$0]  (!%p6420_p6), %s7567_s9, 16, %s6424_s6, [#allocation15]  }
  0x8b   : > { %s6207_s0 = smov [#allocation20]   ;;  %s7568_s5 = sld [smem:[#allocation78_spill]] }
  0x8c   : > { %s783_s10 = sshll.u32 %s6207_s0, 4  ;;  %s784_s10 = int_to_ptr.vmem [resolvable:$true] %s783_s10 }
  0x91   : > { %s5395_s18 = scalar_lea.hbm %s7568_s5, 16 }
  0x92   : > { %p5396_p13 = scmp.ne.s32.totalorder %s7568_s5, %s5395_s18  ;;  %p5402_p5 = scmp.lt.u32.totalorder %s5395_s18, %s7568_s5 }
  0x94   : > { %p5398_p0 = pnand %p5396_p13, %p6436_p8 }
  0x96   : > { %p5399_p2 = pneg %p5398_p0 }
  0x98   : > { %p5404_p7 = pnand %p5402_p5, %p5399_p2 }
  0x9a   : > { %5407 = shalt.err (!%p5404_p7)
}
  0x9b   : > { %s5408_s6 = scalar_lea.vmem %s760_s3, 16  ;;  %s5415_s22 = scalar_lea.vmem %s760_s3, 32 }
  0x9c   : > { %p5409_p9 = scmp.ne.s32.totalorder %s760_s3, %s5408_s6  ;;  %p5416_p12 = scmp.lt.s32.totalorder %s760_s3, %s760_s3 }
  0x9d   : > { %p5417_p4 = scmp.lt.s32.totalorder %s5415_s22, %s5408_s6 }
  0x9e   : > { %p5411_p10 = pnand %p5409_p9, %p6436_p8 }
  0x9f   : > { %p5418_p1 = por %p5417_p4, %p5416_p12 }
  0xa0   : > { %p5412_p11 = pneg %p5411_p10 }
  0xa2   : > { %p5419_p3 = pnand %p5418_p1, %p5412_p11 }
  0xa4   : > { %5422 = shalt.err (!%p5419_p3)
}
  0xa5   : > { %5064 = dma.hbm_to_vmem [thread:$0]  (!%p6420_p6), %s7568_s5, 16, %s760_s3, [#allocation18]  }
  0xa6   : > { %s7569_s25 = sld [smem:[#allocation80_spill]] }
  0xac   : > { %s5423_s26 = scalar_lea.hbm %s7569_s25, 16 }
  0xad   : > { %p5424_p13 = scmp.ne.s32.totalorder %s7569_s25, %s5423_s26  ;;  %p5430_p3 = scmp.lt.u32.totalorder %s5423_s26, %s7569_s25 }
  0xaf   : > { %p5426_p0 = pnand %p5424_p13, %p6436_p8 }
  0xb1   : > { %p5427_p1 = pneg %p5426_p0 }
  0xb3   : > { %p5432_p2 = pnand %p5430_p3, %p5427_p1 }
  0xb5   : > { %5435 = shalt.err (!%p5432_p2)
}
  0xb6   : > { %s5436_s22 = scalar_lea.vmem %s784_s10, 16  ;;  %s5443_s3 = scalar_lea.vmem %s784_s10, 32 }
  0xb7   : > { %p5437_p5 = scmp.ne.s32.totalorder %s784_s10, %s5436_s22  ;;  %p5444_p10 = scmp.lt.s32.totalorder %s784_s10, %s784_s10 }
  0xb8   : > { %p5445_p11 = scmp.lt.s32.totalorder %s5443_s3, %s5436_s22 }
  0xb9   : > { %p5439_p7 = pnand %p5437_p5, %p6436_p8 }
  0xba   : > { %p5446_p12 = por %p5445_p11, %p5444_p10 }
  0xbb   : > { %p5440_p9 = pneg %p5439_p7 }
  0xbd   : > { %p5447_p4 = pnand %p5446_p12, %p5440_p9 }
  0xbf   : > { %5450 = shalt.err (!%p5447_p4)
}
  0xc0   : > { %5070 = dma.hbm_to_vmem [thread:$0]  (!%p6420_p6), %s7569_s25, 16, %s784_s10, [#allocation21]  }
  0xc1   : > { %s6208_s27 = smov [#allocation23]   ;;  %s6209_s26 = smov [#allocation26]  }
  0xc2   : > { %s807_s2 = sshll.u32 %s6208_s27, 4  ;;  %s831_s18 = sshll.u32 %s6209_s26, 4  ;;  %s808_s2 = int_to_ptr.vmem [resolvable:$true] %s807_s2  ;;  %s832_s18 = int_to_ptr.vmem [resolvable:$true] %s831_s18 }
  0xc3   : > { %s7570_s13 = sld [smem:[#allocation82_spill]] }
  0xc9   : > { %s5451_s6 = scalar_lea.hbm %s7570_s13, 16 }
  0xca   : > { %p5452_p13 = scmp.ne.s32.totalorder %s7570_s13, %s5451_s6  ;;  %p5458_p3 = scmp.lt.u32.totalorder %s5451_s6, %s7570_s13 }
  0xcc   : > { %p5454_p0 = pnand %p5452_p13, %p6436_p8 }
  0xce   : > { %p5455_p1 = pneg %p5454_p0 }
  0xd0   : > { %p5460_p2 = pnand %p5458_p3, %p5455_p1 }
  0xd2   : > { %5463 = shalt.err (!%p5460_p2)
}
  0xd3   : > { %s5464_s10 = scalar_lea.vmem %s808_s2, 16  ;;  %s5471_s0 = scalar_lea.vmem %s808_s2, 32 }
  0xd4   : > { %p5465_p5 = scmp.ne.s32.totalorder %s808_s2, %s5464_s10  ;;  %p5472_p10 = scmp.lt.s32.totalorder %s808_s2, %s808_s2 }
  0xd5   : > { %p5473_p11 = scmp.lt.s32.totalorder %s5471_s0, %s5464_s10 }
  0xd6   : > { %p5467_p7 = pnand %p5465_p5, %p6436_p8 }
  0xd7   : > { %p5474_p12 = por %p5473_p11, %p5472_p10 }
  0xd8   : > { %p5468_p9 = pneg %p5467_p7 }
  0xda   : > { %p5475_p4 = pnand %p5474_p12, %p5468_p9 }
  0xdc   : > { %5478 = shalt.err (!%p5475_p4)
}
  0xdd   : > { %5076 = dma.hbm_to_vmem [thread:$0]  (!%p6420_p6), %s7570_s13, 16, %s808_s2, [#allocation24]  }
  0xde   : > { %s7571_s15 = sld [smem:[#allocation83_spill]] }
  0xe4   : > { %s5479_s20 = scalar_lea.hbm %s7571_s15, 16 }
  0xe5   : > { %p5480_p13 = scmp.ne.s32.totalorder %s7571_s15, %s5479_s20  ;;  %p5486_p3 = scmp.lt.u32.totalorder %s5479_s20, %s7571_s15 }
  0xe7   : > { %p5482_p0 = pnand %p5480_p13, %p6436_p8 }
  0xe9   : > { %p5483_p1 = pneg %p5482_p0 }
  0xeb   : > { %p5488_p2 = pnand %p5486_p3, %p5483_p1 }
  0xed   : > { %5491 = shalt.err (!%p5488_p2)
}
  0xee   : > { %s5492_s10 = scalar_lea.vmem %s832_s18, 16  ;;  %s5499_s2 = scalar_lea.vmem %s832_s18, 32 }
  0xef   : > { %p5493_p5 = scmp.ne.s32.totalorder %s832_s18, %s5492_s10  ;;  %p5500_p10 = scmp.lt.s32.totalorder %s832_s18, %s832_s18 }
  0xf0   : > { %p5501_p11 = scmp.lt.s32.totalorder %s5499_s2, %s5492_s10 }
  0xf1   : > { %p5495_p7 = pnand %p5493_p5, %p6436_p8 }
  0xf2   : > { %p5502_p12 = por %p5501_p11, %p5500_p10 }
  0xf3   : > { %p5496_p9 = pneg %p5495_p7 }
  0xf5   : > { %p5503_p4 = pnand %p5502_p12, %p5496_p9 }
  0xf7   : > { %5506 = shalt.err (!%p5503_p4)
}
  0xf8   : > { %5082 = dma.hbm_to_vmem [thread:$0]  (!%p6420_p6), %s7571_s15, 16, %s832_s18, [#allocation27]  }
  0xf9   : > { %s6210_s26 = smov [#allocation29]   ;;  %s6211_s29 = smov [#allocation32]  }
  0xfa   : > { %s855_s5 = sshll.u32 %s6210_s26, 4  ;;  %s879_s20 = sshll.u32 %s6211_s29, 4  ;;  %s856_s5 = int_to_ptr.vmem [resolvable:$true] %s855_s5  ;;  %s880_s20 = int_to_ptr.vmem [resolvable:$true] %s879_s20 }
  0xfb   : > { %s7572_s17 = sld [smem:[#allocation84_spill]] }
 0x101   : > { %s5507_s3 = scalar_lea.hbm %s7572_s17, 16 }
 0x102   : > { %p5508_p13 = scmp.ne.s32.totalorder %s7572_s17, %s5507_s3  ;;  %p5514_p3 = scmp.lt.u32.totalorder %s5507_s3, %s7572_s17 }
 0x104   : > { %p5510_p0 = pnand %p5508_p13, %p6436_p8 }
 0x106   : > { %p5511_p1 = pneg %p5510_p0 }
 0x108   : > { %p5516_p2 = pnand %p5514_p3, %p5511_p1 }
 0x10a   : > { %5519 = shalt.err (!%p5516_p2)
}
 0x10b   : > { %s5520_s18 = scalar_lea.vmem %s856_s5, 16  ;;  %s5527_s27 = scalar_lea.vmem %s856_s5, 32 }
 0x10c   : > { %p5521_p5 = scmp.ne.s32.totalorder %s856_s5, %s5520_s18  ;;  %p5528_p10 = scmp.lt.s32.totalorder %s856_s5, %s856_s5 }
 0x10d   : > { %p5529_p11 = scmp.lt.s32.totalorder %s5527_s27, %s5520_s18 }
 0x10e   : > { %p5523_p7 = pnand %p5521_p5, %p6436_p8 }
 0x10f   : > { %p5530_p12 = por %p5529_p11, %p5528_p10 }
 0x110   : > { %p5524_p9 = pneg %p5523_p7 }
 0x112   : > { %p5531_p4 = pnand %p5530_p12, %p5524_p9 }
 0x114   : > { %5534 = shalt.err (!%p5531_p4)
}
 0x115   : > { %5088 = dma.hbm_to_vmem [thread:$0]  (!%p6420_p6), %s7572_s17, 16, %s856_s5, [#allocation30]  }
 0x116   : > { %s7573_s19 = sld [smem:[#allocation86_spill]] }
 0x11c   : > { %s5535_s3 = scalar_lea.hbm %s7573_s19, 16 }
 0x11d   : > { %p5536_p13 = scmp.ne.s32.totalorder %s7573_s19, %s5535_s3  ;;  %p5542_p3 = scmp.lt.u32.totalorder %s5535_s3, %s7573_s19 }
 0x11f   : > { %p5538_p0 = pnand %p5536_p13, %p6436_p8 }
 0x121   : > { %p5539_p1 = pneg %p5538_p0 }
 0x123   : > { %p5544_p2 = pnand %p5542_p3, %p5539_p1 }
 0x125   : > { %5547 = shalt.err (!%p5544_p2)
}
 0x126   : > { %s5548_s18 = scalar_lea.vmem %s880_s20, 16  ;;  %s5555_s5 = scalar_lea.vmem %s880_s20, 32 }
 0x127   : > { %p5549_p5 = scmp.ne.s32.totalorder %s880_s20, %s5548_s18  ;;  %p5556_p10 = scmp.lt.s32.totalorder %s880_s20, %s880_s20 }
 0x128   : > { %p5557_p11 = scmp.lt.s32.totalorder %s5555_s5, %s5548_s18 }
 0x129   : > { %p5551_p7 = pnand %p5549_p5, %p6436_p8 }
 0x12a   : > { %p5558_p12 = por %p5557_p11, %p5556_p10 }
 0x12b   : > { %p5552_p9 = pneg %p5551_p7 }
 0x12d   : > { %p5559_p4 = pnand %p5558_p12, %p5552_p9 }
 0x12f   : > { %5562 = shalt.err (!%p5559_p4)
}
 0x130   : > { %5094 = dma.hbm_to_vmem [thread:$0]  (!%p6420_p6), %s7573_s19, 16, %s880_s20, [#allocation33]  }
 0x131   : > { %s6212_s29 = smov [#allocation35]   ;;  %s6213_s22 = smov [#allocation38]  }
 0x132   : > { %s903_s6 = sshll.u32 %s6212_s29, 4  ;;  %s927_s3 = sshll.u32 %s6213_s22, 4  ;;  %s904_s6 = int_to_ptr.vmem [resolvable:$true] %s903_s6  ;;  %s928_s3 = int_to_ptr.vmem [resolvable:$true] %s927_s3 }
 0x133   : > { %s7574_s21 = sld [smem:[#allocation88_spill]] }
 0x139   : > { %s5563_s2 = scalar_lea.hbm %s7574_s21, 16 }
 0x13a   : > { %p5564_p13 = scmp.ne.s32.totalorder %s7574_s21, %s5563_s2  ;;  %p5570_p3 = scmp.lt.u32.totalorder %s5563_s2, %s7574_s21 }
 0x13c   : > { %p5566_p0 = pnand %p5564_p13, %p6436_p8 }
 0x13e   : > { %p5567_p1 = pneg %p5566_p0 }
 0x140   : > { %p5572_p2 = pnand %p5570_p3, %p5567_p1 }
 0x142   : > { %5575 = shalt.err (!%p5572_p2)
}
 0x143   : > { %s5576_s20 = scalar_lea.vmem %s904_s6, 16  ;;  %s5583_s26 = scalar_lea.vmem %s904_s6, 32 }
 0x144   : > { %p5577_p5 = scmp.ne.s32.totalorder %s904_s6, %s5576_s20  ;;  %p5584_p10 = scmp.lt.s32.totalorder %s904_s6, %s904_s6 }
 0x145   : > { %p5585_p11 = scmp.lt.s32.totalorder %s5583_s26, %s5576_s20 }
 0x146   : > { %p5579_p7 = pnand %p5577_p5, %p6436_p8 }
 0x147   : > { %p5586_p12 = por %p5585_p11, %p5584_p10 }
 0x148   : > { %p5580_p9 = pneg %p5579_p7 }
 0x14a   : > { %p5587_p4 = pnand %p5586_p12, %p5580_p9 }
 0x14c   : > { %5590 = shalt.err (!%p5587_p4)
}
 0x14d   : > { %5100 = dma.hbm_to_vmem [thread:$0]  (!%p6420_p6), %s7574_s21, 16, %s904_s6, [#allocation36]  }
 0x14e   : > { %s7575_s23 = sld [smem:[#allocation90_spill]] }
 0x154   : > { %s5591_s2 = scalar_lea.hbm %s7575_s23, 16 }
 0x155   : > { %p5592_p13 = scmp.ne.s32.totalorder %s7575_s23, %s5591_s2  ;;  %p5598_p3 = scmp.lt.u32.totalorder %s5591_s2, %s7575_s23 }
 0x157   : > { %p5594_p0 = pnand %p5592_p13, %p6436_p8 }
 0x159   : > { %p5595_p1 = pneg %p5594_p0 }
 0x15b   : > { %p5600_p2 = pnand %p5598_p3, %p5595_p1 }
 0x15d   : > { %5603 = shalt.err (!%p5600_p2)
}
 0x15e   : > { %s5604_s20 = scalar_lea.vmem %s928_s3, 16  ;;  %s5611_s6 = scalar_lea.vmem %s928_s3, 32 }
 0x15f   : > { %p5605_p5 = scmp.ne.s32.totalorder %s928_s3, %s5604_s20  ;;  %p5612_p10 = scmp.lt.s32.totalorder %s928_s3, %s928_s3 }
 0x160   : > { %p5613_p11 = scmp.lt.s32.totalorder %s5611_s6, %s5604_s20 }
 0x161   : > { %p5607_p7 = pnand %p5605_p5, %p6436_p8 }
 0x162   : > { %p5614_p12 = por %p5613_p11, %p5612_p10 }
 0x163   : > { %p5608_p9 = pneg %p5607_p7 }
 0x165   : > { %p5615_p4 = pnand %p5614_p12, %p5608_p9 }
 0x167   : > { %5618 = shalt.err (!%p5615_p4)
}
 0x168   : > { %5106 = dma.hbm_to_vmem [thread:$0]  (!%p6420_p6), %s7575_s23, 16, %s928_s3, [#allocation39]  }
 0x169   : > { %s4396_s22 = sadd.s32 4294967294, %s6201_s30   ;;  %s6653_s24 = sadd.s32 1, %s6201_s30  }
 0x16a   : > { %7576 = sst [smem:[#allocation66_spill]] %s6653_s24  ;;  %s71_s10 = sadd.s32 1, %s6197_s8 }
 0x16b   : > { %s68_s2 = ssub.s32 %s6201_s30, %s6653_s24  ;;  %p78_p13 = scmp.ne.s32.totalorder %s6197_s8, %s6193_s4 }
 0x16c   : > { %p69_p0 = scmp.eq.s32.totalorder %s68_s2, 0  ;;  %p79_p1 = scmp.eq.s32.totalorder %s6201_s30, 0 }
 0x16d   : > { %p84_p3 = scmp.ne.s32.totalorder %s6193_s4, %s6189_s7  ;;  %p648_p2 = scmp.eq.s32.totalorder %s6402_s28, 1 }
 0x16e   : > { %s6665_s0 = scalar_select %p69_p0, %s6197_s8, %s71_s10  }
 0x16f   : > { %p80_p5 = por %p79_p1, %p78_p13  ;;  %p7578_p7 = scmp.eq.s32.totalorder %s6402_s28, 0 }
 0x170   : > { %7577 = sst [smem:[#allocation67_spill]] %s6665_s0  ;;  %p6673_p10 = por %p648_p2, %p78_p13 }
 0x171   : > { %p6669_p9 = por %p7578_p7, %p84_p3  ;;  %p654_p11 = scmp.eq.s32.totalorder %s4396_s22, 1 }
 0x172   : > { %s7580_s18 = scalar_select %p6673_p10, 1, 0 }
 0x173   : > { %s7579_s3 = scalar_select %p6669_p9, 1, 0 }
 0x174   : > { %p6677_p12 = por %p654_p11, %p84_p3  ;;  %p5155_p4 = scmp.lt.s32.totalorder %s6201_s30, 2 }
 0x175   : > { %s6683_s27 = sand.u32 1, %s6197_s8   ;;  %s7513_s20 = sand.u32 1, %s6201_s30  }
 0x176   : > { %s7581_s5 = scalar_select %p6677_p12, 1, 0 }
 0x177   : > { %p6686_p0 = pnand %p5155_p4, %p80_p5  ;;  %s4423_s26 = sshll.u32 %s6683_s27, 4 }
 0x178   : > { %7582 = sst [smem:[#allocation68_spill]] %s7581_s5  ;;  %s4524_s29 = sshll.u32 %s6201_s30, 8 }
 0x179   : > { %s7583_s6 = scalar_select %p6686_p0, 1, 0 }
 0x17a   : > { %s7584_s9 = sld [smem:[#allocation70_spill]]  ;;  %s984_s13 = scalar_lea.vmem [#allocation5], %s4423_s26 }
 0x17b   : > { %s991_s15 = sshll.u32 %s984_s13, 4  ;;  %s6701_s17 = scalar_lea.sflag [#allocation6], %s7513_s20  ;;  %s6697_s15 = int_to_ptr.vmem [resolvable:$true] %s991_s15 }
 0x17c   : > { %p6707_p1 = pneg %p6686_p0 }
 0x17e   : > { %s7585_s21 = scalar_select %p6707_p1, 1, 0 }
 0x180   : > { %s6695_s22 = scalar_lea.hbm %s7584_s9, %s4524_s29  ;;  %s5624_s13 = scalar_lea.hbm %s7584_s9, 512 }
 0x181   : > { %s5619_s19 = scalar_lea.hbm %s6695_s22, 256  ;;  %p5625_p5 = scmp.lt.u32.totalorder %s6695_s22, %s7584_s9 }
 0x182   : > { %p5620_p13 = scmp.ne.s32.totalorder %s6695_s22, %s5619_s19  ;;  %p5626_p7 = scmp.lt.u32.totalorder %s5624_s13, %s5619_s19 }
 0x183   : > { %p5628_p4 = scmp.lt.u32.totalorder %s5619_s19, %s6695_s22 }
 0x184   : > { %p5622_p3 = pnand %p6707_p1, %p5620_p13  ;;  %p5627_p11 = por %p5626_p7, %p5625_p5 }
 0x186   : > { %p5623_p2 = pneg %p5622_p3  ;;  %p5629_p12 = por %p5628_p4, %p5627_p11 }
 0x188   : > { %p5630_p10 = pnand %p5629_p12, %p5623_p2 }
 0x18a   : > { %5633 = shalt.err (!%p5630_p10)
}
 0x18b   : > { %s5634_s20 = scalar_lea.vmem %s6697_s15, 256  ;;  %s6214_s29 = smov [#allocation5]  }
 0x18c   : > { %p5635_p13 = scmp.ne.s32.totalorder %s6697_s15, %s5634_s20  ;;  %s5639_s10 = sshll.u32 %s6214_s29, 4  ;;  %s5640_s10 = int_to_ptr.vmem [resolvable:$false] %s5639_s10 }
 0x18d   : > { %s5641_s26 = scalar_lea.vmem %s5640_s10, 512  ;;  %p5642_p6 = scmp.lt.s32.totalorder %s6697_s15, %s5640_s10 }
 0x18e   : > { %p5637_p3 = pnand %p5635_p13, %p6707_p1  ;;  %p5643_p8 = scmp.lt.s32.totalorder %s5641_s26, %s5634_s20 }
 0x190   : > { %p5638_p9 = pneg %p5637_p3  ;;  %p5644_p5 = por %p5643_p8, %p5642_p6 }
 0x192   : > { %p5645_p7 = pnand %p5644_p5, %p5638_p9 }
 0x194   : > { %5648 = shalt.err (!%p5645_p7)
}
 0x195   : > { %s6215_s19 = smov 128   ;;  %s6216_s13 = smov 8  }
 0x196   : > { %5119 = dma.hbm_to_vmem [thread:$0]  (!%p6686_p0), %s6695_s22, 256, %s6697_s15, %s6701_s17, %s6215_s19, %s6215_s19, %s6216_s13  }
 0x197   : > { %s6217_s2 = smov [#allocation13]   ;;  %s6218_s10 = smov [#allocation16]  }
 0x198   : > { %s721_s29 = sshll.u32 %s6217_s2, 4  ;;  %s745_s20 = sshll.u32 %s6218_s10, 4  ;;  %s722_s29 = int_to_ptr.vmem [resolvable:$true] %s721_s29  ;;  %s746_s20 = int_to_ptr.vmem [resolvable:$true] %s745_s20 }
 0x199   : > { %s7586_s23 = sld [smem:[#allocation75_spill]]  ;;  %p7587_p8 = scmp.ne.s32.totalorder %s7565_s1, 0 }
 0x19f   : > { %s5649_s25 = scalar_lea.hbm %s7586_s23, 512 }
 0x1a0   : > { %p5650_p6 = scmp.ne.s32.totalorder %s7586_s23, %s5649_s25  ;;  %p5656_p12 = scmp.lt.u32.totalorder %s5649_s25, %s7586_s23 }
 0x1a2   : > { %p5652_p9 = pnand %p5650_p6, %p7587_p8 }
 0x1a4   : > { %p5653_p10 = pneg %p5652_p9 }
 0x1a6   : > { %p5658_p2 = pnand %p5656_p12, %p5653_p10 }
 0x1a8   : > { %5661 = shalt.err (!%p5658_p2)
}
 0x1a9   : > { %s5662_s15 = scalar_lea.vmem %s722_s29, 512  ;;  %p5670_p3 = scmp.lt.s32.totalorder %s722_s29, %s722_s29 }
 0x1aa   : > { %p5663_p11 = scmp.ne.s32.totalorder %s722_s29, %s5662_s15  ;;  %p5671_p5 = scmp.lt.s32.totalorder %s5662_s15, %s5662_s15 }
 0x1ac   : > { %p5665_p4 = pnand %p5663_p11, %p7587_p8  ;;  %p5672_p7 = por %p5671_p5, %p5670_p3 }
 0x1ae   : > { %p5666_p13 = pneg %p5665_p4 }
 0x1b0   : > { %p5673_p0 = pnand %p5672_p7, %p5666_p13 }
 0x1b2   : > { %5676 = shalt.err (!%p5673_p0)
}
 0x1b3   : > { %p7588_p6 = scmp.ne.s32.totalorder %s7563_s11, 0  ;;  %s7589_s0 = sld [smem:[#allocation77_spill]] }
 0x1b5   : > { %5055 = dma.hbm_to_vmem [thread:$0]  (!%p7588_p6), %s7586_s23, 512, %s722_s29, [#allocation12], %s6215_s19, %s6215_s19, %s6216_s13  }
 0x1b9   : > { %s5677_s5 = scalar_lea.hbm %s7589_s0, 512 }
 0x1ba   : > { %p5678_p9 = scmp.ne.s32.totalorder %s7589_s0, %s5677_s5  ;;  %p5684_p12 = scmp.lt.u32.totalorder %s5677_s5, %s7589_s0 }
 0x1bc   : > { %p5680_p0 = pnand %p5678_p9, %p7587_p8 }
 0x1be   : > { %p5681_p10 = pneg %p5680_p0 }
 0x1c0   : > { %p5686_p2 = pnand %p5684_p12, %p5681_p10 }
 0x1c2   : > { %5689 = shalt.err (!%p5686_p2)
}
 0x1c3   : > { %s5690_s15 = scalar_lea.vmem %s746_s20, 512  ;;  %p5698_p3 = scmp.lt.s32.totalorder %s746_s20, %s746_s20 }
 0x1c4   : > { %p5691_p11 = scmp.ne.s32.totalorder %s746_s20, %s5690_s15  ;;  %p5699_p5 = scmp.lt.s32.totalorder %s5690_s15, %s5690_s15 }
 0x1c6   : > { %p5693_p4 = pnand %p5691_p11, %p7587_p8  ;;  %p5700_p7 = por %p5699_p5, %p5698_p3 }
 0x1c8   : > { %p5694_p13 = pneg %p5693_p4 }
 0x1ca   : > { %p5701_p1 = pnand %p5700_p7, %p5694_p13 }
 0x1cc   : > { %5704 = shalt.err (!%p5701_p1)
}
 0x1cd   : > { %5061 = dma.hbm_to_vmem [thread:$0]  (!%p7588_p6), %s7589_s0, 512, %s746_s20, [#allocation15], %s6215_s19, %s6215_s19, %s6216_s13  }
 0x1ce   : > { %s6219_s9 = smov [#allocation19]   ;;  %s6220_s24 = smov [#allocation22]  }
 0x1cf   : > { %s769_s25 = sshll.u32 %s6219_s9, 4  ;;  %s793_s5 = sshll.u32 %s6220_s24, 4  ;;  %s770_s25 = int_to_ptr.vmem [resolvable:$true] %s769_s25  ;;  %s794_s5 = int_to_ptr.vmem [resolvable:$true] %s793_s5 }
 0x1d0   : > { %s7590_s10 = sld [smem:[#allocation79_spill]] }
 0x1d6   : > { %s5705_s26 = scalar_lea.hbm %s7590_s10, 512 }
 0x1d7   : > { %p5706_p1 = scmp.ne.s32.totalorder %s7590_s10, %s5705_s26  ;;  %p5712_p10 = scmp.lt.u32.totalorder %s5705_s26, %s7590_s10 }
 0x1d9   : > { %p5708_p9 = pnand %p5706_p1, %p7587_p8 }
 0x1db   : > { %p5709_p0 = pneg %p5708_p9 }
 0x1dd   : > { %p5714_p12 = pnand %p5712_p10, %p5709_p0 }
 0x1df   : > { %5717 = shalt.err (!%p5714_p12)
}
 0x1e0   : > { %s5718_s20 = scalar_lea.vmem %s770_s25, 512  ;;  %p5726_p13 = scmp.lt.s32.totalorder %s770_s25, %s770_s25 }
 0x1e1   : > { %p5719_p2 = scmp.ne.s32.totalorder %s770_s25, %s5718_s20  ;;  %p5727_p3 = scmp.lt.s32.totalorder %s5718_s20, %s5718_s20 }
 0x1e3   : > { %p5721_p11 = pnand %p5719_p2, %p7587_p8  ;;  %p5728_p5 = por %p5727_p3, %p5726_p13 }
 0x1e5   : > { %p5722_p4 = pneg %p5721_p11 }
 0x1e7   : > { %p5729_p7 = pnand %p5728_p5, %p5722_p4 }
 0x1e9   : > { %5732 = shalt.err (!%p5729_p7)
}
 0x1ea   : > { %5067 = dma.hbm_to_vmem [thread:$0]  (!%p7588_p6), %s7590_s10, 512, %s770_s25, [#allocation18], %s6215_s19, %s6215_s19, %s6216_s13  }
 0x1eb   : > { %s7591_s12 = sld [smem:[#allocation81_spill]] }
 0x1f1   : > { %s5733_s24 = scalar_lea.hbm %s7591_s12, 512 }
 0x1f2   : > { %p5734_p1 = scmp.ne.s32.totalorder %s7591_s12, %s5733_s24  ;;  %p5740_p10 = scmp.lt.u32.totalorder %s5733_s24, %s7591_s12 }
 0x1f4   : > { %p5736_p9 = pnand %p5734_p1, %p7587_p8 }
 0x1f6   : > { %p5737_p0 = pneg %p5736_p9 }
 0x1f8   : > { %p5742_p12 = pnand %p5740_p10, %p5737_p0 }
 0x1fa   : > { %5745 = shalt.err (!%p5742_p12)
}
 0x1fb   : > { %s5746_s29 = scalar_lea.vmem %s794_s5, 512  ;;  %p5754_p13 = scmp.lt.s32.totalorder %s794_s5, %s794_s5 }
 0x1fc   : > { %p5747_p2 = scmp.ne.s32.totalorder %s794_s5, %s5746_s29  ;;  %p5755_p3 = scmp.lt.s32.totalorder %s5746_s29, %s5746_s29 }
 0x1fe   : > { %p5749_p11 = pnand %p5747_p2, %p7587_p8  ;;  %p5756_p5 = por %p5755_p3, %p5754_p13 }
 0x200   : > { %p5750_p4 = pneg %p5749_p11 }
 0x202   : > { %p5757_p7 = pnand %p5756_p5, %p5750_p4 }
 0x204   : > { %5760 = shalt.err (!%p5757_p7)
}
 0x205   : > { %5073 = dma.hbm_to_vmem [thread:$0]  (!%p7588_p6), %s7591_s12, 512, %s794_s5, [#allocation21], %s6215_s19, %s6215_s19, %s6216_s13  }
 0x206   : > { %s6221_s23 = smov [#allocation25]   ;;  %s6222_s8 = smov [#allocation28]  }
 0x207   : > { %s817_s7 = sshll.u32 %s6221_s23, 4  ;;  %s841_s9 = sshll.u32 %s6222_s8, 4  ;;  %s818_s7 = int_to_ptr.vmem [resolvable:$true] %s817_s7  ;;  %s842_s9 = int_to_ptr.vmem [resolvable:$true] %s841_s9 }
 0x208   : > { %s5761_s2 = scalar_lea.hbm %s7472_s14, 512 }
 0x209   : > { %p5762_p1 = scmp.ne.s32.totalorder %s7472_s14, %s5761_s2  ;;  %p5768_p10 = scmp.lt.u32.totalorder %s5761_s2, %s7472_s14 }
 0x20b   : > { %p5764_p9 = pnand %p5762_p1, %p7587_p8 }
 0x20d   : > { %p5765_p0 = pneg %p5764_p9 }
 0x20f   : > { %p5770_p12 = pnand %p5768_p10, %p5765_p0 }
 0x211   : > { %5773 = shalt.err (!%p5770_p12)
}
 0x212   : > { %s5774_s5 = scalar_lea.vmem %s818_s7, 512  ;;  %p5782_p13 = scmp.lt.s32.totalorder %s818_s7, %s818_s7 }
 0x213   : > { %p5775_p2 = scmp.ne.s32.totalorder %s818_s7, %s5774_s5  ;;  %p5783_p3 = scmp.lt.s32.totalorder %s5774_s5, %s5774_s5 }
 0x215   : > { %p5777_p11 = pnand %p5775_p2, %p7587_p8  ;;  %p5784_p5 = por %p5783_p3, %p5782_p13 }
 0x217   : > { %p5778_p4 = pneg %p5777_p11 }
 0x219   : > { %p5785_p7 = pnand %p5784_p5, %p5778_p4 }
 0x21b   : > { %5788 = shalt.err (!%p5785_p7)
}
 0x21c   : > { %5079 = dma.hbm_to_vmem [thread:$0]  (!%p7588_p6), %s7472_s14, 512, %s818_s7, [#allocation24], %s6215_s19, %s6215_s19, %s6216_s13  }
 0x21d   : > { %s5789_s22 = scalar_lea.hbm %s7474_s16, 512 }
 0x21e   : > { %p5790_p1 = scmp.ne.s32.totalorder %s7474_s16, %s5789_s22  ;;  %p5796_p10 = scmp.lt.u32.totalorder %s5789_s22, %s7474_s16 }
 0x220   : > { %p5792_p9 = pnand %p5790_p1, %p7587_p8 }
 0x222   : > { %p5793_p0 = pneg %p5792_p9 }
 0x224   : > { %p5798_p12 = pnand %p5796_p10, %p5793_p0 }
 0x226   : > { %5801 = shalt.err (!%p5798_p12)
}
 0x227   : > { %s5802_s25 = scalar_lea.vmem %s842_s9, 512  ;;  %p5810_p13 = scmp.lt.s32.totalorder %s842_s9, %s842_s9 }
 0x228   : > { %p5803_p2 = scmp.ne.s32.totalorder %s842_s9, %s5802_s25  ;;  %p5811_p3 = scmp.lt.s32.totalorder %s5802_s25, %s5802_s25 }
 0x22a   : > { %p5805_p11 = pnand %p5803_p2, %p7587_p8  ;;  %p5812_p5 = por %p5811_p3, %p5810_p13 }
 0x22c   : > { %p5806_p4 = pneg %p5805_p11 }
 0x22e   : > { %p5813_p7 = pnand %p5812_p5, %p5806_p4 }
 0x230   : > { %5816 = shalt.err (!%p5813_p7)
}
 0x231   : > { %5085 = dma.hbm_to_vmem [thread:$0]  (!%p7588_p6), %s7474_s16, 512, %s842_s9, [#allocation27], %s6215_s19, %s6215_s19, %s6216_s13  }
 0x232   : > { %s6223_s20 = smov [#allocation31]   ;;  %s6224_s8 = smov [#allocation34]  }
 0x233   : > { %s865_s23 = sshll.u32 %s6223_s20, 4  ;;  %s889_s24 = sshll.u32 %s6224_s8, 4  ;;  %s866_s23 = int_to_ptr.vmem [resolvable:$true] %s865_s23  ;;  %s890_s24 = int_to_ptr.vmem [resolvable:$true] %s889_s24 }
 0x234   : > { %s7592_s26 = sld [smem:[#allocation85_spill]] }
 0x23a   : > { %s5817_s15 = scalar_lea.hbm %s7592_s26, 512 }
 0x23b   : > { %p5818_p1 = scmp.ne.s32.totalorder %s7592_s26, %s5817_s15  ;;  %p5824_p10 = scmp.lt.u32.totalorder %s5817_s15, %s7592_s26 }
 0x23d   : > { %p5820_p9 = pnand %p5818_p1, %p7587_p8 }
 0x23f   : > { %p5821_p0 = pneg %p5820_p9 }
 0x241   : > { %p5826_p12 = pnand %p5824_p10, %p5821_p0 }
 0x243   : > { %5829 = shalt.err (!%p5826_p12)
}
 0x244   : > { %s5830_s9 = scalar_lea.vmem %s866_s23, 512  ;;  %p5838_p13 = scmp.lt.s32.totalorder %s866_s23, %s866_s23 }
 0x245   : > { %p5831_p2 = scmp.ne.s32.totalorder %s866_s23, %s5830_s9  ;;  %p5839_p3 = scmp.lt.s32.totalorder %s5830_s9, %s5830_s9 }
 0x247   : > { %p5833_p11 = pnand %p5831_p2, %p7587_p8  ;;  %p5840_p5 = por %p5839_p3, %p5838_p13 }
 0x249   : > { %p5834_p4 = pneg %p5833_p11 }
 0x24b   : > { %p5841_p7 = pnand %p5840_p5, %p5834_p4 }
 0x24d   : > { %5844 = shalt.err (!%p5841_p7)
}
 0x24e   : > { %5091 = dma.hbm_to_vmem [thread:$0]  (!%p7588_p6), %s7592_s26, 512, %s866_s23, [#allocation30], %s6215_s19, %s6215_s19, %s6216_s13  }
 0x24f   : > { %s7593_s22 = sld [smem:[#allocation87_spill]] }
 0x255   : > { %s5845_s2 = scalar_lea.hbm %s7593_s22, 512 }
 0x256   : > { %p5846_p1 = scmp.ne.s32.totalorder %s7593_s22, %s5845_s2  ;;  %p5852_p10 = scmp.lt.u32.totalorder %s5845_s2, %s7593_s22 }
 0x258   : > { %p5848_p9 = pnand %p5846_p1, %p7587_p8 }
 0x25a   : > { %p5849_p0 = pneg %p5848_p9 }
 0x25c   : > { %p5854_p12 = pnand %p5852_p10, %p5849_p0 }
 0x25e   : > { %5857 = shalt.err (!%p5854_p12)
}
 0x25f   : > { %s5858_s9 = scalar_lea.vmem %s890_s24, 512  ;;  %p5866_p13 = scmp.lt.s32.totalorder %s890_s24, %s890_s24 }
 0x260   : > { %p5859_p2 = scmp.ne.s32.totalorder %s890_s24, %s5858_s9  ;;  %p5867_p3 = scmp.lt.s32.totalorder %s5858_s9, %s5858_s9 }
 0x262   : > { %p5861_p11 = pnand %p5859_p2, %p7587_p8  ;;  %p5868_p5 = por %p5867_p3, %p5866_p13 }
 0x264   : > { %p5862_p4 = pneg %p5861_p11 }
 0x266   : > { %p5869_p7 = pnand %p5868_p5, %p5862_p4 }
 0x268   : > { %5872 = shalt.err (!%p5869_p7)
}
 0x269   : > { %5097 = dma.hbm_to_vmem [thread:$0]  (!%p7588_p6), %s7593_s22, 512, %s890_s24, [#allocation33], %s6215_s19, %s6215_s19, %s6216_s13  }
 0x26a   : > { %s6225_s5 = smov [#allocation37]   ;;  %s6226_s8 = smov [#allocation40]  }
 0x26b   : > { %s913_s20 = sshll.u32 %s6225_s5, 4  ;;  %s937_s2 = sshll.u32 %s6226_s8, 4  ;;  %s914_s20 = int_to_ptr.vmem [resolvable:$true] %s913_s20  ;;  %s938_s2 = int_to_ptr.vmem [resolvable:$true] %s937_s2 }
 0x26c   : > { %s7594_s25 = sld [smem:[#allocation89_spill]] }
 0x272   : > { %s5873_s7 = scalar_lea.hbm %s7594_s25, 512 }
 0x273   : > { %p5874_p1 = scmp.ne.s32.totalorder %s7594_s25, %s5873_s7  ;;  %p5880_p10 = scmp.lt.u32.totalorder %s5873_s7, %s7594_s25 }
 0x275   : > { %p5876_p9 = pnand %p5874_p1, %p7587_p8 }
 0x277   : > { %p5877_p0 = pneg %p5876_p9 }
 0x279   : > { %p5882_p12 = pnand %p5880_p10, %p5877_p0 }
 0x27b   : > { %5885 = shalt.err (!%p5882_p12)
}
 0x27c   : > { %s5886_s24 = scalar_lea.vmem %s914_s20, 512  ;;  %p5894_p13 = scmp.lt.s32.totalorder %s914_s20, %s914_s20 }
 0x27d   : > { %p5887_p2 = scmp.ne.s32.totalorder %s914_s20, %s5886_s24  ;;  %p5895_p3 = scmp.lt.s32.totalorder %s5886_s24, %s5886_s24 }
 0x27f   : > { %p5889_p11 = pnand %p5887_p2, %p7587_p8  ;;  %p5896_p5 = por %p5895_p3, %p5894_p13 }
 0x281   : > { %p5890_p4 = pneg %p5889_p11 }
 0x283   : > { %p5897_p7 = pnand %p5896_p5, %p5890_p4 }
 0x285   : > { %5900 = shalt.err (!%p5897_p7)
}
 0x286   : > { %5103 = dma.hbm_to_vmem [thread:$0]  (!%p7588_p6), %s7594_s25, 512, %s914_s20, [#allocation36], %s6215_s19, %s6215_s19, %s6216_s13  }
 0x287   : > { %s7595_s8 = sld [smem:[#allocation91_spill]] }
 0x28d   : > { %s7596_s15 = smov %s7595_s8  ;;  %s5901_s29 = scalar_lea.hbm %s7595_s8, 1024 }
 0x28e   : > { %p5902_p1 = scmp.ne.s32.totalorder %s7596_s15, %s5901_s29  ;;  %p5908_p10 = scmp.lt.u32.totalorder %s5901_s29, %s7596_s15 }
 0x290   : > { %p5904_p9 = pnand %p5902_p1, %p7587_p8 }
 0x292   : > { %p5905_p0 = pneg %p5904_p9 }
 0x294   : > { %p5910_p12 = pnand %p5908_p10, %p5905_p0 }
 0x296   : > { %5913 = shalt.err (!%p5910_p12)
}
 0x297   : > { %s5914_s12 = scalar_lea.vmem %s938_s2, 1024  ;;  %p5922_p13 = scmp.lt.s32.totalorder %s938_s2, %s938_s2 }
 0x298   : > { %p5915_p2 = scmp.ne.s32.totalorder %s938_s2, %s5914_s12  ;;  %p5923_p3 = scmp.lt.s32.totalorder %s5914_s12, %s5914_s12 }
 0x29a   : > { %p5917_p11 = pnand %p5915_p2, %p7587_p8  ;;  %p5924_p5 = por %p5923_p3, %p5922_p13 }
 0x29c   : > { %p5918_p4 = pneg %p5917_p11 }
 0x29e   : > { %p5925_p7 = pnand %p5924_p5, %p5918_p4 }
 0x2a0   : > { %5928 = shalt.err (!%p5925_p7)
}
 0x2a1   : > { %5109 = dma.hbm_to_vmem [thread:$0]  (!%p7588_p6), %s7596_s15, 1024, %s938_s2, [#allocation39], %s6215_s19, %s6215_s19, %s6216_s13  }
 0x2a2   : > { %s6227_s0 = smov [#allocation41]   ;;  %s6945_s8 = sshll.u32 %s6683_s27, 3 }
 0x2a3   : > { %s951_s5 = sshll.u32 %s6227_s0, 4  ;;  %s7597_s9 = sld [smem:[#allocation92_spill]]  ;;  %s952_s5 = int_to_ptr.vmem [resolvable:$true] %s951_s5 }
 0x2a9   : > { %s5929_s23 = scalar_lea.hbm %s7597_s9, 16 }
 0x2aa   : > { %p5930_p1 = scmp.ne.s32.totalorder %s7597_s9, %s5929_s23  ;;  %p5936_p10 = scmp.lt.u32.totalorder %s5929_s23, %s7597_s9 }
 0x2ac   : > { %p5932_p9 = pnand %p5930_p1, %p7587_p8 }
 0x2ae   : > { %p5933_p0 = pneg %p5932_p9 }
 0x2b0   : > { %p5938_p12 = pnand %p5936_p10, %p5933_p0 }
 0x2b2   : > { %5941 = shalt.err (!%p5938_p12)
}
 0x2b3   : > { %s5942_s19 = scalar_lea.vmem %s952_s5, 16  ;;  %s5949_s13 = scalar_lea.vmem %s952_s5, 32 }
 0x2b4   : > { %p5943_p2 = scmp.ne.s32.totalorder %s952_s5, %s5942_s19  ;;  %p5950_p13 = scmp.lt.s32.totalorder %s952_s5, %s952_s5 }
 0x2b5   : > { %p5951_p3 = scmp.lt.s32.totalorder %s5949_s13, %s5942_s19 }
 0x2b6   : > { %p5945_p11 = pnand %p5943_p2, %p7587_p8 }
 0x2b7   : > { %p5952_p5 = por %p5951_p3, %p5950_p13 }
 0x2b8   : > { %p5946_p4 = pneg %p5945_p11 }
 0x2ba   : > { %p5953_p7 = pnand %p5952_p5, %p5946_p4 }
 0x2bc   : > { %5956 = shalt.err (!%p5953_p7)
}
 0x2bd   : > { %5112 = dma.hbm_to_vmem [thread:$0]  (!%p7588_p6), %s7597_s9, 16, %s952_s5, [#allocation42]  }
 0x2be   : > { %s6966_s29 = sshll.u32 %s6201_s30, 7  ;;  %s7598_s23 = sld [smem:[#allocation69_spill]] }
 0x2bf   : > { %s966_s11 = scalar_lea.vmem [#allocation2], %s6945_s8  ;;  %s963_s20 = scalar_lea.sflag [#allocation3], %s6683_s27 }
 0x2c0   : > { %s973_s12 = sshll.u32 %s966_s11, 4  ;;  %p7599_p1 = scmp.ne.s32.totalorder %s7585_s21, 0  ;;  %s974_s12 = int_to_ptr.vmem [resolvable:$true] %s973_s12 }
 0x2c4   : > { %s6972_s24 = scalar_lea.hbm %s7598_s23, %s6966_s29  ;;  %s5962_s13 = scalar_lea.hbm %s7598_s23, 256 }
 0x2c5   : > { %s5957_s10 = scalar_lea.hbm %s6972_s24, 128  ;;  %p5963_p0 = scmp.lt.u32.totalorder %s6972_s24, %s7598_s23 }
 0x2c6   : > { %p5958_p8 = scmp.ne.s32.totalorder %s6972_s24, %s5957_s10  ;;  %p5964_p10 = scmp.lt.u32.totalorder %s5962_s13, %s5957_s10 }
 0x2c7   : > { %p5966_p2 = scmp.lt.u32.totalorder %s5957_s10, %s6972_s24 }
 0x2c8   : > { %p5960_p6 = pnand %p5958_p8, %p7599_p1  ;;  %p5965_p12 = por %p5964_p10, %p5963_p0 }
 0x2ca   : > { %p5961_p9 = pneg %p5960_p6  ;;  %p5967_p11 = por %p5966_p2, %p5965_p12 }
 0x2cc   : > { %p5968_p4 = pnand %p5967_p11, %p5961_p9 }
 0x2ce   : > { %5971 = shalt.err (!%p5968_p4)
}
 0x2cf   : > { %s5972_s27 = scalar_lea.vmem %s974_s12, 128  ;;  %s6228_s1 = smov [#allocation2]  }
 0x2d0   : > { %p5973_p13 = scmp.ne.s32.totalorder %s974_s12, %s5972_s27  ;;  %s5977_s7 = sshll.u32 %s6228_s1, 4  ;;  %s5978_s7 = int_to_ptr.vmem [resolvable:$false] %s5977_s7 }
 0x2d1   : > { %s5979_s11 = scalar_lea.vmem %s5978_s7, 256  ;;  %p5980_p7 = scmp.lt.s32.totalorder %s974_s12, %s5978_s7 }
 0x2d2   : > { %p5975_p3 = pnand %p5973_p13, %p7599_p1  ;;  %p5981_p8 = scmp.lt.s32.totalorder %s5979_s11, %s5972_s27 }
 0x2d4   : > { %p5976_p5 = pneg %p5975_p3  ;;  %p5982_p6 = por %p5981_p8, %p5980_p7 }
 0x2d6   : > { %p5983_p0 = pnand %p5982_p6, %p5976_p5 }
 0x2d8   : > { %5986 = shalt.err (!%p5983_p0)
}
 0x2d9   : > { %p7600_p10 = scmp.ne.s32.totalorder %s7583_s6, 0  ;;  %s7601_s19 = sld [smem:[#allocation71_spill]] }
 0x2da   : > { %s1005_s2 = scalar_lea.vmem [#allocation7], %s6945_s8 }
 0x2db   : > { %5116 = dma.hbm_to_vmem [thread:$0]  (!%p7600_p10), %s6972_s24, 128, %s974_s12, %s963_s20  }
 0x2dc   : > { %s1012_s0 = sshll.u32 %s1005_s2, 4  ;;  %s1013_s0 = int_to_ptr.vmem [resolvable:$true] %s1012_s0 }
 0x2df   : > { %s6997_s13 = scalar_lea.hbm %s7601_s19, %s6966_s29  ;;  %s5992_s24 = scalar_lea.hbm %s7601_s19, 256 }
 0x2e0   : > { %s5987_s27 = scalar_lea.hbm %s6997_s13, 128  ;;  %p5993_p11 = scmp.lt.u32.totalorder %s6997_s13, %s7601_s19 }
 0x2e1   : > { %p5988_p9 = scmp.ne.s32.totalorder %s6997_s13, %s5987_s27  ;;  %p5994_p4 = scmp.lt.u32.totalorder %s5992_s24, %s5987_s27 }
 0x2e2   : > { %p5996_p3 = scmp.lt.u32.totalorder %s5987_s27, %s6997_s13 }
 0x2e3   : > { %p5990_p12 = pnand %p5988_p9, %p7599_p1  ;;  %p5995_p13 = por %p5994_p4, %p5993_p11 }
 0x2e5   : > { %p5991_p2 = pneg %p5990_p12  ;;  %p5997_p5 = por %p5996_p3, %p5995_p13 }
 0x2e7   : > { %p5998_p7 = pnand %p5997_p5, %p5991_p2 }
 0x2e9   : > { %6001 = shalt.err (!%p5998_p7)
}
 0x2ea   : > { %s6002_s11 = scalar_lea.vmem %s1013_s0, 128  ;;  %s6229_s10 = smov [#allocation7]  }
 0x2eb   : > { %p6003_p8 = scmp.ne.s32.totalorder %s1013_s0, %s6002_s11  ;;  %s6007_s5 = sshll.u32 %s6229_s10, 4  ;;  %s6008_s5 = int_to_ptr.vmem [resolvable:$false] %s6007_s5 }
 0x2ec   : > { %s6009_s2 = scalar_lea.vmem %s6008_s5, 256  ;;  %p6010_p9 = scmp.lt.s32.totalorder %s1013_s0, %s6008_s5 }
 0x2ed   : > { %p6005_p6 = pnand %p6003_p8, %p7599_p1  ;;  %p6011_p12 = scmp.lt.s32.totalorder %s6009_s2, %s6002_s11 }
 0x2ef   : > { %p6006_p0 = pneg %p6005_p6  ;;  %p6012_p10 = por %p6011_p12, %p6010_p9 }
 0x2f1   : > { %p6013_p4 = pnand %p6012_p10, %p6006_p0 }
 0x2f3   : > { %6016 = shalt.err (!%p6013_p4)
}
 0x2f4   : > { %p7602_p11 = scmp.ne.s32.totalorder %s7583_s6, 0  ;;  %s7603_s7 = sld [smem:[#allocation72_spill]] }
 0x2f5   : > { %s1023_s20 = scalar_lea.vmem [#allocation8], %s6945_s8  ;;  %s7605_s10 = sand.u32 1, %s6201_s30  }
 0x2f6   : > { %5122 = dma.hbm_to_vmem [thread:$0]  (!%p7602_p11), %s6997_s13, 128, %s1013_s0, %s6701_s17  }
 0x2f7   : > { %s1030_s11 = sshll.u32 %s1023_s20, 4  ;;  %s1020_s5 = scalar_lea.sflag [#allocation9], %s7605_s10  ;;  %s1031_s11 = int_to_ptr.vmem [resolvable:$true] %s1030_s11 }
 0x2fa   : > { %s7604_s24 = smov %s7603_s7  ;;  %s7022_s12 = scalar_lea.hbm %s7603_s7, %s6966_s29 }
 0x2fb   : > { %s6017_s2 = scalar_lea.hbm %s7022_s12, 128  ;;  %s6022_s0 = scalar_lea.hbm %s7604_s24, 256 }
 0x2fc   : > { %p6018_p10 = scmp.ne.s32.totalorder %s7022_s12, %s6017_s2  ;;  %p6023_p3 = scmp.lt.u32.totalorder %s7022_s12, %s7604_s24 }
 0x2fd   : > { %p6024_p5 = scmp.lt.u32.totalorder %s6022_s0, %s6017_s2  ;;  %p6026_p8 = scmp.lt.u32.totalorder %s6017_s2, %s7022_s12 }
 0x2fe   : > { %p6020_p2 = pnand %p6018_p10, %p7599_p1 }
 0x2ff   : > { %p6025_p7 = por %p6024_p5, %p6023_p3 }
 0x300   : > { %p6021_p13 = pneg %p6020_p2 }
 0x301   : > { %p6027_p6 = por %p6026_p8, %p6025_p7 }
 0x303   : > { %p6028_p0 = pnand %p6027_p6, %p6021_p13 }
 0x305   : > { %6031 = shalt.err (!%p6028_p0)
}
 0x306   : > { %s6032_s8 = scalar_lea.vmem %s1031_s11, 128  ;;  %s6230_s1 = smov [#allocation8]  }
 0x307   : > { %p6033_p9 = scmp.ne.s32.totalorder %s1031_s11, %s6032_s8  ;;  %s6037_s7 = sshll.u32 %s6230_s1, 4  ;;  %s6038_s7 = int_to_ptr.vmem [resolvable:$false] %s6037_s7 }
 0x308   : > { %s6039_s20 = scalar_lea.vmem %s6038_s7, 256  ;;  %p6040_p10 = scmp.lt.s32.totalorder %s1031_s11, %s6038_s7 }
 0x309   : > { %p6035_p12 = pnand %p6033_p9, %p7599_p1  ;;  %p6041_p2 = scmp.lt.s32.totalorder %s6039_s20, %s6032_s8 }
 0x30b   : > { %p6036_p4 = pneg %p6035_p12  ;;  %p6042_p11 = por %p6041_p2, %p6040_p10 }
 0x30d   : > { %p6043_p3 = pnand %p6042_p11, %p6036_p4 }
 0x30f   : > { %6046 = shalt.err (!%p6043_p3)
}
 0x310   : > { %p7606_p5 = scmp.ne.s32.totalorder %s7583_s6, 0  ;;  %s7607_s10 = sld [smem:[#allocation65_spill]] }
 0x312   : > { %5125 = dma.hbm_to_vmem [thread:$0]  (!%p7606_p5), %s7022_s12, 128, %s1031_s11, %s1020_s5  }
 0x316   : > { %p7608_p13 = scmp.ne.s32.totalorder %s7607_s10, 0 }
 0x317   : > { %s7047_s21 = sand.u32 (!%p7608_p13), 1, %s6193_s4   ;;  %p7609_p1 = scmp.ne.s32.totalorder (!%p7608_p13), %s7579_s3, 0 }
 0x318   : > { %1039 = sbr.rel (%p7608_p13) target bundleno = 4869 (0x1305), region = 124  ;;  %s7050_s2 = sshll.u32 (!%p7608_p13), %s7047_s21, 3 }
 0x319   : > { %s1042_s17 = scalar_lea.sflag (!%p7608_p13), [#allocation3], %s7047_s21  ;;  %s1045_s13 = scalar_lea.vmem (!%p7608_p13), [#allocation2], %s7050_s2 }
 0x31f   : > { %6120 = dma.done.wait (%p7609_p1), %s1042_s17, 128  }
 0x320   : > { %6122 = vsyncadd (%p7609_p1), %s1042_s17, 4294967168  ;;  %s1050_s6 = sand.u32 1, %s6402_s28   ;;  %s4432_s12 = sshll.u32 %s7047_s21, 4 }
 0x321   : > { %s1051_s11 = scalar_lea.sflag [#allocation6], %s1050_s6  ;;  %s7060_s5 = scalar_lea.vmem [#allocation5], %s4432_s12 }
 0x322   : > { %6124 = dma.done.wait (%p7609_p1), %s1051_s11, 384  }
 0x323   : > { %6126 = vsyncadd (%p7609_p1), %s1051_s11, 4294966912  ;;  %s1063_s0 = scalar_lea.vmem [#allocation7], %s7050_s2  ;;  %s1069_s29 = scalar_lea.sflag [#allocation9], %s1050_s6 }
 0x324   : > { %s1072_s27 = scalar_lea.vmem [#allocation8], %s7050_s2 }
 0x325   : > { %6128 = dma.done.wait (%p7609_p1), %s1069_s29, 128  }
 0x326   : > { %6130 = vsyncadd (%p7609_p1), %s1069_s29, 4294967168  ;;  %p7610_p11 = scmp.eq.s32.totalorder %s6402_s28, 0 }
 0x328   : > { %6132 = dma.done.wait (%p7610_p11), [#allocation9], 16   ;;  %p7611_p7 = pmov %p7610_p11 }
 0x32a   : > { %6134 = vsyncadd (%p7611_p7), [#allocation9], 4294967280  ;;  %p7612_p8 = pmov %p7611_p7 }
 0x32b   : > { %p7613_p6 = pmov %p7611_p7 }
 0x32c   : > { %6136 = dma.done.wait (%p7612_p8), [#allocation12], 528  }
 0x32d   : > { %6138 = vsyncadd (%p7613_p6), [#allocation12], 4294966768  ;;  %p7614_p0 = pmov %p7613_p6 }
 0x32f   : > { %6140 = dma.done.wait (%p7614_p0), [#allocation15], 528   ;;  %p7615_p9 = pmov %p7614_p0 }
 0x330   : > { %p7616_p12 = pmov %p7614_p0 }
 0x331   : > { %6142 = vsyncadd (%p7615_p9), [#allocation15], 4294966768 }
 0x332   : > { %6144 = dma.done.wait (%p7616_p12), [#allocation18], 528   ;;  %p7617_p4 = pmov %p7614_p0 }
 0x333   : > { %p7618_p10 = pmov %p7614_p0 }
 0x334   : > { %6146 = vsyncadd (%p7617_p4), [#allocation18], 4294966768 }
 0x335   : > { %6148 = dma.done.wait (%p7618_p10), [#allocation21], 528   ;;  %p7619_p2 = pmov %p7614_p0 }
 0x336   : > { %p7620_p3 = pmov %p7614_p0 }
 0x337   : > { %6150 = vsyncadd (%p7619_p2), [#allocation21], 4294966768 }
 0x338   : > { %6152 = dma.done.wait (%p7620_p3), [#allocation24], 528   ;;  %p7621_p5 = pmov %p7614_p0 }
 0x339   : > { %p7622_p13 = pmov %p7614_p0 }
 0x33a   : > { %6154 = vsyncadd (%p7621_p5), [#allocation24], 4294966768 }
 0x33b   : > { %6156 = dma.done.wait (%p7622_p13), [#allocation27], 528   ;;  %p7623_p1 = pmov %p7614_p0 }
 0x33c   : > { %p7624_p11 = pmov %p7614_p0 }
 0x33d   : > { %6158 = vsyncadd (%p7623_p1), [#allocation27], 4294966768 }
 0x33e   : > { %6160 = dma.done.wait (%p7624_p11), [#allocation30], 528   ;;  %p7625_p7 = pmov %p7614_p0 }
 0x33f   : > { %p7626_p8 = pmov %p7614_p0 }
 0x340   : > { %6162 = vsyncadd (%p7625_p7), [#allocation30], 4294966768 }
 0x341   : > { %6164 = dma.done.wait (%p7626_p8), [#allocation33], 528   ;;  %p7627_p6 = pmov %p7614_p0 }
 0x343   : > { %6166 = vsyncadd (%p7627_p6), [#allocation33], 4294966768 }
 0x344   : > { %6168 = dma.done.wait (%p7614_p0), [#allocation36], 528   ;;  %p7628_p9 = pmov %p7614_p0 }
 0x345   : > { %p7629_p12 = pmov %p7614_p0 }
 0x346   : > { %6170 = vsyncadd (%p7628_p9), [#allocation36], 4294966768 }
 0x347   : > { %6172 = dma.done.wait (%p7629_p12), [#allocation39], 1040   ;;  %p7630_p4 = pmov %p7614_p0 }
 0x348   : > { %p7631_p10 = pmov %p7614_p0 }
 0x349   : > { %6174 = vsyncadd (%p7630_p4), [#allocation39], 4294966256 }
 0x34a   : > { %6176 = dma.done.wait (%p7631_p10), [#allocation42], 16   ;;  %p7632_p2 = pmov %p7614_p0 }
 0x34b   : > { %vm1258_vm0 = vcmask 261120   ;;  %v7122_v0 = vld [vmem:[%s1045_s13] sm:$0xff]  ;;  %v1287_v7 = vld [vmem:[#allocation13] sm:$0xff]  ;;  %v6231_v10 = vmov 0.0|0.0   ;;  %vm6232_vm1 = vmmov 0   ;;  %v6233_v18 = vmov 0.0  }
 0x34c   : > { %6178 = vsyncadd (%p7632_p2), [#allocation42], 4294967280  ;;  %v1259_v1 = vsel %vm1258_vm0, %v7122_v0, 0.0  ;;  %v1288_v8 = vld [vmem:[#allocation13 + $0x8] sm:$0xff]  ;;  %4860 = vmatprep.subr.bf16.mxu0 %v6231_v10  ;;  %4866 = vmatprep.subr.bf16.mxu1 %v6231_v10  ;;  %v1289_v13 = vld [vmem:[#allocation13 + $0x10] sm:$0xff]  ;;  %vm1563_vm2 = vcmask 64512  }
 0x34d   : > { %1260 = vadd.xlane.f32.xlu0 %v1259_v1  ;;  %v1292_v9 = vld [vmem:[#allocation16] sm:$0xff]  ;;  %v4861_v11 = vpack.c.bf16 %v1288_v8, %v1287_v7  ;;  %v1293_v12 = vld [vmem:[#allocation16 + $0x8] sm:$0xff]  ;;  %v1290_v14 = vld [vmem:[#allocation13 + $0x18] sm:$0xff]  ;;  %4636 = vmatprep.mubr.msk.f32.mxu0 %vm6232_vm1, %v6233_v18  ;;  %s6234_s3 = smov 120   ;;  %s6235_s8 = smov 112   ;;  %vm3145_vm6 = vcmask 130048  }
 0x34e   : > { %v4867_v15 = vpack.c.bf16 %v1293_v12, %v1292_v9  ;;  %v1294_v16 = vld [vmem:[#allocation16 + $0x10] sm:$0xff]  ;;  %v1295_v17 = vld [vmem:[#allocation16 + $0x18] sm:$0xff]  ;;  %4647 = vmatprep.mubr.msk.f32.mxu1 %vm6232_vm1, %v6233_v18  ;;  %v4864_v19 = vpack.c.bf16 %v1290_v14, %v1289_v13  ;;  %v1297_v27 = vld [vmem:[#allocation19] sm:$0xff]  ;;  %s6236_s1 = smov 104   ;;  %s4458_s7 = sshll.u32 %s7047_s21, 5  ;;  %vm3908_vm7 = vcmask 523264  }
 0x34f   : > { %4862 = vmatpush3.bf16.msra.mxu0 %v4861_v11  ;;  %v4870_v20 = vpack.c.bf16 %v1295_v17, %v1294_v16  ;;  %v7138_v25 = vld [vmem:[#allocation10] ss:$0 sm:$0xff]  ;;  %v1298_v28 = vld [vmem:[#allocation19 + $0x8] sm:$0xff]  ;;  %v7140_v29 = vld [vmem:[#allocation11] ss:$0 sm:$0xff]  ;;  %s7315_s20 = scalar_lea.vmem [#allocation44], %s4458_s7 }
 0x350   : > { %4868 = vmatpush3.bf16.msra.mxu1 %v4867_v15  ;;  %4863 = vmatprep.subr.bf16.mxu0 %v6231_v10  ;;  %v4873_v31 = vpack.c.bf16 %v1298_v28, %v1297_v27  ;;  %v1299_v33 = vld [vmem:[#allocation19 + $0x10] sm:$0xff]  ;;  %v1300_v34 = vld [vmem:[#allocation19 + $0x18] sm:$0xff]  ;;  %v4465_v51 = vld [vmem:[#allocation20] ss:$0 sm:$0xff]  ;;  %s4525_s10 = sshll.u32 %s6402_s28, 9  ;;  %s4016_s17 = sshll.u32 %s7315_s20, 4  ;;  %s7381_s17 = int_to_ptr.vmem [resolvable:$true] %s4016_s17 }
 0x351   : > { %4869 = vmatprep.subr.bf16.mxu1 %v6231_v10  ;;  %v4876_v35 = vpack.c.bf16 %v1300_v34, %v1299_v33  ;;  %v4461_v36 = vld [vmem:[#allocation14] ss:$0 sm:$0xff]  ;;  %v4463_v37 = vld [vmem:[#allocation17] ss:$0 sm:$0xff]  ;;  %vm7258_vm4 = vmpackc.low %vm1563_vm2, %vm1563_vm2  ;;  %s7635_s12 = sld [smem:[#allocation94_spill]]  ;;  %p7636_p5 = scmp.ne.s32.totalorder %s7580_s18, 0 }
 0x352   : > { %v1254_v55 = vld [vmem:[%s1063_s0] sm:$0xff]  ;;  %s6047_s0 = scalar_lea.vmem %s7381_s17, 512  ;;  %s6237_s29 = smov [#allocation44]  }
 0x353   : > { %4865 = vmatpush3.bf16.msra.mxu0 %v4864_v19  ;;  %vm1860_vm3 = vcmp.eq.f32.partialorder %v1254_v55, 0.0  ;;  %p6048_p3 = scmp.ne.s32.totalorder %s7381_s17, %s6047_s0 }
 0x354   : > { %4871 = vmatpush3.bf16.msra.mxu1 %v4870_v20  ;;  %4872 = vmatprep.subr.bf16.mxu0 %v6231_v10 }
 0x355   : > { %4666 = vmatprep.subr.mxu1 %v6233_v18  ;;  %p6049_p13 = pnand %p6048_p3, %p7636_p5 }
 0x357   : > { %s7379_s11 = scalar_lea.hbm %s7635_s12, %s4525_s10  ;;  %p6050_p1 = pneg %p6049_p13 }
 0x3da   : > { %v1261_v2 = vpop.xlane.xlu0 %1260 }
 0x3db   : > { %v1263_v3 = vmul.f32 0.03125, %v1261_v2 }
 0x3dd   : > { %v1264_v4 = vsub.f32 %v7122_v0, %v1263_v3 }
 0x3df   : > { %v1265_v5 = vmul.f32 %v1264_v4, %v1264_v4 }
 0x3e1   : > { %v1266_v6 = vsel %vm1258_vm0, %v1265_v5, 0.0 }
 0x3e2   : > { %1267 = vadd.xlane.f32.xlu0 %v1266_v6 }
 0x46f   : > { %v1268_v21 = vpop.xlane.xlu0 %1267 }
 0x470   : > { %v1269_v22 = vmul.f32 0.03125, %v1268_v21 }
 0x472   : > { %v1270_v23 = vadd.f32 1e-05, %v1269_v22 }
 0x474   : > { %5273 = vrsqrt.f32 %v1270_v23 }
 0x47e   : > { %v5274_v24 = vpop.eup %5273 }
 0x47f   : > { %v1272_v26 = vmul.f32 %v5274_v24, %v1264_v4 }
 0x481   : > { %v1279_v30 = vmul.f32 %v7138_v25, %v1272_v26 }
 0x483   : > { %v1286_v32 = vadd.f32 %v7140_v29, %v1279_v30 }
 0x485   : > { %4637 = vmatmul.mubr.msk.f32.vlgmr.msra.gmra.mrb[0].mxu0 %vm1258_vm0, %v1286_v32  ;;  %4648 = vmatmul.mubr.msk.f32.vlgmr.msra.gmra.mrb[0].mxu1 %vm1258_vm0, %v1286_v32 }
 0x486   : > { %4874 = vmatpush3.bf16.msra.mxu0 %v4873_v31  ;;  %4658 = vmatprep.mubr.msk.f32.mxu0 %vm6232_vm1, %v6233_v18 }
 0x487   : > { %4875 = vmatprep.subr.bf16.mxu0 %v6231_v10  ;;  %4668 = vmatprep.mubr.msk.f32.mxu1 %vm6232_vm1, %v6233_v18 }
 0x48a   : > { %4877 = vmatpush3.bf16.msra.mxu0 %v4876_v35 }
 0x48b   : > { %4661 = vmatprep.subr.mxu0 %v6233_v18 }
 0x48d   : > { %4659 = vmatmul.mubr.msk.f32.vlgmr.msra.gmra.mrb[2].mxu0 %vm1258_vm0, %v1286_v32 }
 0x48e   : > { %4663 = vmatprep.mubr.msk.f32.mxu0 %vm6232_vm1, %v6233_v18 }
 0x558   : > { %v1382_v38 = vpop.f32.mrb[0].mxu0  ;;  %v1459_v39 = vpop.f32.mrb[0].mxu1 }
 0x559   : > { %v1383_v40 = vadd.f32 %v4461_v36, %v1382_v38  ;;  %v1460_v41 = vadd.f32 %v4463_v37, %v1459_v39  ;;  %v4638_v42 = vpop.f32.mrb[1].mxu0  ;;  %v4649_v43 = vpop.f32.mrb[1].mxu1 }
 0x55b   : > { %v1386_v44 = vmul.f32 0.35355338, %v1383_v40  ;;  %1547 = vrot.lane.b32.xlu1 %v1460_v41, %s6234_s3  ;;  %4662 = vmatpush3.xpose.msk.msra.mxu0 %vm1563_vm2, %v1460_v41 }
 0x55c   : > { %4671 = vmatprep.subr.mxu0 %v6233_v18 }
 0x55d   : > { %1540 = vrot.lane.b32.xlu0 %v1386_v44, %s6234_s3 }
 0x55e   : > { %4664 = vmatmul.mubr.msk.f32.vlgmr.msra.gmra.mrb[4].mxu0 %vm1563_vm2, %v1386_v44 }
 0x55f   : > { %1549 = vrot.lane.b32.xlu1 %v1460_v41, %s6235_s8  ;;  %4673 = vmatprep.mubr.msk.f32.mxu0 %vm6232_vm1, %v6233_v18 }
 0x560   : > { %v1535_v45 = vpop.f32.mrb[2].mxu0 }
 0x561   : > { %v4660_v46 = vpop.f32.mrb[3].mxu0  ;;  %v7175_v52 = vadd.f32 %v4465_v51, %v1535_v45 }
 0x563   : > { %1551 = vrot.lane.b32.xlu1 %v1460_v41, %s6236_s1 }
 0x567   : > { %1542 = vrot.lane.b32.xlu1 %v1386_v44, %s6235_s8 }
 0x56b   : > { %1544 = vrot.lane.b32.xlu1 %v1386_v44, %s6236_s1  ;;  %v1302_v44 = vld [vmem:[#allocation22] sm:$0xff] }
 0x5cd   : > { %v1548_v47 = vpop.permute.xlu1 %1547 }
 0x5ce   : > { %4667 = vmatpush3.xpose.msk.msra.mxu1 %vm1563_vm2, %v1548_v47 }
 0x5cf   : > { %v1541_v48 = vpop.permute.xlu0 %1540  ;;  %4676 = vmatprep.subr.mxu1 %v6233_v18 }
 0x5d1   : > { %v1550_v49 = vpop.permute.xlu1 %1549  ;;  %4669 = vmatmul.mubr.msk.f32.vlgmr.msra.gmra.mrb[2].mxu1 %vm1563_vm2, %v1541_v48 }
 0x5d2   : > { %4672 = vmatpush3.xpose.msk.msra.mxu0 %vm1563_vm2, %v1550_v49  ;;  %4678 = vmatprep.mubr.msk.f32.mxu1 %vm6232_vm1, %v6233_v18  ;;  %v1303_v49 = vld [vmem:[#allocation22 + $0x8] sm:$0xff] }
 0x5d3   : > { %4681 = vmatprep.subr.mxu0 %v6233_v18 }
 0x5d5   : > { %v1552_v50 = vpop.permute.xlu1 %1551 }
 0x5d6   : > { %4677 = vmatpush3.xpose.msk.msra.mxu1 %vm1563_vm2, %v1552_v50  ;;  %v1304_v50 = vld [vmem:[#allocation22 + $0x10] sm:$0xff] }
 0x5d7   : > { %4686 = vmatprep.subr.mxu1 %v6233_v18 }
 0x5d9   : > { %v1543_v53 = vpop.permute.xlu1 %1542 }
 0x5da   : > { %4674 = vmatmul.mubr.msk.f32.vlgmr.msra.gmra.mrb[6].mxu0 %vm1563_vm2, %v1543_v53  ;;  %v1305_v53 = vld [vmem:[#allocation22 + $0x18] sm:$0xff] }
 0x5db   : > { %4682 = vmatpush3.msra.mxu0 %v7175_v52  ;;  %4683 = vmatprep.mubr.msk.f32.mxu0 %vm6232_vm1, %v6233_v18 }
 0x5dc   : > { %4691 = vmatprep.subr.mxu0 %v6233_v18 }
 0x5dd   : > { %v1545_v54 = vpop.permute.xlu1 %1544 }
 0x5de   : > { %4679 = vmatmul.mubr.msk.f32.vlgmr.msra.gmra.mrb[4].mxu1 %vm1563_vm2, %v1545_v54 }
 0x5df   : > { %4688 = vmatprep.mubr.msk.f32.mxu1 %vm6232_vm1, %v6233_v18 }
 0x631   : > { %v1634_v56 = vpop.f32.mrb[4].mxu0 }
 0x632   : > { %v1863_v57 = vsel %vm1860_vm3, -1e+10, %v1634_v56  ;;  %v4665_v58 = vpop.f32.mrb[5].mxu0 }
 0x633   : > { %v1867_v59 = vsel %vm1563_vm2, %v1863_v57, -inf }
 0x634   : > { %1868 = vmax.xlane.f32.xlu1 %v1867_v59 }
 0x6a4   : > { %v1708_v60 = vpop.f32.mrb[2].mxu1 }
 0x6a5   : > { %v1864_v61 = vsel %vm1860_vm3, -1e+10, %v1708_v60  ;;  %v4670_v62 = vpop.f32.mrb[3].mxu1 }
 0x6a6   : > { %v1870_v63 = vsel %vm1563_vm2, %v1864_v61, -inf }
 0x6a7   : > { %1871 = vmax.xlane.f32.xlu0 %v1870_v63 }
 0x6ad   : > { %v1782_v1 = vpop.f32.mrb[6].mxu0 }
 0x6ae   : > { %v1865_v2 = vsel %vm1860_vm3, -1e+10, %v1782_v1  ;;  %v4675_v3 = vpop.f32.mrb[7].mxu0 }
 0x6af   : > { %v1873_v4 = vsel %vm1563_vm2, %v1865_v2, -inf }
 0x6b0   : > { %1874 = vmax.xlane.f32.xlu1 %v1873_v4 }
 0x6b1   : > { %v1856_v5 = vpop.f32.mrb[4].mxu1 }
 0x6b2   : > { %v1866_v6 = vsel %vm1860_vm3, -1e+10, %v1856_v5  ;;  %v4680_v7 = vpop.f32.mrb[5].mxu1 }
 0x6b3   : > { %v1876_v8 = vsel %vm1563_vm2, %v1866_v6, -inf }
 0x6b4   : > { %1877 = vmax.xlane.f32.xlu1 %v1876_v8 }
 0x6c1   : > { %v1869_v9 = vpop.xlane.xlu1 %1868 }
 0x6c2   : > { %v1879_v11 = vsub.f32 %v1863_v57, %v1869_v9  ;;  %v4483_v9 = vld [vmem:[#allocation23] ss:$0 sm:$0xff] }
 0x6c4   : > { %v1883_v12 = vmul.f32 1.442695, %v1879_v11 }
 0x6c6   : > { %5275 = vpow2.f32 %v1883_v12 }
 0x6d0   : > { %v5276_v13 = vpop.eup %5275 }
 0x6d1   : > { %v1891_v14 = vsel %vm1563_vm2, %v5276_v13, 0.0 }
 0x6d2   : > { %1892 = vadd.xlane.f32.xlu0 %v1891_v14 }
 0x734   : > { %v1872_v15 = vpop.xlane.xlu0 %1871 }
 0x735   : > { %v1880_v16 = vsub.f32 %v1864_v61, %v1872_v15 }
 0x737   : > { %v1885_v17 = vmul.f32 1.442695, %v1880_v16 }
 0x739   : > { %5277 = vpow2.f32 %v1885_v17  ;;  %v2530_v17 = vld [vmem:[#allocation28] sm:$0xff] }
 0x73d   : > { %v1875_v19 = vpop.xlane.xlu1 %1874 }
 0x73e   : > { %v1881_v20 = vsub.f32 %v1865_v2, %v1875_v19  ;;  %v2531_v19 = vld [vmem:[#allocation28 + $0x8] sm:$0xff] }
 0x740   : > { %v1887_v21 = vmul.f32 1.442695, %v1881_v20  ;;  %v2532_v20 = vld [vmem:[#allocation28 + $0x10] sm:$0xff] }
 0x741   : > { %v1878_v28 = vpop.xlane.xlu1 %1877 }
 0x742   : > { %5279 = vpow2.f32 %v1887_v21  ;;  %v1882_v30 = vsub.f32 %v1866_v6, %v1878_v28  ;;  %v4884_v21 = vpack.c.bf16 %v2531_v19, %v2530_v17 }
 0x743   : > { %v5278_v22 = vpop.eup %5277 }
 0x744   : > { %v1894_v23 = vsel %vm1563_vm2, %v5278_v22, 0.0  ;;  %v1889_v31 = vmul.f32 1.442695, %v1882_v30  ;;  %v1252_v30 = vld [vmem:[%s7060_s5] sm:$0xff] }
 0x745   : > { %1895 = vadd.xlane.f32.xlu1 %v1894_v23 }
 0x74c   : > { %v5280_v24 = vpop.eup %5279 }
 0x74d   : > { %v1897_v26 = vsel %vm1563_vm2, %v5280_v24, 0.0 }
 0x74e   : > { %1898 = vadd.xlane.f32.xlu0 %v1897_v26 }
 0x756   : > { %1557 = vrot.lane.b32.xlu1 %v7175_v52, %s6235_s8 }
 0x75f   : > { %v1893_v27 = vpop.xlane.xlu0 %1892 }
 0x760   : > { %5281 = vrcp.f32 %v1893_v27 }
 0x761   : > { %5283 = vpow2.f32 %v1889_v31  ;;  %v1253_v31 = vld [vmem:[%s7060_s5 + $0x8] sm:$0xff]  ;;  %s3990_s5 = scalar_lea.sflag [#allocation45], %s7047_s21 }
 0x764   : > { %1554 = vrot.lane.b32.xlu0 %v7175_v52, %s6234_s3 }
 0x76a   : > { %v5282_v32 = vpop.eup %5281 }
 0x76b   : > { %v1907_v33 = vmul.f32 %v5282_v32, %v5276_v13  ;;  %v5284_v34 = vpop.eup %5283  ;;  %v2525_v32 = vld [vmem:[#allocation25] sm:$0xff] }
 0x76c   : > { %v1900_v35 = vsel %vm1563_vm2, %v5284_v34, 0.0 }
 0x76d   : > { %4684 = vmatmul.mubr.msk.f32.vlgmr.msra.gmra.mrb[8].mxu0 %vm1563_vm2, %v1907_v33  ;;  %v2526_v33 = vld [vmem:[#allocation25 + $0x8] sm:$0xff] }
 0x76e   : > { %4693 = vmatprep.mubr.msk.f32.mxu0 %vm6232_vm1, %v6233_v18 }
 0x77a   : > { %1901 = vadd.xlane.f32.xlu1 %v1900_v35  ;;  %v2527_v35 = vld [vmem:[#allocation25 + $0x10] sm:$0xff] }
 0x78b   : > { %1560 = vrot.lane.b32.xlu1 %v7175_v52, %s6236_s1 }
 0x7d2   : > { %v1896_v36 = vpop.xlane.xlu1 %1895 }
 0x7d3   : > { %5285 = vrcp.f32 %v1896_v36  ;;  %v2528_v36 = vld [vmem:[#allocation25 + $0x18] sm:$0xff] }
 0x7d6   : > { %v1558_v37 = vpop.permute.xlu1 %1557 }
 0x7d7   : > { %4692 = vmatpush3.msra.mxu0 %v1558_v37  ;;  %v4882_v37 = vpack.c.bf16 %v2528_v36, %v2527_v35 }
 0x7d8   : > { %4701 = vmatprep.subr.mxu0 %v6233_v18 }
 0x7db   : > { %v1899_v38 = vpop.xlane.xlu0 %1898 }
 0x7dc   : > { %5287 = vrcp.f32 %v1899_v38 }
 0x7dd   : > { %v5286_v39 = vpop.eup %5285 }
 0x7de   : > { %v1908_v40 = vmul.f32 %v5286_v39, %v5278_v22  ;;  %v2533_v22 = vld [vmem:[#allocation28 + $0x18] sm:$0xff] }
 0x7df   : > { %v1555_v41 = vpop.permute.xlu0 %1554  ;;  %v4888_v23 = vpack.c.bf16 %v2533_v22, %v2532_v20 }
 0x7e0   : > { %4687 = vmatpush3.msra.mxu1 %v1555_v41 }
 0x7e1   : > { %4689 = vmatmul.mubr.msk.f32.vlgmr.msra.gmra.mrb[6].mxu1 %vm1563_vm2, %v1908_v40  ;;  %4696 = vmatprep.subr.mxu1 %v6233_v18 }
 0x7e2   : > { %4698 = vmatprep.mubr.msk.f32.mxu1 %vm6232_vm1, %v6233_v18 }
 0x7e6   : > { %v5288_v42 = vpop.eup %5287 }
 0x7e7   : > { %v1909_v43 = vmul.f32 %v5288_v42, %v5280_v24 }
 0x7e9   : > { %4694 = vmatmul.mubr.msk.f32.vlgmr.msra.gmra.mrb[10].mxu0 %vm1563_vm2, %v1909_v43 }
 0x7ea   : > { %4702 = vmatpush3.msra.mxu0 %v1302_v44  ;;  %4703 = vmatprep.mubr.msk.f32.mxu0 %vm6232_vm1, %v6233_v18 }
 0x7eb   : > { %4711 = vmatprep.subr.mxu0 %v6233_v18 }
 0x807   : > { %v1902_v45 = vpop.xlane.xlu1 %1901 }
 0x808   : > { %5289 = vrcp.f32 %v1902_v45  ;;  %v4486_v45 = vld [vmem:[#allocation29] ss:$0 sm:$0xff] }
 0x80b   : > { %v1561_v46 = vpop.permute.xlu1 %1560 }
 0x80c   : > { %4697 = vmatpush3.msra.mxu1 %v1561_v46 }
 0x80d   : > { %4706 = vmatprep.subr.mxu1 %v6233_v18 }
 0x812   : > { %v5290_v47 = vpop.eup %5289 }
 0x813   : > { %v1910_v48 = vmul.f32 %v5290_v47, %v5284_v34  ;;  %v4879_v34 = vpack.c.bf16 %v2526_v33, %v2525_v32 }
 0x815   : > { %4699 = vmatmul.mubr.msk.f32.vlgmr.msra.gmra.mrb[8].mxu1 %vm1563_vm2, %v1910_v48 }
 0x816   : > { %4708 = vmatprep.mubr.msk.f32.mxu1 %vm6232_vm1, %v6233_v18  ;;  %4707 = vmatpush3.msra.mxu1 %v1303_v49 }
 0x817   : > { %4716 = vmatprep.subr.mxu1 %v6233_v18 }
 0x840   : > { %v1980_v51 = vpop.f32.mrb[8].mxu0 }
 0x841   : > { %v4685_v52 = vpop.f32.mrb[9].mxu0  ;;  %4704 = vmatmul.mubr.msk.f32.vlgmr.msra.gmra.mrb[12].mxu0 %vm1563_vm2, %v1980_v51 }
 0x842   : > { %4712 = vmatpush3.msra.mxu0 %v1304_v50  ;;  %4713 = vmatprep.mubr.msk.f32.mxu0 %vm6232_vm1, %v6233_v18 }
 0x843   : > { %4878 = vmatprep.subr.bf16.mxu0 %v6231_v10 }
 0x8b4   : > { %v2053_v54 = vpop.f32.mrb[6].mxu1 }
 0x8b5   : > { %v4690_v55 = vpop.f32.mrb[7].mxu1  ;;  %4709 = vmatmul.mubr.msk.f32.vlgmr.msra.gmra.mrb[10].mxu1 %vm1563_vm2, %v2053_v54  ;;  %v2536_v54 = vld [vmem:[#allocation31 + $0x8] sm:$0xff] }
 0x8b6   : > { %4717 = vmatpush3.msra.mxu1 %v1305_v53  ;;  %4718 = vmatprep.mubr.msk.f32.mxu1 %vm6232_vm1, %v6233_v18  ;;  %v2535_v53 = vld [vmem:[#allocation31] sm:$0xff]  ;;  %v2537_v55 = vld [vmem:[#allocation31 + $0x10] sm:$0xff] }
 0x8b7   : > { %4885 = vmatprep.subr.bf16.mxu1 %v4884_v21 }
 0x8bc   : > { %v2126_v56 = vpop.f32.mrb[10].mxu0 }
 0x8bd   : > { %v4695_v57 = vpop.f32.mrb[11].mxu0  ;;  %4714 = vmatmul.mubr.msk.f32.vlgmr.msra.gmra.mrb[14].mxu0 %vm1563_vm2, %v2126_v56  ;;  %v4892_v56 = vpack.c.bf16 %v2536_v54, %v2535_v53 }
 0x8be   : > { %4729 = vmatprep.mubr.msk.f32.mxu0 %vm6232_vm1, %v6233_v18  ;;  %4880 = vmatpush3.bf16.msra.mxu0 %v4879_v34  ;;  %v2538_v57 = vld [vmem:[#allocation31 + $0x18] sm:$0xff] }
 0x8bf   : > { %4881 = vmatprep.subr.bf16.mxu0 %v6231_v10 }
 0x8c2   : > { %4883 = vmatpush3.bf16.msra.mxu0 %v4882_v37 }
 0x8c3   : > { %4893 = vmatprep.subr.bf16.mxu0 %v4892_v56 }
 0x8e8   : > { %v2199_v58 = vpop.f32.mrb[8].mxu1 }
 0x8e9   : > { %v4700_v59 = vpop.f32.mrb[9].mxu1  ;;  %4719 = vmatmul.mubr.msk.f32.vlgmr.msra.gmra.mrb[12].mxu1 %vm1563_vm2, %v2199_v58  ;;  %v4896_v58 = vpack.c.bf16 %v2538_v57, %v2537_v55 }
 0x8ea   : > { %4887 = vmatpush3.bf16.msra.mxu1 %v4884_v21  ;;  %4740 = vmatprep.mubr.msk.f32.mxu1 %vm1258_vm0, %v1252_v30 }
 0x8eb   : > { %4889 = vmatprep.subr.bf16.mxu1 %v4888_v23 }
 0x8ee   : > { %4891 = vmatpush3.bf16.msra.mxu1 %v4888_v23 }
 0x8ef   : > { %4900 = vmatprep.subr.bf16.mxu1 %v6231_v10 }
 0x8f1   : > { %4741 = vmatmul.mubr.msk.f32.vlgmr.msra.gmra.mrb[14].mxu1 %vm1258_vm0, %v1253_v31 }
 0x8f2   : > { %4758 = vmatprep.mubr.msk.f32.mxu1 %vm6232_vm1, %v6233_v18 }
 0x914   : > { %v2272_v60 = vpop.f32.mrb[12].mxu0 }
 0x915   : > { %v4705_v61 = vpop.f32.mrb[13].mxu0  ;;  %v2495_v63 = vsel %vm1258_vm0, %v2272_v60, 0.0 }
 0x988   : > { %v2345_v62 = vpop.f32.mrb[10].mxu1 }
 0x989   : > { %v2496_v1 = vsel %vm1258_vm0, %v2345_v62, 0.0  ;;  %v4710_v2 = vpop.f32.mrb[11].mxu1 }
 0x98a   : > { %v2497_v3 = vadd.f32 %v2496_v1, %v2495_v63  ;;  %v4484_v1 = vld [vmem:[#allocation26] ss:$0 sm:$0xff] }
 0x990   : > { %v2418_v4 = vpop.f32.mrb[14].mxu0 }
 0x991   : > { %v2498_v5 = vsel %vm1258_vm0, %v2418_v4, 0.0  ;;  %v4715_v6 = vpop.f32.mrb[15].mxu0 }
 0x992   : > { %v2499_v7 = vadd.f32 %v2498_v5, %v2497_v3 }
 0x9bc   : > { %v2491_v8 = vpop.f32.mrb[12].mxu1 }
 0x9bd   : > { %v2500_v11 = vsel %vm1258_vm0, %v2491_v8, 0.0  ;;  %v4720_v12 = vpop.f32.mrb[13].mxu1 }
 0x9be   : > { %v2501_v13 = vadd.f32 %v2500_v11, %v2499_v7  ;;  %v4489_v12 = vld [vmem:[#allocation32] ss:$0 sm:$0xff] }
 0x9c0   : > { %v2508_v14 = vadd.f32 %v4483_v9, %v2501_v13 }
 0x9c2   : > { %v7238_v15 = vadd.f32 %v2508_v14, %v7122_v0 }
 0x9c4   : > { %v2510_v16 = vsel %vm1258_vm0, %v7238_v15, 0.0  ;;  %v4742_v46 = vpop.f32.mrb[14].mxu1 }
 0x9c5   : > { %2511 = vadd.xlane.f32.xlu0 %v2510_v16  ;;  %v2709_v47 = vadd.f32 %v4742_v46, %v4486_v45  ;;  %v2703_v48 = vpop.f32.mrb[15].mxu1 }
 0x9c6   : > { %v2704_v49 = vadd.f32 %v4486_v45, %v2703_v48 }
 0x9c8   : > { %v4901_v51 = vpack.c.bf16 %v2709_v47, %v2704_v49  ;;  %v5243_v52 = vpack.i.bf16 %v2709_v47, %v2704_v49 }
 0x9ca   : > { %4903 = vmatpush3.bf16.xpose.msk.msra.mxu1 %vm7258_vm4, %v4901_v51 }
 0x9cb   : > { %4908 = vmatprep.subr.bf16.mxu1 %v6231_v10 }
 0x9db   : > { %5244 = vrot.lane.b32.xlu0 %v5243_v52, %s6234_s3 }
 0x9df   : > { %5254 = vrot.lane.b32.xlu0 %v5243_v52, %s6236_s1 }
 0xa52   : > { %v2512_v0 = vpop.xlane.xlu0 %2511 }
 0xa53   : > { %v2513_v24 = vmul.f32 0.03125, %v2512_v0 }
 0xa55   : > { %v2514_v26 = vsub.f32 %v7238_v15, %v2513_v24  ;;  %v1255_v24 = vld [vmem:[%s1072_s27] sm:$0xff]  ;;  %s6051_s27 = sshll.u32 %s6237_s29, 4  ;;  %s6052_s27 = int_to_ptr.vmem [resolvable:$false] %s6051_s27 }
 0xa56   : > { %v5245_v59 = vpop.permute.xlu0 %5244  ;;  %vm3138_vm5 = vcmp.eq.f32.partialorder %v1255_v24, 0.0  ;;  %p6054_p11 = scmp.lt.s32.totalorder %s7381_s17, %s6052_s27 }
 0xa57   : > { %v2515_v27 = vmul.f32 %v2514_v26, %v2514_v26  ;;  %v5247_v60 = vunpack.i.h.bf16 %v5245_v59  ;;  %v5246_v61 = vunpack.i.l.bf16 %v5245_v59 }
 0xa59   : > { %v2516_v28 = vsel %vm1258_vm0, %v2515_v27, 0.0  ;;  %v4905_v62 = vpack.c.bf16 %v5247_v60, %v5246_v61 }
 0xa5a   : > { %2517 = vadd.xlane.f32.xlu1 %v2516_v28  ;;  %v5255_v13 = vpop.permute.xlu0 %5254 }
 0xa5b   : > { %v5257_v17 = vunpack.i.h.bf16 %v5255_v13  ;;  %v5256_v19 = vunpack.i.l.bf16 %v5255_v13 }
 0xa5d   : > { %v4913_v21 = vpack.c.bf16 %v5257_v17, %v5256_v19 }
 0xa6b   : > { %5249 = vrot.lane.b32.xlu1 %v5243_v52, %s6235_s8 }
 0xae7   : > { %v2518_v38 = vpop.xlane.xlu1 %2517 }
 0xae8   : > { %v2519_v39 = vmul.f32 0.03125, %v2518_v38 }
 0xaea   : > { %v2520_v40 = vadd.f32 1e-05, %v2519_v39 }
 0xaeb   : > { %v5250_v63 = vpop.permute.xlu1 %5249 }
 0xaec   : > { %5291 = vrsqrt.f32 %v2520_v40  ;;  %v5252_v2 = vunpack.i.h.bf16 %v5250_v63  ;;  %v5251_v3 = vunpack.i.l.bf16 %v5250_v63 }
 0xaee   : > { %v4909_v8 = vpack.c.bf16 %v5252_v2, %v5251_v3 }
 0xaf6   : > { %v5292_v41 = vpop.eup %5291 }
 0xaf7   : > { %v2522_v42 = vmul.f32 %v5292_v41, %v2514_v26 }
 0xaf9   : > { %v2523_v43 = vmul.f32 %v7138_v25, %v2522_v42 }
 0xafb   : > { %v2524_v44 = vadd.f32 %v7140_v29, %v2523_v43 }
 0xafd   : > { %4730 = vmatmul.mubr.msk.f32.vlgmr.msra.gmra.mrb[16].mxu0 %vm1258_vm0, %v2524_v44 }
 0xafe   : > { %4751 = vmatprep.mubr.msk.f32.mxu0 %vm1258_vm0, %v1252_v30  ;;  %4895 = vmatpush3.bf16.msra.mxu0 %v4892_v56 }
 0xaff   : > { %4897 = vmatprep.subr.bf16.mxu0 %v4896_v58 }
 0xb02   : > { %4899 = vmatpush3.bf16.msra.mxu0 %v4896_v58 }
 0xb03   : > { %4904 = vmatprep.subr.bf16.mxu0 %v6231_v10 }
 0xb05   : > { %4752 = vmatmul.mubr.msk.f32.vlgmr.msra.gmra.mrb[18].mxu0 %vm1258_vm0, %v1253_v31 }
 0xb06   : > { %4765 = vmatprep.mubr.msk.f32.mxu0 %vm6232_vm1, %v6233_v18 }
 0xb0b   : > { %4907 = vmatpush3.bf16.xpose.msk.msra.mxu0 %vm7258_vm4, %v4905_v62 }
 0xb0c   : > { %4912 = vmatprep.subr.bf16.mxu0 %v6231_v10 }
 0xbd0   : > { %v2620_v4 = vpop.f32.mrb[16].mxu0 }
 0xbd1   : > { %v2621_v5 = vadd.f32 %v4484_v1, %v2620_v4  ;;  %v4731_v6 = vpop.f32.mrb[17].mxu0 }
 0xbd3   : > { %v2624_v7 = vmul.f32 0.35355338, %v2621_v5 }
 0xbd5   : > { %2796 = vrot.lane.b32.xlu0 %v2624_v7, %s6235_s8  ;;  %2794 = vrot.lane.b32.xlu1 %v2624_v7, %s6234_s3 }
 0xbd6   : > { %4759 = vmatmul.mubr.msk.f32.vlgmr.msra.gmra.mrb[16].mxu1 %vm1563_vm2, %v2624_v7 }
 0xbd7   : > { %4911 = vmatpush3.bf16.xpose.msk.msra.mxu1 %vm7258_vm4, %v4909_v8  ;;  %4772 = vmatprep.mubr.msk.f32.mxu1 %vm6232_vm1, %v6233_v18 }
 0xbd8   : > { %4916 = vmatprep.subr.bf16.mxu1 %v6231_v10  ;;  %v4753_v9 = vpop.f32.mrb[18].mxu0 }
 0xbd9   : > { %2798 = vrot.lane.b32.xlu1 %v2624_v7, %s6236_s1  ;;  %v2784_v11 = vpop.f32.mrb[19].mxu0  ;;  %v2790_v14 = vadd.f32 %v4753_v9, %v4489_v12 }
 0xbda   : > { %v2785_v16 = vadd.f32 %v4489_v12, %v2784_v11 }
 0xbdc   : > { %v4917_v20 = vpack.c.bf16 %v2790_v14, %v2785_v16  ;;  %v5258_v43 = vpack.i.bf16 %v2790_v14, %v2785_v16 }
 0xc47   : > { %v2797_v22 = vpop.permute.xlu0 %2796  ;;  %v2795_v23 = vpop.permute.xlu1 %2794 }
 0xc48   : > { %4766 = vmatmul.mubr.msk.f32.vlgmr.msra.gmra.mrb[20].mxu0 %vm1563_vm2, %v2795_v23  ;;  %4773 = vmatmul.mubr.msk.f32.vlgmr.msra.gmra.mrb[18].mxu1 %vm1563_vm2, %v2797_v22 }
 0xc49   : > { %4915 = vmatpush3.bf16.xpose.msk.msra.mxu0 %vm7258_vm4, %v4913_v21  ;;  %4779 = vmatprep.mubr.msk.f32.mxu0 %vm6232_vm1, %v6233_v18 }
 0xc4a   : > { %4918 = vmatpush3.bf16.msra.mxu1 %v4917_v20  ;;  %4786 = vmatprep.mubr.msk.f32.mxu1 %vm6232_vm1, %v6233_v18 }
 0xc4b   : > { %4919 = vmatprep.subr.bf16.mxu1 %v6231_v10  ;;  %4922 = vmatprep.subr.bf16.mxu0 %v6231_v10  ;;  %v2799_v0 = vpop.permute.xlu1 %2798 }
 0xc50   : > { %4780 = vmatmul.mubr.msk.f32.vlgmr.msra.gmra.mrb[22].mxu0 %vm1563_vm2, %v2799_v0 }
 0xc51   : > { %4800 = vmatprep.mubr.msk.f32.mxu0 %vm6232_vm1, %v6233_v18 }
 0xca9   : > { %v2906_v26 = vpop.f32.mrb[16].mxu1 }
 0xcaa   : > { %v3141_v27 = vsel %vm3138_vm5, -1e+10, %v2906_v26  ;;  %v4760_v28 = vpop.f32.mrb[17].mxu1  ;;  %v2540_v26 = vld [vmem:[#allocation34] sm:$0xff] }
 0xcab   : > { %v3146_v30 = vsel %vm3145_vm6, %v3141_v27, -inf }
 0xcac   : > { %3147 = vmax.xlane.f32.xlu0 %v3146_v30  ;;  %v2541_v30 = vld [vmem:[#allocation34 + $0x8] sm:$0xff] }
 0xd1b   : > { %v2982_v31 = vpop.f32.mrb[20].mxu0  ;;  %v3058_v32 = vpop.f32.mrb[18].mxu1 }
 0xd1c   : > { %v3142_v33 = vsel %vm3138_vm5, -1e+10, %v2982_v31  ;;  %v3143_v34 = vsel %vm3138_vm5, -1e+10, %v3058_v32  ;;  %v4767_v35 = vpop.f32.mrb[21].mxu0  ;;  %v4774_v36 = vpop.f32.mrb[19].mxu1 }
 0xd1d   : > { %v3152_v37 = vsel %vm3145_vm6, %v3143_v34, -inf  ;;  %v3149_v38 = vsel %vm3145_vm6, %v3142_v33, -inf  ;;  %v2542_v31 = vld [vmem:[#allocation34 + $0x10] sm:$0xff] }
 0xd1e   : > { %3153 = vmax.xlane.f32.xlu0 %v3152_v37  ;;  %3150 = vmax.xlane.f32.xlu1 %v3149_v38 }
 0xd23   : > { %v3134_v39 = vpop.f32.mrb[22].mxu0 }
 0xd24   : > { %v3144_v40 = vsel %vm3138_vm5, -1e+10, %v3134_v39  ;;  %v4781_v41 = vpop.f32.mrb[23].mxu0 }
 0xd25   : > { %v3155_v42 = vsel %vm3145_vm6, %v3144_v40, -inf }
 0xd26   : > { %3156 = vmax.xlane.f32.xlu0 %v3155_v42 }
 0xd2f   : > { %5259 = vrot.lane.b32.xlu1 %v5258_v43, %s6234_s3  ;;  %s6053_s3 = scalar_lea.vmem %s6052_s27, 1024 }
 0xd30   : > { %p6055_p7 = scmp.lt.s32.totalorder %s6053_s3, %s6047_s0 }
 0xd32   : > { %p6056_p8 = por %p6055_p7, %p6054_p11 }
 0xd34   : > { %p6057_p6 = pnand %p6056_p8, %p6050_p1 }
 0xd39   : > { %v3148_v44 = vpop.xlane.xlu0 %3147 }
 0xd3a   : > { %v3158_v45 = vsub.f32 %v3141_v27, %v3148_v44 }
 0xd3c   : > { %v3162_v46 = vmul.f32 1.442695, %v3158_v45 }
 0xd3e   : > { %5293 = vpow2.f32 %v3162_v46 }
 0xd48   : > { %v5294_v47 = vpop.eup %5293 }
 0xd49   : > { %v3170_v48 = vsel %vm3145_vm6, %v5294_v47, 0.0 }
 0xd53   : > { %3171 = vadd.xlane.f32.xlu1 %v3170_v48 }
 0xdab   : > { %v3154_v49 = vpop.xlane.xlu0 %3153  ;;  %v3151_v50 = vpop.xlane.xlu1 %3150 }
 0xdac   : > { %v3160_v51 = vsub.f32 %v3143_v34, %v3154_v49  ;;  %v3159_v52 = vsub.f32 %v3142_v33, %v3151_v50  ;;  %v2543_v34 = vld [vmem:[#allocation34 + $0x18] sm:$0xff] }
 0xdae   : > { %v3166_v53 = vmul.f32 1.442695, %v3160_v51  ;;  %v3164_v54 = vmul.f32 1.442695, %v3159_v52 }
 0xdaf   : > { %v5260_v1 = vpop.permute.xlu1 %5259 }
 0xdb0   : > { %5295 = vpow2.f32 %v3166_v53  ;;  %v5262_v3 = vunpack.i.h.bf16 %v5260_v1  ;;  %v5261_v4 = vunpack.i.l.bf16 %v5260_v1  ;;  %v4512_v53 = vld [vmem:[#allocation35] ss:$0 sm:$0xff]  ;;  %v3808_v1 = vld [vmem:[#allocation37] sm:$0xff] }
 0xdb1   : > { %5297 = vpow2.f32 %v3164_v54 }
 0xdb2   : > { %v4920_v7 = vpack.c.bf16 %v5262_v3, %v5261_v4  ;;  %v3811_v4 = vld [vmem:[#allocation37 + $0x18] sm:$0xff] }
 0xdb3   : > { %v3157_v55 = vpop.xlane.xlu0 %3156 }
 0xdb4   : > { %v3161_v56 = vsub.f32 %v3144_v40, %v3157_v55 }
 0xdb6   : > { %v3168_v57 = vmul.f32 1.442695, %v3161_v56 }
 0xdb8   : > { %5299 = vpow2.f32 %v3168_v57 }
 0xdba   : > { %v5296_v58 = vpop.eup %5295 }
 0xdbb   : > { %v5298_v59 = vpop.eup %5297  ;;  %v3176_v60 = vsel %vm3145_vm6, %v5296_v58, 0.0 }
 0xdbc   : > { %v3173_v61 = vsel %vm3145_vm6, %v5298_v59, 0.0  ;;  %3177 = vadd.xlane.f32.xlu1 %v3176_v60 }
 0xdbd   : > { %3174 = vadd.xlane.f32.xlu0 %v3173_v61 }
 0xdc2   : > { %v5300_v62 = vpop.eup %5299 }
 0xdc3   : > { %v3179_v63 = vsel %vm3145_vm6, %v5300_v62, 0.0 }
 0xdc4   : > { %3180 = vadd.xlane.f32.xlu0 %v3179_v63 }
 0xdcd   : > { %5269 = vrot.lane.b32.xlu1 %v5258_v43, %s6236_s1 }
 0xdda   : > { %5264 = vrot.lane.b32.xlu0 %v5258_v43, %s6235_s8 }
 0xde0   : > { %v3172_v2 = vpop.xlane.xlu1 %3171 }
 0xde1   : > { %5301 = vrcp.f32 %v3172_v2  ;;  %v3809_v2 = vld [vmem:[#allocation37 + $0x8] sm:$0xff] }
 0xde2   : > { %v4929_v3 = vpack.c.bf16 %v3809_v2, %v3808_v1 }
 0xdeb   : > { %v5302_v5 = vpop.eup %5301 }
 0xdec   : > { %v3186_v6 = vmul.f32 %v5302_v5, %v5294_v47 }
 0xdee   : > { %3190 = vst.msk [vmem:[%s7315_s20] sm:$0xff] %vm3145_vm6, %v3186_v6  ;;  %4787 = vmatmul.mubr.msk.f32.vlgmr.msra.gmra.mrb[20].mxu1 %vm3145_vm6, %v3186_v6  ;;  %v3893_v6 = vld [vmem:[#allocation40] sm:$0xff] }
 0xdef   : > { %4921 = vmatpush3.bf16.msra.mxu1 %v4920_v7  ;;  %4793 = vmatprep.mubr.msk.f32.mxu1 %vm6232_vm1, %v6233_v18  ;;  %v3894_v7 = vld [vmem:[#allocation40 + $0x8] sm:$0xff] }
 0xdf0   : > { %4925 = vmatprep.subr.bf16.mxu1 %v6231_v10 }
 0xe49   : > { %v3178_v8 = vpop.xlane.xlu1 %3177 }
 0xe4a   : > { %v3175_v9 = vpop.xlane.xlu0 %3174  ;;  %5303 = vrcp.f32 %v3178_v8  ;;  %v3895_v8 = vld [vmem:[#allocation40 + $0x10] sm:$0xff] }
 0xe4b   : > { %5305 = vrcp.f32 %v3175_v9  ;;  %v4935_v9 = vpack.c.bf16 %v3894_v7, %v3893_v6 }
 0xe4d   : > { %v5270_v11 = vpop.permute.xlu1 %5269 }
 0xe4e   : > { %v5272_v13 = vunpack.i.h.bf16 %v5270_v11  ;;  %v5271_v14 = vunpack.i.l.bf16 %v5270_v11  ;;  %v3896_v11 = vld [vmem:[#allocation40 + $0x18] sm:$0xff] }
 0xe50   : > { %v4926_v0 = vpack.c.bf16 %v5272_v13, %v5271_v14  ;;  %v3897_v13 = vld [vmem:[#allocation40 + $0x20] sm:$0xff]  ;;  %v3898_v14 = vld [vmem:[#allocation40 + $0x28] sm:$0xff] }
 0xe51   : > { %v3181_v12 = vpop.xlane.xlu0 %3180 }
 0xe52   : > { %5307 = vrcp.f32 %v3181_v12  ;;  %v4938_v12 = vpack.c.bf16 %v3896_v11, %v3895_v8 }
 0xe54   : > { %v5304_v16 = vpop.eup %5303 }
 0xe55   : > { %v5306_v17 = vpop.eup %5305  ;;  %v3188_v19 = vmul.f32 %v5304_v16, %v5296_v58  ;;  %v5265_v20 = vpop.permute.xlu0 %5264  ;;  %v4941_v16 = vpack.c.bf16 %v3898_v14, %v3897_v13 }
 0xe56   : > { %v3187_v21 = vmul.f32 %v5306_v17, %v5298_v59  ;;  %v5267_v22 = vunpack.i.h.bf16 %v5265_v20  ;;  %v5266_v23 = vunpack.i.l.bf16 %v5265_v20 }
 0xe57   : > { %3192 = vst.msk [vmem:[%s7315_s20 + $0x10] sm:$0xff] %vm3145_vm6, %v3188_v19 }
 0xe58   : > { %3191 = vst.msk [vmem:[%s7315_s20 + $0x8] sm:$0xff] %vm3145_vm6, %v3187_v21  ;;  %v4923_v24 = vpack.c.bf16 %v5267_v22, %v5266_v23  ;;  %4794 = vmatmul.mubr.msk.f32.vlgmr.msra.gmra.mrb[22].mxu1 %vm3145_vm6, %v3187_v21 }
 0xe59   : > { %4927 = vmatpush3.bf16.msra.mxu1 %v4926_v0  ;;  %4807 = vmatprep.mubr.msk.f32.mxu1 %vm6232_vm1, %v6233_v18 }
 0xe5a   : > { %4924 = vmatpush3.bf16.msra.mxu0 %v4923_v24  ;;  %4815 = vmatprep.subr.mxu1 %v6233_v18  ;;  %v3899_v24 = vld [vmem:[#allocation40 + $0x30] sm:$0xff] }
 0xe5b   : > { %4810 = vmatprep.subr.mxu0 %v6233_v18 }
 0xe5c   : > { %v5308_v27 = vpop.eup %5307 }
 0xe5d   : > { %v3189_v28 = vmul.f32 %v5308_v27, %v5300_v62  ;;  %4801 = vmatmul.mubr.msk.f32.vlgmr.msra.gmra.mrb[24].mxu0 %vm3145_vm6, %v3188_v19 }
 0xe5e   : > { %4811 = vmatpush3.msra.mxu0 %v2540_v26  ;;  %4812 = vmatprep.mubr.msk.f32.mxu0 %vm6232_vm1, %v6233_v18  ;;  %v3900_v26 = vld [vmem:[#allocation40 + $0x38] sm:$0xff] }
 0xe5f   : > { %3193 = vst.msk [vmem:[%s7315_s20 + $0x18] sm:$0xff] %vm3145_vm6, %v3189_v28  ;;  %4808 = vmatmul.mubr.msk.f32.vlgmr.msra.gmra.mrb[24].mxu1 %vm3145_vm6, %v3189_v28  ;;  %4820 = vmatprep.subr.mxu0 %v6233_v18  ;;  %v4944_v27 = vpack.c.bf16 %v3900_v26, %v3899_v24 }
 0xe60   : > { %4817 = vmatprep.mubr.msk.f32.mxu1 %vm6232_vm1, %v6233_v18  ;;  %4816 = vmatpush3.msra.mxu1 %v2541_v30 }
 0xe61   : > { %4825 = vmatprep.subr.mxu1 %v6233_v18 }
 0xec1   : > { %v3263_v32 = vpop.f32.mrb[20].mxu1 }
 0xec2   : > { %v4788_v33 = vpop.f32.mrb[21].mxu1  ;;  %4813 = vmatmul.mubr.msk.f32.vlgmr.msra.gmra.mrb[26].mxu0 %vm1563_vm2, %v3263_v32 }
 0xec3   : > { %4821 = vmatpush3.msra.mxu0 %v2542_v31  ;;  %4822 = vmatprep.mubr.msk.f32.mxu0 %vm6232_vm1, %v6233_v18 }
 0xec4   : > { %4928 = vmatprep.subr.bf16.mxu0 %v6231_v10 }
 0xf2b   : > { %v3336_v35 = vpop.f32.mrb[22].mxu1 }
 0xf2c   : > { %v4795_v36 = vpop.f32.mrb[23].mxu1  ;;  %4818 = vmatmul.mubr.msk.f32.vlgmr.msra.gmra.mrb[26].mxu1 %vm1563_vm2, %v3336_v35 }
 0xf2d   : > { %4826 = vmatpush3.msra.mxu1 %v2543_v34  ;;  %4827 = vmatprep.mubr.msk.f32.mxu1 %vm6232_vm1, %v6233_v18 }
 0xf2e   : > { %4934 = vmatprep.subr.bf16.mxu1 %v6231_v10 }
 0xf30   : > { %v3409_v37 = vpop.f32.mrb[24].mxu0 }
 0xf31   : > { %v4802_v38 = vpop.f32.mrb[25].mxu0  ;;  %4823 = vmatmul.mubr.msk.f32.vlgmr.msra.gmra.mrb[28].mxu0 %vm1563_vm2, %v3409_v37 }
 0xf32   : > { %v3482_v39 = vpop.f32.mrb[24].mxu1  ;;  %4838 = vmatprep.mubr.msk.f32.mxu0 %vm6232_vm1, %v6233_v18  ;;  %4930 = vmatpush3.bf16.msra.mxu0 %v4929_v3 }
 0xf33   : > { %v4809_v40 = vpop.f32.mrb[25].mxu1  ;;  %4828 = vmatmul.mubr.msk.f32.vlgmr.msra.gmra.mrb[28].mxu1 %vm1563_vm2, %v3482_v39  ;;  %4931 = vmatprep.subr.bf16.mxu0 %v6231_v10 }
 0xf34   : > { %4857 = vmatprep.mubr.msk.f32.mxu1 %vm6232_vm1, %v6233_v18  ;;  %4936 = vmatpush3.bf16.msra.mxu1 %v4935_v9 }
 0xf35   : > { %4937 = vmatprep.subr.bf16.mxu1 %v6231_v10 }
 0xf38   : > { %4939 = vmatpush3.bf16.msra.mxu1 %v4938_v12 }
 0xf39   : > { %4940 = vmatprep.subr.bf16.mxu1 %v6231_v10 }
 0xf3c   : > { %4942 = vmatpush3.bf16.msra.mxu1 %v4941_v16 }
 0xf3d   : > { %4943 = vmatprep.subr.bf16.mxu1 %v6231_v10  ;;  %v4513_v10 = vld [vmem:[#allocation38] ss:$0 sm:$0xff] }
 0xf40   : > { %4945 = vmatpush3.bf16.msra.mxu1 %v4944_v27 }
 0xf95   : > { %v3555_v41 = vpop.f32.mrb[26].mxu0 }
 0xf96   : > { %v4814_v42 = vpop.f32.mrb[27].mxu0  ;;  %v3778_v44 = vsel %vm1258_vm0, %v3555_v41, 0.0 }
 0xfff   : > { %v3628_v43 = vpop.f32.mrb[26].mxu1 }
0x1000   : > { %v3779_v45 = vsel %vm1258_vm0, %v3628_v43, 0.0  ;;  %v4819_v46 = vpop.f32.mrb[27].mxu1 }
0x1001   : > { %v3780_v47 = vadd.f32 %v3779_v45, %v3778_v44 }
0x1004   : > { %v3701_v48 = vpop.f32.mrb[28].mxu0 }
0x1005   : > { %v3781_v49 = vsel %vm1258_vm0, %v3701_v48, 0.0  ;;  %v4824_v50 = vpop.f32.mrb[29].mxu0 }
0x1006   : > { %v3782_v51 = vadd.f32 %v3781_v49, %v3780_v47  ;;  %v3774_v52 = vpop.f32.mrb[28].mxu1 }
0x1007   : > { %v3783_v54 = vsel %vm1258_vm0, %v3774_v52, 0.0  ;;  %v4829_v55 = vpop.f32.mrb[29].mxu1 }
0x1008   : > { %v3784_v18 = vadd.f32 %v3783_v54, %v3782_v51 }
0x100a   : > { %v3791_v56 = vadd.f32 %v4512_v53, %v3784_v18 }
0x100c   : > { %v7361_v57 = vadd.f32 %v3791_v56, %v7238_v15  ;;  %v3810_v15 = vld [vmem:[#allocation37 + $0x10] sm:$0xff] }
0x100d   : > { %v4932_v5 = vpack.c.bf16 %v3811_v4, %v3810_v15 }
0x100e   : > { %v3793_v58 = vsel %vm1258_vm0, %v7361_v57, 0.0 }
0x100f   : > { %3794 = vadd.xlane.f32.xlu1 %v3793_v58  ;;  %4933 = vmatpush3.bf16.msra.mxu0 %v4932_v5 }
0x109c   : > { %v3795_v59 = vpop.xlane.xlu1 %3794 }
0x109d   : > { %v3796_v60 = vmul.f32 0.03125, %v3795_v59 }
0x109f   : > { %v3797_v61 = vsub.f32 %v7361_v57, %v3796_v60 }
0x10a1   : > { %v3798_v62 = vmul.f32 %v3797_v61, %v3797_v61 }
0x10a3   : > { %v3799_v63 = vsel %vm1258_vm0, %v3798_v62, 0.0 }
0x10a4   : > { %3800 = vadd.xlane.f32.xlu0 %v3799_v63 }
0x1131   : > { %v3801_v17 = vpop.xlane.xlu0 %3800 }
0x1132   : > { %v3802_v19 = vmul.f32 0.03125, %v3801_v17 }
0x1134   : > { %v3803_v20 = vadd.f32 1e-05, %v3802_v19 }
0x1136   : > { %5309 = vrsqrt.f32 %v3803_v20 }
0x1140   : > { %v5310_v21 = vpop.eup %5309 }
0x1141   : > { %v3805_v22 = vmul.f32 %v5310_v21, %v3797_v61 }
0x1143   : > { %v3806_v23 = vmul.f32 %v7138_v25, %v3805_v22 }
0x1145   : > { %v3807_v0 = vadd.f32 %v7140_v29, %v3806_v23 }
0x1147   : > { %4839 = vmatmul.mubr.msk.f32.vlgmr.msra.gmra.mrb[30].mxu0 %vm1258_vm0, %v3807_v0 }
0x121a   : > { %v3888_v28 = vpop.f32.mrb[30].mxu0 }
0x121b   : > { %v3889_v30 = vadd.f32 %v4513_v10, %v3888_v28  ;;  %v4840_v31 = vpop.f32.mrb[31].mxu0 }
0x121d   : > { %v3892_v32 = vmax.f32 %v3889_v30, 0.0 }
0x121f   : > { %4858 = vmatmul.mubr.msk.f32.vlgmr.msra.gmra.mrb[30].mxu1 %vm3908_vm7, %v3892_v32 }
0x1220   : > { %6060 = shalt.err (!%p6057_p6)
}
0x1221   : > { %s6061_s8 = scalar_lea.hbm %s7379_s11, 512  ;;  %s6065_s20 = scalar_lea.hbm %s7635_s12, 1024 }
0x1222   : > { %p6062_p0 = scmp.ne.s32.totalorder %s7379_s11, %s6061_s8  ;;  %p6066_p4 = scmp.lt.u32.totalorder %s7379_s11, %s7635_s12 }
0x1223   : > { %p6067_p10 = scmp.lt.u32.totalorder %s6065_s20, %s6061_s8  ;;  %p6069_p3 = scmp.lt.u32.totalorder %s6061_s8, %s7379_s11 }
0x1224   : > { %p6063_p9 = pnand %p6062_p0, %p7636_p5 }
0x1225   : > { %p6068_p2 = por %p6067_p10, %p6066_p4 }
0x1226   : > { %p6064_p12 = pneg %p6063_p9 }
0x1227   : > { %p6070_p13 = por %p6069_p3, %p6068_p2 }
0x1229   : > { %p6071_p1 = pnand %p6070_p13, %p6064_p12 }
0x122b   : > { %6074 = shalt.err (!%p6071_p1)
}
0x122c   : > { %s6238_s6 = smov 128   ;;  %s6239_s0 = smov 8   ;;  %v4515_v25 = vld [vmem:[#allocation41] ss:$0 sm:$0xff] }
0x122d   : > { %5043 = dma.vmem_to_hbm [thread:$0]  (%p7636_p5), %s7381_s17, 512, %s7379_s11, %s3990_s5, %s6238_s6, %s6238_s6, %s6239_s0  }
0x122e   : > { %s4519_s29 = sshll.u32 %s6402_s28, 7  ;;  %s1243_s27 = scalar_lea.vmem [#allocation43], %s7050_s2 }
0x122f   : > { %s4003_s3 = sshll.u32 %s1243_s27, 4  ;;  %s7637_s7 = sld [smem:[#allocation93_spill]]  ;;  %s7415_s3 = int_to_ptr.vmem [resolvable:$true] %s4003_s3 }
0x1230   : > { %s3985_s17 = scalar_lea.sflag [#allocation4], %s7047_s21  ;;  %s6075_s28 = scalar_lea.vmem %s7415_s3, 128 }
0x1231   : > { %p6076_p11 = scmp.ne.s32.totalorder %s7415_s3, %s6075_s28  ;;  %s6240_s2 = smov [#allocation43]  }
0x1232   : > { %s6079_s11 = sshll.u32 %s6240_s2, 4  ;;  %s6080_s11 = int_to_ptr.vmem [resolvable:$false] %s6079_s11 }
0x1233   : > { %p6077_p7 = pnand %p6076_p11, %p7636_p5  ;;  %s6081_s5 = scalar_lea.vmem %s6080_s11, 256 }
0x1234   : > { %p6082_p6 = scmp.lt.s32.totalorder %s7415_s3, %s6080_s11  ;;  %p6083_p0 = scmp.lt.s32.totalorder %s6081_s5, %s6075_s28 }
0x1235   : > { %s7638_s20 = smov %s7637_s7  ;;  %s7413_s10 = scalar_lea.hbm %s7637_s7, %s4519_s29 }
0x1236   : > { %p6078_p8 = pneg %p6077_p7  ;;  %p6084_p9 = por %p6083_p0, %p6082_p6 }
0x1238   : > { %p6085_p12 = pnand %p6084_p9, %p6078_p8 }
0x12f2   : > { %v3978_v29 = vpop.f32.mrb[30].mxu1 }
0x12f3   : > { %v3979_v33 = vadd.f32 %v4515_v25, %v3978_v29  ;;  %v4859_v34 = vpop.f32.mrb[31].mxu1 }
0x12f5   : > { %v3982_v35 = vadd.f32 %v3979_v33, %v7361_v57 }
0x12f7   : > { %3983 = vst.msk [vmem:[%s1243_s27] sm:$0xff] %vm1258_vm0, %v3982_v35 }
0x12f8   : > { %6088 = shalt.err (!%p6085_p12)
}
0x12f9   : > { %s6089_s21 = scalar_lea.hbm %s7413_s10, 128  ;;  %s6093_s0 = scalar_lea.hbm %s7638_s20, 256 }
0x12fa   : > { %p6090_p4 = scmp.ne.s32.totalorder %s7413_s10, %s6089_s21  ;;  %p6094_p3 = scmp.lt.u32.totalorder %s7413_s10, %s7638_s20 }
0x12fb   : > { %p6095_p13 = scmp.lt.u32.totalorder %s6093_s0, %s6089_s21  ;;  %p6097_p11 = scmp.lt.u32.totalorder %s6089_s21, %s7413_s10 }
0x12fc   : > { %p6091_p10 = pnand %p6090_p4, %p7636_p5 }
0x12fd   : > { %p6096_p1 = por %p6095_p13, %p6094_p3 }
0x12fe   : > { %p6092_p2 = pneg %p6091_p10 }
0x12ff   : > { %p6098_p7 = por %p6097_p11, %p6096_p1 }
0x1301   : > { %p6099_p8 = pnand %p6098_p7, %p6092_p2 }
0x1303   : > { %6102 = shalt.err (!%p6099_p8)
}
0x1304   : > { %5042 = dma.vmem_to_hbm [thread:$0]  (%p7636_p5), %s7415_s3, 128, %s7413_s10, %s3985_s17  }
0x1305 PF: > { %s7639_s8 = sld [smem:[#allocation63_spill]]  ;;  %s7640_s1 = sld [smem:[#allocation68_spill]] }
0x1306   : > { %p7642_p0 = scmp.ge.s32.totalorder %s6201_s30, 2 }
0x130b   : > { %s4031_s7 = sand.u32 1, %s7639_s8   ;;  %p7641_p6 = scmp.ne.s32.totalorder %s7640_s1, 0 }
0x130c   : > { %s4032_s28 = scalar_lea.sflag [#allocation4], %s4031_s7 }
0x130d   : > { %p5127_p9 = pnand %p7642_p0, %p7641_p6 }
0x130f   : > { %6180 = dma.done.wait (!%p5127_p9), %s4032_s28, 128  }
0x1310   : > { %6182 = vsyncadd (!%p5127_p9), %s4032_s28, 4294967168  ;;  %s4041_s2 = scalar_lea.sflag [#allocation45], %s4031_s7 }
0x1311   : > { %6184 = dma.done.wait (!%p5127_p9), %s4041_s2, 512  }
0x1312   : > { %6186 = vsyncadd (!%p5127_p9), %s4041_s2, 4294966784  ;;  %s7643_s30 = sld [smem:[#allocation66_spill]]  ;;  %s7644_s18 = sld [smem:[#allocation64_spill]] }
0x1313   : > { %s7645_s8 = sld [smem:[#allocation67_spill]]  ;;  %s7646_s7 = smov %s6193_s4 }
0x1318   : > { %p61_p5 = scmp.ge.s32.totalorder %s7643_s30, 4   ;;  %s7647_s4 = smov %s7644_s18 }
0x131a   :  { %63 = sbr.rel (!%p61_p5) target bundleno = 49 (0x31), region = 311 }
0x1321   :  { %4046 = vsyncpa [#allocation3], 1 }
0x1322   :  { %4048 = vsyncpa [#allocation3 + $0x1], 1 }
0x1323   :  { %4049 = vsyncpa [#allocation6], 1 }
0x1324   :  { %4051 = vsyncpa [#allocation6 + $0x1], 1 }
0x1325   :  { %4052 = vsyncpa [#allocation9], 1 }
0x1326   :  { %4054 = vsyncpa [#allocation9 + $0x1], 1 }
0x1327   :  { %4055 = vsyncpa [#allocation12], 1 }
0x1328   :  { %4056 = vsyncpa [#allocation15], 1 }
0x1329   :  { %4057 = vsyncpa [#allocation18], 1 }
0x132a   :  { %4058 = vsyncpa [#allocation21], 1 }
0x132b   :  { %4059 = vsyncpa [#allocation24], 1 }
0x132c   :  { %4060 = vsyncpa [#allocation27], 1 }
0x132d   :  { %4061 = vsyncpa [#allocation30], 1 }
0x132e   :  { %4062 = vsyncpa [#allocation33], 1 }
0x132f   :  { %4063 = vsyncpa [#allocation36], 1 }
0x1330   :  { %4064 = vsyncpa [#allocation39], 1 }
0x1331   :  { %4065 = vsyncpa [#allocation42], 1 }
0x1332   :  { %4066 = vsyncpa [#allocation4], 1 }
0x1333   :  { %4068 = vsyncpa [#allocation4 + $0x1], 1 }
0x1334   :  { %4069 = vsyncpa [#allocation45], 1 }
0x1335   :  { %4071 = vsyncpa [#allocation45 + $0x1], 1 }

</bundles_post_ra>
